<compile_context>
chip_gen: v6e
topology: v6e:2x2x1
jax: 0.10.0
libtpu: 0.0.40
codegen_flags: <defaults>
</compile_context>

<pallas_src>
import functools

import jax
import jax.numpy as jnp
from jax.experimental import pallas as pl
from jax.experimental.pallas import tpu as pltpu

EPSILON = 1e-7
NEG_INF = -1000000.0


def rsa_kernel(inp_ref, mask_ref, wqkv_ref, bqkv_ref, texp_q_ref, r_s_ref,
               g_ref, m_exp_ref, texp_v_ref, rwo_ref, bo_ref, out_ref,
               *, num_ent):
    N = num_ent
    x = inp_ref[...]                       # (Bt, N*E), lanes = (entity, feature)
    Bt, NE = x.shape
    E = NE // N
    inv_sqrt_e = 1.0 / (E ** 0.5)

    # Fused block-diagonal Q/K/V projection: K and V come out already in the
    # lane-flat (Bt, N*E) layout the attention below needs.
    qkv = (jnp.dot(x, wqkv_ref[...], preferred_element_type=jnp.float32)
           + bqkv_ref[...])                # (Bt, 3*N*E)
    q_flat = qkv[:, :NE]
    k_flat = qkv[:, NE:2 * NE]
    v_flat = qkv[:, 2 * NE:]

    mask = mask_ref[...]                   # (Bt, N); 1.0 = masked entity
    # Score-lane (head, key) ordered mask terms, hoisted out of the query loop.
    mask_hm = jnp.dot(mask, m_exp_ref[...], preferred_element_type=jnp.float32)
    gate_hm = (1.0 - mask_hm) * inv_sqrt_e          # (Bt, H*N)
    bias_hm = mask_hm * NEG_INF                     # (Bt, H*N)

    pool_acc = jnp.zeros((Bt, E), dtype=jnp.float32)
    for n in range(N):                     # static unroll over the N entities
        lo = n * E
        q_n = q_flat[:, lo:lo + E]         # (Bt, E)  lanes = (head, dh)
        x_n = x[:, lo:lo + E]

        # ---- scores: S[b, h*N+m] = sum_d q_n[b, h*Dh+d] * K[b, m, h*Dh+d] ----
        q_exp = jnp.dot(q_n, texp_q_ref[...],
                        preferred_element_type=jnp.float32)      # (Bt, N*E)
        s_n = jnp.dot(q_exp * k_flat, r_s_ref[...],
                      preferred_element_type=jnp.float32)        # (Bt, H*N)
        logits = s_n * gate_hm + bias_hm
        # The row-wide max is constant within every head group, so the
        # per-group softmax is unchanged; keeps fully-masked (padded) rows
        # finite exactly like torch.softmax.
        logits = logits - jnp.max(logits, axis=-1, keepdims=True)
        p = jnp.exp(logits)
        denom = jnp.dot(p, g_ref[...],
                        preferred_element_type=jnp.float32) + 1e-30  # group sums
        att = p * pl.reciprocal(denom, approx=True)              # (Bt, H*N)

        # ---- (att @ V) folded with the output projection --------------------
        a_exp = jnp.dot(att, texp_v_ref[...],
                        preferred_element_type=jnp.float32)      # (Bt, N*E)
        o_n = jnp.dot(a_exp * v_flat, rwo_ref[...],
                      preferred_element_type=jnp.float32)        # (Bt, E)
        o_n = o_n + bo_ref[...] + x_n                            # bias + residual
        pool_acc = pool_acc + o_n * (1.0 - mask[:, n:n + 1])

    denom_pool = jnp.sum(1.0 - mask, axis=1, keepdims=True) + EPSILON  # (Bt, 1)
    out_ref[...] = pool_acc / denom_pool   # exact divide (tiny; tightens match)


def _build_kernel_constants(params, num_ent, num_heads):
    """Host-side constant matrices baking the layout bookkeeping into matmuls."""
    wq, bq, wk, bk, wv, bv, wo, bo = params
    E = wq.shape[0]
    N = num_ent
    H = num_heads
    Dh = E // H
    NE = N * E
    HN = H * N
    f32 = jnp.float32

    eye_n = jnp.eye(N, dtype=f32)
    # Fused block-diagonal QKV weight (NE, 3*NE): preserves the lane-flat layout.
    wqkv = jnp.concatenate(
        [jnp.kron(eye_n, w.astype(f32)) for w in (wq, wk, wv)], axis=1)
    bqkv = jnp.concatenate(
        [jnp.tile(b.astype(f32), (1, N)) for b in (bq, bk, bv)], axis=1)

    # q lane-expand: (E, NE), q_exp[b, m*E + he] = q_n[b, he]
    texp_q = jnp.tile(jnp.eye(E, dtype=f32), (1, N))
    # score reduce over dh: (NE, HN), rows indexed (m, h, d) -> col h*N + m
    rows = jnp.arange(NE)
    m_of = rows // E
    h_of = (rows % E) // Dh
    r_s = jnp.zeros((NE, HN), f32).at[rows, h_of * N + m_of].set(1.0)
    # per-head-group sum (and broadcast) of the softmax numerators
    g_sum = jnp.kron(jnp.eye(H, dtype=f32), jnp.ones((N, N), f32))          # (HN, HN)
    # mask[b, m] -> score lanes (h, m)
    m_exp = jnp.tile(jnp.eye(N, dtype=f32), (1, H))                         # (N, HN)
    # att lane-expand: (HN, NE), a_exp[b, m*E + h*Dh + d] = att[b, h*N + m]
    texp_v = jnp.zeros((HN, NE), f32).at[h_of * N + m_of, rows].set(1.0)
    # reduce over keys fused with the output projection (row-tiled Wo)
    rwo = jnp.tile(wo.astype(f32), (N, 1))                                  # (NE, E)
    return wqkv, bqkv, texp_q, r_s, g_sum, m_exp, texp_v, rwo, bo.astype(f32)


def residual_self_attention(inp, mask, params, *, num_heads, block_b=512):
    """inp: (B, N, E) float32; mask: (B, N) float32 (1.0 = masked entity)."""
    B, N, E = inp.shape
    NE = N * E
    HN = num_heads * N
    consts = _build_kernel_constants(params, N, num_heads)
    wqkv, bqkv, texp_q, r_s, g_sum, m_exp, texp_v, rwo, bo = consts

    # Batch block size: big enough to amortize per-step overhead and fill the
    # MXU M dimension, but >= 2 grid steps whenever B allows (v7x megacore).
    # Padded rows are fully masked, so they pool to exactly zero and are
    # sliced off at the end.
    bt = min(block_b, B)
    if B >= 16:
        bt = min(bt, -(-B // 2))
    bt = max(8, ((bt + 7) // 8) * 8)
    n_blk = -(-B // bt)
    Bp = n_blk * bt
    if Bp != B:
        pad = Bp - B
        inp = jnp.pad(inp, ((0, pad), (0, 0), (0, 0)))
        mask = jnp.pad(mask, ((0, pad), (0, 0)), constant_values=1.0)

    inp_flat = inp.reshape(Bp, NE)

    kernel = functools.partial(rsa_kernel, num_ent=N)

    const_specs = [
        pl.BlockSpec((NE, 3 * NE), lambda b: (0, 0)),   # fused block-diag Wqkv
        pl.BlockSpec((1, 3 * NE), lambda b: (0, 0)),    # fused bqkv
        pl.BlockSpec((E, NE), lambda b: (0, 0)),        # q lane-expand
        pl.BlockSpec((NE, HN), lambda b: (0, 0)),       # score reduce
        pl.BlockSpec((HN, HN), lambda b: (0, 0)),       # head-group sum
        pl.BlockSpec((N, HN), lambda b: (0, 0)),        # mask lane-expand
        pl.BlockSpec((HN, NE), lambda b: (0, 0)),       # att lane-expand
        pl.BlockSpec((NE, E), lambda b: (0, 0)),        # key-reduce + Wo
        pl.BlockSpec((1, E), lambda b: (0, 0)),         # bo
    ]

    out = pl.pallas_call(
        kernel,
        out_shape=jax.ShapeDtypeStruct((Bp, E), jnp.float32),
        grid_spec=pltpu.PrefetchScalarGridSpec(
            num_scalar_prefetch=0,
            grid=(n_blk,),
            in_specs=[
                pl.BlockSpec((bt, NE), lambda b: (b, 0)),   # lane-flat input
                pl.BlockSpec((bt, N), lambda b: (b, 0)),    # mask (single stream)
            ] + const_specs,
            out_specs=pl.BlockSpec((bt, E), lambda b: (b, 0)),
        ),
        compiler_params=pltpu.CompilerParams(
            dimension_semantics=("parallel",),
            vmem_limit_bytes=32 * 1024 * 1024),
    )(inp_flat, mask, wqkv, bqkv, texp_q, r_s, g_sum, m_exp, texp_v, rwo, bo)
    return out[:B]


def residual_self_attention_ref(inp, mask, params, *, num_heads):
    """Pure-JAX reference mirroring the PyTorch forward, for validation."""
    wq, bq, wk, bk, wv, bv, wo, bo = params
    B, N, E = inp.shape
    Dh = E // num_heads
    q = inp @ wq + bq
    k = inp @ wk + bk
    v = inp @ wv + bv
    q = q.reshape(B, N, num_heads, Dh).transpose(0, 2, 1, 3)
    k = k.reshape(B, N, num_heads, Dh).transpose(0, 2, 1, 3)
    v = v.reshape(B, N, num_heads, Dh).transpose(0, 2, 1, 3)
    qk = jnp.einsum("bhqd,bhkd->bhqk", q, k)
    m = mask.reshape(B, 1, 1, N)
    qk = (1.0 - m) * qk / (E ** 0.5) + m * NEG_INF
    att = jax.nn.softmax(qk, axis=-1)
    va = jnp.einsum("bhqk,bhkd->bhqd", att, v)
    va = va.transpose(0, 2, 1, 3).reshape(B, N, E)
    out = va @ wo + bo + inp
    numer = jnp.sum(out * (1.0 - mask)[..., None], axis=1)
    denom = jnp.sum(1.0 - mask, axis=1, keepdims=True) + EPSILON
    return numer / denom


def make_params(key, embedding_size):
    """Deterministic init mimicking ml-agents linear_layer(Normal, gain, zero bias)."""
    E = embedding_size
    gain = (0.125 / E) ** 0.5
    keys = jax.random.split(key, 4)
    params = []
    for wk_ in keys:
        w = gain * jax.random.normal(wk_, (E, E), dtype=jnp.float32)
        b = jnp.zeros((1, E), dtype=jnp.float32)
        params.extend([w, b])
    return tuple(params)


if __name__ == "__main__":
    embedding_size = 32
    num_heads = 4
    entity_num_max_elements = [4, 4]
    N = sum(entity_num_max_elements)          # max_num_ent = 8

    root = jax.random.PRNGKey(0)
    k_inp, k_par, k_inp2, k_msk2 = jax.random.split(root, 4)

    params = make_params(k_par, embedding_size)

    # --- case 1: canonical small shape (B=2), matches the module's usage -----
    B = 2
    inp = jax.random.normal(k_inp, (B, N, embedding_size), dtype=jnp.float32)
    key_masks = [
        jnp.array([[0., 1., 0., 1.],
                   [0., 0., 1., 0.]], dtype=jnp.float32),
        jnp.array([[1., 0., 0., 0.],
                   [0., 1., 0., 1.]], dtype=jnp.float32),
    ]
    mask = jnp.concatenate(key_masks, axis=1)          # (B, N)

    out = residual_self_attention(inp, mask, params, num_heads=num_heads)
    out = jax.block_until_ready(out)
    ref = residual_self_attention_ref(inp, mask, params, num_heads=num_heads)
    assert out.shape == (B, embedding_size)
    # Tolerance covers the approximate EUP reciprocal used in the softmax.
    assert jnp.allclose(out, ref, rtol=5e-3, atol=5e-3), (
        f"max abs err {jnp.max(jnp.abs(out - ref))}")

    # --- case 2: exercise batch blocking, padding, >=2 grid steps, and a
    # fully-masked row (pools to exactly zero, like the torch module). --------
    B2 = 19
    inp2 = jax.random.normal(k_inp2, (B2, N, embedding_size), dtype=jnp.float32)
    mask2 = jax.random.bernoulli(k_msk2, 0.3, (B2, N)).astype(jnp.float32)
    mask2 = mask2.at[3, :].set(1.0)            # one fully-masked batch row
    out2 = residual_self_attention(inp2, mask2, params, num_heads=num_heads,
                                   block_b=16)
    out2 = jax.block_until_ready(out2)
    ref2 = residual_self_attention_ref(inp2, mask2, params, num_heads=num_heads)
    assert out2.shape == (B2, embedding_size)
    assert jnp.allclose(out2, ref2, rtol=5e-3, atol=5e-3), (
        f"max abs err {jnp.max(jnp.abs(out2 - ref2))}")

    print("KERNEL_OK")
</pallas_src>

<mosaic_0001>
module attributes {stable_mosaic.version = 11 : i64} {
  func.func @rsa_kernel(%arg0: i32, %arg1: memref<8x256xf32, #tpu.memory_space<vmem>>, %arg2: memref<8x8xf32, #tpu.memory_space<vmem>>, %arg3: memref<256x768xf32, #tpu.memory_space<vmem>>, %arg4: memref<1x768xf32, #tpu.memory_space<vmem>>, %arg5: memref<32x256xf32, #tpu.memory_space<vmem>>, %arg6: memref<256x32xf32, #tpu.memory_space<vmem>>, %arg7: memref<32x32xf32, #tpu.memory_space<vmem>>, %arg8: memref<8x32xf32, #tpu.memory_space<vmem>>, %arg9: memref<32x256xf32, #tpu.memory_space<vmem>>, %arg10: memref<256x32xf32, #tpu.memory_space<vmem>>, %arg11: memref<1x32xf32, #tpu.memory_space<vmem>>, %arg12: memref<8x32xf32, #tpu.memory_space<vmem>>) attributes {dimension_semantics = [#tpu.dimension_semantics<parallel>], iteration_bounds = array<i64: 1>, scalar_prefetch = 0 : i64, scratch_operands = 0 : i64, tpu.core_type = #tpu.core_type<tc>, window_params = [{transform_indices = @transform_0, window_bounds = array<i64: 8, 256>}, {transform_indices = @transform_1, window_bounds = array<i64: 8, 8>}, {pipeline_mode = #tpu.pipeline_mode<synchronous>, transform_indices = @transform_2, window_bounds = array<i64: 256, 768>}, {pipeline_mode = #tpu.pipeline_mode<synchronous>, transform_indices = @transform_3, window_bounds = array<i64: 1, 768>}, {pipeline_mode = #tpu.pipeline_mode<synchronous>, transform_indices = @transform_4, window_bounds = array<i64: 32, 256>}, {pipeline_mode = #tpu.pipeline_mode<synchronous>, transform_indices = @transform_5, window_bounds = array<i64: 256, 32>}, {pipeline_mode = #tpu.pipeline_mode<synchronous>, transform_indices = @transform_6, window_bounds = array<i64: 32, 32>}, {pipeline_mode = #tpu.pipeline_mode<synchronous>, transform_indices = @transform_7, window_bounds = array<i64: 8, 32>}, {pipeline_mode = #tpu.pipeline_mode<synchronous>, transform_indices = @transform_8, window_bounds = array<i64: 32, 256>}, {pipeline_mode = #tpu.pipeline_mode<synchronous>, transform_indices = @transform_9, window_bounds = array<i64: 256, 32>}, {pipeline_mode = #tpu.pipeline_mode<synchronous>, transform_indices = @transform_10, window_bounds = array<i64: 1, 32>}, {transform_indices = @transform_11, window_bounds = array<i64: 8, 32>}]} {
    %c0 = arith.constant 0 : index
    %c0_0 = arith.constant 0 : index
    %0 = vector.load %arg1[%c0, %c0_0] : memref<8x256xf32, #tpu.memory_space<vmem>>, vector<8x256xf32>
    %c0_1 = arith.constant 0 : index
    %c0_2 = arith.constant 0 : index
    %1 = vector.load %arg3[%c0_1, %c0_2] : memref<256x768xf32, #tpu.memory_space<vmem>>, vector<256x768xf32>
    %cst = arith.constant dense<0.000000e+00> : vector<8x768xf32>
    %2 = tpu.matmul %0, %1, %cst {dimension_numbers = #tpu.dot_dimension_numbers<[1], [0], [0], [1], [0, 0, 1, 1], [], []>} : vector<8x256xf32>, vector<256x768xf32>, vector<8x768xf32> -> vector<8x768xf32>
    %c0_3 = arith.constant 0 : index
    %c0_4 = arith.constant 0 : index
    %3 = vector.load %arg4[%c0_3, %c0_4] : memref<1x768xf32, #tpu.memory_space<vmem>>, vector<1x768xf32>
    %4 = vector.broadcast %3 : vector<1x768xf32> to vector<8x768xf32>
    %5 = arith.addf %2, %4 : vector<8x768xf32>
    %6 = vector.extract_strided_slice %5 {offsets = [0, 0], sizes = [8, 256], strides = [1, 1]} : vector<8x768xf32> to vector<8x256xf32>
    %7 = vector.extract_strided_slice %5 {offsets = [0, 256], sizes = [8, 256], strides = [1, 1]} : vector<8x768xf32> to vector<8x256xf32>
    %8 = vector.extract_strided_slice %5 {offsets = [0, 512], sizes = [8, 256], strides = [1, 1]} : vector<8x768xf32> to vector<8x256xf32>
    %c0_5 = arith.constant 0 : index
    %c0_6 = arith.constant 0 : index
    %9 = vector.load %arg2[%c0_5, %c0_6] : memref<8x8xf32, #tpu.memory_space<vmem>>, vector<8x8xf32>
    %c0_7 = arith.constant 0 : index
    %c0_8 = arith.constant 0 : index
    %10 = vector.load %arg8[%c0_7, %c0_8] : memref<8x32xf32, #tpu.memory_space<vmem>>, vector<8x32xf32>
    %cst_9 = arith.constant dense<0.000000e+00> : vector<8x32xf32>
    %11 = tpu.matmul %9, %10, %cst_9 {dimension_numbers = #tpu.dot_dimension_numbers<[1], [0], [0], [1], [0, 0, 1, 1], [], []>} : vector<8x8xf32>, vector<8x32xf32>, vector<8x32xf32> -> vector<8x32xf32>
    %cst_10 = arith.constant 1.000000e+00 : f32
    %12 = vector.broadcast %cst_10 : f32 to vector<8x32xf32>
    %13 = arith.subf %12, %11 : vector<8x32xf32>
    %cst_11 = arith.constant 0.176776692 : f32
    %14 = vector.broadcast %cst_11 : f32 to vector<8x32xf32>
    %15 = arith.mulf %13, %14 : vector<8x32xf32>
    %cst_12 = arith.constant -1.000000e+06 : f32
    %16 = vector.broadcast %cst_12 : f32 to vector<8x32xf32>
    %17 = arith.mulf %11, %16 : vector<8x32xf32>
    %cst_13 = arith.constant 0.000000e+00 : f32
    %18 = vector.broadcast %cst_13 : f32 to vector<8x32xf32>
    %19 = vector.extract_strided_slice %6 {offsets = [0, 0], sizes = [8, 32], strides = [1, 1]} : vector<8x256xf32> to vector<8x32xf32>
    %20 = vector.extract_strided_slice %0 {offsets = [0, 0], sizes = [8, 32], strides = [1, 1]} : vector<8x256xf32> to vector<8x32xf32>
    %c0_14 = arith.constant 0 : index
    %c0_15 = arith.constant 0 : index
    %21 = vector.load %arg5[%c0_14, %c0_15] : memref<32x256xf32, #tpu.memory_space<vmem>>, vector<32x256xf32>
    %cst_16 = arith.constant dense<0.000000e+00> : vector<8x256xf32>
    %22 = tpu.matmul %19, %21, %cst_16 {dimension_numbers = #tpu.dot_dimension_numbers<[1], [0], [0], [1], [0, 0, 1, 1], [], []>} : vector<8x32xf32>, vector<32x256xf32>, vector<8x256xf32> -> vector<8x256xf32>
    %23 = arith.mulf %22, %7 : vector<8x256xf32>
    %c0_17 = arith.constant 0 : index
    %c0_18 = arith.constant 0 : index
    %24 = vector.load %arg6[%c0_17, %c0_18] : memref<256x32xf32, #tpu.memory_space<vmem>>, vector<256x32xf32>
    %cst_19 = arith.constant dense<0.000000e+00> : vector<8x32xf32>
    %25 = tpu.matmul %23, %24, %cst_19 {dimension_numbers = #tpu.dot_dimension_numbers<[1], [0], [0], [1], [0, 0, 1, 1], [], []>} : vector<8x256xf32>, vector<256x32xf32>, vector<8x32xf32> -> vector<8x32xf32>
    %26 = arith.mulf %25, %15 : vector<8x32xf32>
    %27 = arith.addf %26, %17 : vector<8x32xf32>
    %cst_20 = arith.constant dense<0xFF800000> : vector<8xf32>
    %28 = vector.multi_reduction <maximumf>, %27, %cst_20 [1] : vector<8x32xf32> to vector<8xf32>
    %29 = vector.shape_cast %28 : vector<8xf32> to vector<8x1xf32>
    %30 = vector.broadcast %29 : vector<8x1xf32> to vector<8x32xf32>
    %31 = arith.subf %27, %30 : vector<8x32xf32>
    %32 = math.exp %31 : vector<8x32xf32>
    %c0_21 = arith.constant 0 : index
    %c0_22 = arith.constant 0 : index
    %33 = vector.load %arg7[%c0_21, %c0_22] : memref<32x32xf32, #tpu.memory_space<vmem>>, vector<32x32xf32>
    %cst_23 = arith.constant dense<0.000000e+00> : vector<8x32xf32>
    %34 = tpu.matmul %32, %33, %cst_23 {dimension_numbers = #tpu.dot_dimension_numbers<[1], [0], [0], [1], [0, 0, 1, 1], [], []>} : vector<8x32xf32>, vector<32x32xf32>, vector<8x32xf32> -> vector<8x32xf32>
    %cst_24 = arith.constant 1.000000e-30 : f32
    %35 = vector.broadcast %cst_24 : f32 to vector<8x32xf32>
    %36 = arith.addf %34, %35 : vector<8x32xf32>
    %37 = tpu.reciprocal %36 {approx = true} : vector<8x32xf32> -> vector<8x32xf32>
    %38 = arith.mulf %32, %37 : vector<8x32xf32>
    %c0_25 = arith.constant 0 : index
    %c0_26 = arith.constant 0 : index
    %39 = vector.load %arg9[%c0_25, %c0_26] : memref<32x256xf32, #tpu.memory_space<vmem>>, vector<32x256xf32>
    %cst_27 = arith.constant dense<0.000000e+00> : vector<8x256xf32>
    %40 = tpu.matmul %38, %39, %cst_27 {dimension_numbers = #tpu.dot_dimension_numbers<[1], [0], [0], [1], [0, 0, 1, 1], [], []>} : vector<8x32xf32>, vector<32x256xf32>, vector<8x256xf32> -> vector<8x256xf32>
    %41 = arith.mulf %40, %8 : vector<8x256xf32>
    %c0_28 = arith.constant 0 : index
    %c0_29 = arith.constant 0 : index
    %42 = vector.load %arg10[%c0_28, %c0_29] : memref<256x32xf32, #tpu.memory_space<vmem>>, vector<256x32xf32>
    %cst_30 = arith.constant dense<0.000000e+00> : vector<8x32xf32>
    %43 = tpu.matmul %41, %42, %cst_30 {dimension_numbers = #tpu.dot_dimension_numbers<[1], [0], [0], [1], [0, 0, 1, 1], [], []>} : vector<8x256xf32>, vector<256x32xf32>, vector<8x32xf32> -> vector<8x32xf32>
    %c0_31 = arith.constant 0 : index
    %c0_32 = arith.constant 0 : index
    %44 = vector.load %arg11[%c0_31, %c0_32] : memref<1x32xf32, #tpu.memory_space<vmem>>, vector<1x32xf32>
    %45 = vector.broadcast %44 : vector<1x32xf32> to vector<8x32xf32>
    %46 = arith.addf %43, %45 : vector<8x32xf32>
    %47 = arith.addf %46, %20 : vector<8x32xf32>
    %48 = vector.extract_strided_slice %9 {offsets = [0, 0], sizes = [8, 1], strides = [1, 1]} : vector<8x8xf32> to vector<8x1xf32>
    %cst_33 = arith.constant 1.000000e+00 : f32
    %49 = vector.broadcast %cst_33 : f32 to vector<8x1xf32>
    %50 = arith.subf %49, %48 : vector<8x1xf32>
    %51 = vector.broadcast %50 : vector<8x1xf32> to vector<8x32xf32>
    %52 = arith.mulf %47, %51 : vector<8x32xf32>
    %53 = arith.addf %18, %52 : vector<8x32xf32>
    %54 = vector.extract_strided_slice %6 {offsets = [0, 32], sizes = [8, 32], strides = [1, 1]} : vector<8x256xf32> to vector<8x32xf32>
    %55 = vector.extract_strided_slice %0 {offsets = [0, 32], sizes = [8, 32], strides = [1, 1]} : vector<8x256xf32> to vector<8x32xf32>
    %c0_34 = arith.constant 0 : index
    %c0_35 = arith.constant 0 : index
    %56 = vector.load %arg5[%c0_34, %c0_35] : memref<32x256xf32, #tpu.memory_space<vmem>>, vector<32x256xf32>
    %cst_36 = arith.constant dense<0.000000e+00> : vector<8x256xf32>
    %57 = tpu.matmul %54, %56, %cst_36 {dimension_numbers = #tpu.dot_dimension_numbers<[1], [0], [0], [1], [0, 0, 1, 1], [], []>} : vector<8x32xf32>, vector<32x256xf32>, vector<8x256xf32> -> vector<8x256xf32>
    %58 = arith.mulf %57, %7 : vector<8x256xf32>
    %c0_37 = arith.constant 0 : index
    %c0_38 = arith.constant 0 : index
    %59 = vector.load %arg6[%c0_37, %c0_38] : memref<256x32xf32, #tpu.memory_space<vmem>>, vector<256x32xf32>
    %cst_39 = arith.constant dense<0.000000e+00> : vector<8x32xf32>
    %60 = tpu.matmul %58, %59, %cst_39 {dimension_numbers = #tpu.dot_dimension_numbers<[1], [0], [0], [1], [0, 0, 1, 1], [], []>} : vector<8x256xf32>, vector<256x32xf32>, vector<8x32xf32> -> vector<8x32xf32>
    %61 = arith.mulf %60, %15 : vector<8x32xf32>
    %62 = arith.addf %61, %17 : vector<8x32xf32>
    %cst_40 = arith.constant dense<0xFF800000> : vector<8xf32>
    %63 = vector.multi_reduction <maximumf>, %62, %cst_40 [1] : vector<8x32xf32> to vector<8xf32>
    %64 = vector.shape_cast %63 : vector<8xf32> to vector<8x1xf32>
    %65 = vector.broadcast %64 : vector<8x1xf32> to vector<8x32xf32>
    %66 = arith.subf %62, %65 : vector<8x32xf32>
    %67 = math.exp %66 : vector<8x32xf32>
    %c0_41 = arith.constant 0 : index
    %c0_42 = arith.constant 0 : index
    %68 = vector.load %arg7[%c0_41, %c0_42] : memref<32x32xf32, #tpu.memory_space<vmem>>, vector<32x32xf32>
    %cst_43 = arith.constant dense<0.000000e+00> : vector<8x32xf32>
    %69 = tpu.matmul %67, %68, %cst_43 {dimension_numbers = #tpu.dot_dimension_numbers<[1], [0], [0], [1], [0, 0, 1, 1], [], []>} : vector<8x32xf32>, vector<32x32xf32>, vector<8x32xf32> -> vector<8x32xf32>
    %cst_44 = arith.constant 1.000000e-30 : f32
    %70 = vector.broadcast %cst_44 : f32 to vector<8x32xf32>
    %71 = arith.addf %69, %70 : vector<8x32xf32>
    %72 = tpu.reciprocal %71 {approx = true} : vector<8x32xf32> -> vector<8x32xf32>
    %73 = arith.mulf %67, %72 : vector<8x32xf32>
    %c0_45 = arith.constant 0 : index
    %c0_46 = arith.constant 0 : index
    %74 = vector.load %arg9[%c0_45, %c0_46] : memref<32x256xf32, #tpu.memory_space<vmem>>, vector<32x256xf32>
    %cst_47 = arith.constant dense<0.000000e+00> : vector<8x256xf32>
    %75 = tpu.matmul %73, %74, %cst_47 {dimension_numbers = #tpu.dot_dimension_numbers<[1], [0], [0], [1], [0, 0, 1, 1], [], []>} : vector<8x32xf32>, vector<32x256xf32>, vector<8x256xf32> -> vector<8x256xf32>
    %76 = arith.mulf %75, %8 : vector<8x256xf32>
    %c0_48 = arith.constant 0 : index
    %c0_49 = arith.constant 0 : index
    %77 = vector.load %arg10[%c0_48, %c0_49] : memref<256x32xf32, #tpu.memory_space<vmem>>, vector<256x32xf32>
    %cst_50 = arith.constant dense<0.000000e+00> : vector<8x32xf32>
    %78 = tpu.matmul %76, %77, %cst_50 {dimension_numbers = #tpu.dot_dimension_numbers<[1], [0], [0], [1], [0, 0, 1, 1], [], []>} : vector<8x256xf32>, vector<256x32xf32>, vector<8x32xf32> -> vector<8x32xf32>
    %c0_51 = arith.constant 0 : index
    %c0_52 = arith.constant 0 : index
    %79 = vector.load %arg11[%c0_51, %c0_52] : memref<1x32xf32, #tpu.memory_space<vmem>>, vector<1x32xf32>
    %80 = vector.broadcast %79 : vector<1x32xf32> to vector<8x32xf32>
    %81 = arith.addf %78, %80 : vector<8x32xf32>
    %82 = arith.addf %81, %55 : vector<8x32xf32>
    %83 = vector.extract_strided_slice %9 {offsets = [0, 1], sizes = [8, 1], strides = [1, 1]} : vector<8x8xf32> to vector<8x1xf32>
    %cst_53 = arith.constant 1.000000e+00 : f32
    %84 = vector.broadcast %cst_53 : f32 to vector<8x1xf32>
    %85 = arith.subf %84, %83 : vector<8x1xf32>
    %86 = vector.broadcast %85 : vector<8x1xf32> to vector<8x32xf32>
    %87 = arith.mulf %82, %86 : vector<8x32xf32>
    %88 = arith.addf %53, %87 : vector<8x32xf32>
    %89 = vector.extract_strided_slice %6 {offsets = [0, 64], sizes = [8, 32], strides = [1, 1]} : vector<8x256xf32> to vector<8x32xf32>
    %90 = vector.extract_strided_slice %0 {offsets = [0, 64], sizes = [8, 32], strides = [1, 1]} : vector<8x256xf32> to vector<8x32xf32>
    %c0_54 = arith.constant 0 : index
    %c0_55 = arith.constant 0 : index
    %91 = vector.load %arg5[%c0_54, %c0_55] : memref<32x256xf32, #tpu.memory_space<vmem>>, vector<32x256xf32>
    %cst_56 = arith.constant dense<0.000000e+00> : vector<8x256xf32>
    %92 = tpu.matmul %89, %91, %cst_56 {dimension_numbers = #tpu.dot_dimension_numbers<[1], [0], [0], [1], [0, 0, 1, 1], [], []>} : vector<8x32xf32>, vector<32x256xf32>, vector<8x256xf32> -> vector<8x256xf32>
    %93 = arith.mulf %92, %7 : vector<8x256xf32>
    %c0_57 = arith.constant 0 : index
    %c0_58 = arith.constant 0 : index
    %94 = vector.load %arg6[%c0_57, %c0_58] : memref<256x32xf32, #tpu.memory_space<vmem>>, vector<256x32xf32>
    %cst_59 = arith.constant dense<0.000000e+00> : vector<8x32xf32>
    %95 = tpu.matmul %93, %94, %cst_59 {dimension_numbers = #tpu.dot_dimension_numbers<[1], [0], [0], [1], [0, 0, 1, 1], [], []>} : vector<8x256xf32>, vector<256x32xf32>, vector<8x32xf32> -> vector<8x32xf32>
    %96 = arith.mulf %95, %15 : vector<8x32xf32>
    %97 = arith.addf %96, %17 : vector<8x32xf32>
    %cst_60 = arith.constant dense<0xFF800000> : vector<8xf32>
    %98 = vector.multi_reduction <maximumf>, %97, %cst_60 [1] : vector<8x32xf32> to vector<8xf32>
    %99 = vector.shape_cast %98 : vector<8xf32> to vector<8x1xf32>
    %100 = vector.broadcast %99 : vector<8x1xf32> to vector<8x32xf32>
    %101 = arith.subf %97, %100 : vector<8x32xf32>
    %102 = math.exp %101 : vector<8x32xf32>
    %c0_61 = arith.constant 0 : index
    %c0_62 = arith.constant 0 : index
    %103 = vector.load %arg7[%c0_61, %c0_62] : memref<32x32xf32, #tpu.memory_space<vmem>>, vector<32x32xf32>
    %cst_63 = arith.constant dense<0.000000e+00> : vector<8x32xf32>
    %104 = tpu.matmul %102, %103, %cst_63 {dimension_numbers = #tpu.dot_dimension_numbers<[1], [0], [0], [1], [0, 0, 1, 1], [], []>} : vector<8x32xf32>, vector<32x32xf32>, vector<8x32xf32> -> vector<8x32xf32>
    %cst_64 = arith.constant 1.000000e-30 : f32
    %105 = vector.broadcast %cst_64 : f32 to vector<8x32xf32>
    %106 = arith.addf %104, %105 : vector<8x32xf32>
    %107 = tpu.reciprocal %106 {approx = true} : vector<8x32xf32> -> vector<8x32xf32>
    %108 = arith.mulf %102, %107 : vector<8x32xf32>
    %c0_65 = arith.constant 0 : index
    %c0_66 = arith.constant 0 : index
    %109 = vector.load %arg9[%c0_65, %c0_66] : memref<32x256xf32, #tpu.memory_space<vmem>>, vector<32x256xf32>
    %cst_67 = arith.constant dense<0.000000e+00> : vector<8x256xf32>
    %110 = tpu.matmul %108, %109, %cst_67 {dimension_numbers = #tpu.dot_dimension_numbers<[1], [0], [0], [1], [0, 0, 1, 1], [], []>} : vector<8x32xf32>, vector<32x256xf32>, vector<8x256xf32> -> vector<8x256xf32>
    %111 = arith.mulf %110, %8 : vector<8x256xf32>
    %c0_68 = arith.constant 0 : index
    %c0_69 = arith.constant 0 : index
    %112 = vector.load %arg10[%c0_68, %c0_69] : memref<256x32xf32, #tpu.memory_space<vmem>>, vector<256x32xf32>
    %cst_70 = arith.constant dense<0.000000e+00> : vector<8x32xf32>
    %113 = tpu.matmul %111, %112, %cst_70 {dimension_numbers = #tpu.dot_dimension_numbers<[1], [0], [0], [1], [0, 0, 1, 1], [], []>} : vector<8x256xf32>, vector<256x32xf32>, vector<8x32xf32> -> vector<8x32xf32>
    %c0_71 = arith.constant 0 : index
    %c0_72 = arith.constant 0 : index
    %114 = vector.load %arg11[%c0_71, %c0_72] : memref<1x32xf32, #tpu.memory_space<vmem>>, vector<1x32xf32>
    %115 = vector.broadcast %114 : vector<1x32xf32> to vector<8x32xf32>
    %116 = arith.addf %113, %115 : vector<8x32xf32>
    %117 = arith.addf %116, %90 : vector<8x32xf32>
    %118 = vector.extract_strided_slice %9 {offsets = [0, 2], sizes = [8, 1], strides = [1, 1]} : vector<8x8xf32> to vector<8x1xf32>
    %cst_73 = arith.constant 1.000000e+00 : f32
    %119 = vector.broadcast %cst_73 : f32 to vector<8x1xf32>
    %120 = arith.subf %119, %118 : vector<8x1xf32>
    %121 = vector.broadcast %120 : vector<8x1xf32> to vector<8x32xf32>
    %122 = arith.mulf %117, %121 : vector<8x32xf32>
    %123 = arith.addf %88, %122 : vector<8x32xf32>
    %124 = vector.extract_strided_slice %6 {offsets = [0, 96], sizes = [8, 32], strides = [1, 1]} : vector<8x256xf32> to vector<8x32xf32>
    %125 = vector.extract_strided_slice %0 {offsets = [0, 96], sizes = [8, 32], strides = [1, 1]} : vector<8x256xf32> to vector<8x32xf32>
    %c0_74 = arith.constant 0 : index
    %c0_75 = arith.constant 0 : index
    %126 = vector.load %arg5[%c0_74, %c0_75] : memref<32x256xf32, #tpu.memory_space<vmem>>, vector<32x256xf32>
    %cst_76 = arith.constant dense<0.000000e+00> : vector<8x256xf32>
    %127 = tpu.matmul %124, %126, %cst_76 {dimension_numbers = #tpu.dot_dimension_numbers<[1], [0], [0], [1], [0, 0, 1, 1], [], []>} : vector<8x32xf32>, vector<32x256xf32>, vector<8x256xf32> -> vector<8x256xf32>
    %128 = arith.mulf %127, %7 : vector<8x256xf32>
    %c0_77 = arith.constant 0 : index
    %c0_78 = arith.constant 0 : index
    %129 = vector.load %arg6[%c0_77, %c0_78] : memref<256x32xf32, #tpu.memory_space<vmem>>, vector<256x32xf32>
    %cst_79 = arith.constant dense<0.000000e+00> : vector<8x32xf32>
    %130 = tpu.matmul %128, %129, %cst_79 {dimension_numbers = #tpu.dot_dimension_numbers<[1], [0], [0], [1], [0, 0, 1, 1], [], []>} : vector<8x256xf32>, vector<256x32xf32>, vector<8x32xf32> -> vector<8x32xf32>
    %131 = arith.mulf %130, %15 : vector<8x32xf32>
    %132 = arith.addf %131, %17 : vector<8x32xf32>
    %cst_80 = arith.constant dense<0xFF800000> : vector<8xf32>
    %133 = vector.multi_reduction <maximumf>, %132, %cst_80 [1] : vector<8x32xf32> to vector<8xf32>
    %134 = vector.shape_cast %133 : vector<8xf32> to vector<8x1xf32>
    %135 = vector.broadcast %134 : vector<8x1xf32> to vector<8x32xf32>
    %136 = arith.subf %132, %135 : vector<8x32xf32>
    %137 = math.exp %136 : vector<8x32xf32>
    %c0_81 = arith.constant 0 : index
    %c0_82 = arith.constant 0 : index
    %138 = vector.load %arg7[%c0_81, %c0_82] : memref<32x32xf32, #tpu.memory_space<vmem>>, vector<32x32xf32>
    %cst_83 = arith.constant dense<0.000000e+00> : vector<8x32xf32>
    %139 = tpu.matmul %137, %138, %cst_83 {dimension_numbers = #tpu.dot_dimension_numbers<[1], [0], [0], [1], [0, 0, 1, 1], [], []>} : vector<8x32xf32>, vector<32x32xf32>, vector<8x32xf32> -> vector<8x32xf32>
    %cst_84 = arith.constant 1.000000e-30 : f32
    %140 = vector.broadcast %cst_84 : f32 to vector<8x32xf32>
    %141 = arith.addf %139, %140 : vector<8x32xf32>
    %142 = tpu.reciprocal %141 {approx = true} : vector<8x32xf32> -> vector<8x32xf32>
    %143 = arith.mulf %137, %142 : vector<8x32xf32>
    %c0_85 = arith.constant 0 : index
    %c0_86 = arith.constant 0 : index
    %144 = vector.load %arg9[%c0_85, %c0_86] : memref<32x256xf32, #tpu.memory_space<vmem>>, vector<32x256xf32>
    %cst_87 = arith.constant dense<0.000000e+00> : vector<8x256xf32>
    %145 = tpu.matmul %143, %144, %cst_87 {dimension_numbers = #tpu.dot_dimension_numbers<[1], [0], [0], [1], [0, 0, 1, 1], [], []>} : vector<8x32xf32>, vector<32x256xf32>, vector<8x256xf32> -> vector<8x256xf32>
    %146 = arith.mulf %145, %8 : vector<8x256xf32>
    %c0_88 = arith.constant 0 : index
    %c0_89 = arith.constant 0 : index
    %147 = vector.load %arg10[%c0_88, %c0_89] : memref<256x32xf32, #tpu.memory_space<vmem>>, vector<256x32xf32>
    %cst_90 = arith.constant dense<0.000000e+00> : vector<8x32xf32>
    %148 = tpu.matmul %146, %147, %cst_90 {dimension_numbers = #tpu.dot_dimension_numbers<[1], [0], [0], [1], [0, 0, 1, 1], [], []>} : vector<8x256xf32>, vector<256x32xf32>, vector<8x32xf32> -> vector<8x32xf32>
    %c0_91 = arith.constant 0 : index
    %c0_92 = arith.constant 0 : index
    %149 = vector.load %arg11[%c0_91, %c0_92] : memref<1x32xf32, #tpu.memory_space<vmem>>, vector<1x32xf32>
    %150 = vector.broadcast %149 : vector<1x32xf32> to vector<8x32xf32>
    %151 = arith.addf %148, %150 : vector<8x32xf32>
    %152 = arith.addf %151, %125 : vector<8x32xf32>
    %153 = vector.extract_strided_slice %9 {offsets = [0, 3], sizes = [8, 1], strides = [1, 1]} : vector<8x8xf32> to vector<8x1xf32>
    %cst_93 = arith.constant 1.000000e+00 : f32
    %154 = vector.broadcast %cst_93 : f32 to vector<8x1xf32>
    %155 = arith.subf %154, %153 : vector<8x1xf32>
    %156 = vector.broadcast %155 : vector<8x1xf32> to vector<8x32xf32>
    %157 = arith.mulf %152, %156 : vector<8x32xf32>
    %158 = arith.addf %123, %157 : vector<8x32xf32>
    %159 = vector.extract_strided_slice %6 {offsets = [0, 128], sizes = [8, 32], strides = [1, 1]} : vector<8x256xf32> to vector<8x32xf32>
    %160 = vector.extract_strided_slice %0 {offsets = [0, 128], sizes = [8, 32], strides = [1, 1]} : vector<8x256xf32> to vector<8x32xf32>
    %c0_94 = arith.constant 0 : index
    %c0_95 = arith.constant 0 : index
    %161 = vector.load %arg5[%c0_94, %c0_95] : memref<32x256xf32, #tpu.memory_space<vmem>>, vector<32x256xf32>
    %cst_96 = arith.constant dense<0.000000e+00> : vector<8x256xf32>
    %162 = tpu.matmul %159, %161, %cst_96 {dimension_numbers = #tpu.dot_dimension_numbers<[1], [0], [0], [1], [0, 0, 1, 1], [], []>} : vector<8x32xf32>, vector<32x256xf32>, vector<8x256xf32> -> vector<8x256xf32>
    %163 = arith.mulf %162, %7 : vector<8x256xf32>
    %c0_97 = arith.constant 0 : index
    %c0_98 = arith.constant 0 : index
    %164 = vector.load %arg6[%c0_97, %c0_98] : memref<256x32xf32, #tpu.memory_space<vmem>>, vector<256x32xf32>
    %cst_99 = arith.constant dense<0.000000e+00> : vector<8x32xf32>
    %165 = tpu.matmul %163, %164, %cst_99 {dimension_numbers = #tpu.dot_dimension_numbers<[1], [0], [0], [1], [0, 0, 1, 1], [], []>} : vector<8x256xf32>, vector<256x32xf32>, vector<8x32xf32> -> vector<8x32xf32>
    %166 = arith.mulf %165, %15 : vector<8x32xf32>
    %167 = arith.addf %166, %17 : vector<8x32xf32>
    %cst_100 = arith.constant dense<0xFF800000> : vector<8xf32>
    %168 = vector.multi_reduction <maximumf>, %167, %cst_100 [1] : vector<8x32xf32> to vector<8xf32>
    %169 = vector.shape_cast %168 : vector<8xf32> to vector<8x1xf32>
    %170 = vector.broadcast %169 : vector<8x1xf32> to vector<8x32xf32>
    %171 = arith.subf %167, %170 : vector<8x32xf32>
    %172 = math.exp %171 : vector<8x32xf32>
    %c0_101 = arith.constant 0 : index
    %c0_102 = arith.constant 0 : index
    %173 = vector.load %arg7[%c0_101, %c0_102] : memref<32x32xf32, #tpu.memory_space<vmem>>, vector<32x32xf32>
    %cst_103 = arith.constant dense<0.000000e+00> : vector<8x32xf32>
    %174 = tpu.matmul %172, %173, %cst_103 {dimension_numbers = #tpu.dot_dimension_numbers<[1], [0], [0], [1], [0, 0, 1, 1], [], []>} : vector<8x32xf32>, vector<32x32xf32>, vector<8x32xf32> -> vector<8x32xf32>
    %cst_104 = arith.constant 1.000000e-30 : f32
    %175 = vector.broadcast %cst_104 : f32 to vector<8x32xf32>
    %176 = arith.addf %174, %175 : vector<8x32xf32>
    %177 = tpu.reciprocal %176 {approx = true} : vector<8x32xf32> -> vector<8x32xf32>
    %178 = arith.mulf %172, %177 : vector<8x32xf32>
    %c0_105 = arith.constant 0 : index
    %c0_106 = arith.constant 0 : index
    %179 = vector.load %arg9[%c0_105, %c0_106] : memref<32x256xf32, #tpu.memory_space<vmem>>, vector<32x256xf32>
    %cst_107 = arith.constant dense<0.000000e+00> : vector<8x256xf32>
    %180 = tpu.matmul %178, %179, %cst_107 {dimension_numbers = #tpu.dot_dimension_numbers<[1], [0], [0], [1], [0, 0, 1, 1], [], []>} : vector<8x32xf32>, vector<32x256xf32>, vector<8x256xf32> -> vector<8x256xf32>
    %181 = arith.mulf %180, %8 : vector<8x256xf32>
    %c0_108 = arith.constant 0 : index
    %c0_109 = arith.constant 0 : index
    %182 = vector.load %arg10[%c0_108, %c0_109] : memref<256x32xf32, #tpu.memory_space<vmem>>, vector<256x32xf32>
    %cst_110 = arith.constant dense<0.000000e+00> : vector<8x32xf32>
    %183 = tpu.matmul %181, %182, %cst_110 {dimension_numbers = #tpu.dot_dimension_numbers<[1], [0], [0], [1], [0, 0, 1, 1], [], []>} : vector<8x256xf32>, vector<256x32xf32>, vector<8x32xf32> -> vector<8x32xf32>
    %c0_111 = arith.constant 0 : index
    %c0_112 = arith.constant 0 : index
    %184 = vector.load %arg11[%c0_111, %c0_112] : memref<1x32xf32, #tpu.memory_space<vmem>>, vector<1x32xf32>
    %185 = vector.broadcast %184 : vector<1x32xf32> to vector<8x32xf32>
    %186 = arith.addf %183, %185 : vector<8x32xf32>
    %187 = arith.addf %186, %160 : vector<8x32xf32>
    %188 = vector.extract_strided_slice %9 {offsets = [0, 4], sizes = [8, 1], strides = [1, 1]} : vector<8x8xf32> to vector<8x1xf32>
    %cst_113 = arith.constant 1.000000e+00 : f32
    %189 = vector.broadcast %cst_113 : f32 to vector<8x1xf32>
    %190 = arith.subf %189, %188 : vector<8x1xf32>
    %191 = vector.broadcast %190 : vector<8x1xf32> to vector<8x32xf32>
    %192 = arith.mulf %187, %191 : vector<8x32xf32>
    %193 = arith.addf %158, %192 : vector<8x32xf32>
    %194 = vector.extract_strided_slice %6 {offsets = [0, 160], sizes = [8, 32], strides = [1, 1]} : vector<8x256xf32> to vector<8x32xf32>
    %195 = vector.extract_strided_slice %0 {offsets = [0, 160], sizes = [8, 32], strides = [1, 1]} : vector<8x256xf32> to vector<8x32xf32>
    %c0_114 = arith.constant 0 : index
    %c0_115 = arith.constant 0 : index
    %196 = vector.load %arg5[%c0_114, %c0_115] : memref<32x256xf32, #tpu.memory_space<vmem>>, vector<32x256xf32>
    %cst_116 = arith.constant dense<0.000000e+00> : vector<8x256xf32>
    %197 = tpu.matmul %194, %196, %cst_116 {dimension_numbers = #tpu.dot_dimension_numbers<[1], [0], [0], [1], [0, 0, 1, 1], [], []>} : vector<8x32xf32>, vector<32x256xf32>, vector<8x256xf32> -> vector<8x256xf32>
    %198 = arith.mulf %197, %7 : vector<8x256xf32>
    %c0_117 = arith.constant 0 : index
    %c0_118 = arith.constant 0 : index
    %199 = vector.load %arg6[%c0_117, %c0_118] : memref<256x32xf32, #tpu.memory_space<vmem>>, vector<256x32xf32>
    %cst_119 = arith.constant dense<0.000000e+00> : vector<8x32xf32>
    %200 = tpu.matmul %198, %199, %cst_119 {dimension_numbers = #tpu.dot_dimension_numbers<[1], [0], [0], [1], [0, 0, 1, 1], [], []>} : vector<8x256xf32>, vector<256x32xf32>, vector<8x32xf32> -> vector<8x32xf32>
    %201 = arith.mulf %200, %15 : vector<8x32xf32>
    %202 = arith.addf %201, %17 : vector<8x32xf32>
    %cst_120 = arith.constant dense<0xFF800000> : vector<8xf32>
    %203 = vector.multi_reduction <maximumf>, %202, %cst_120 [1] : vector<8x32xf32> to vector<8xf32>
    %204 = vector.shape_cast %203 : vector<8xf32> to vector<8x1xf32>
    %205 = vector.broadcast %204 : vector<8x1xf32> to vector<8x32xf32>
    %206 = arith.subf %202, %205 : vector<8x32xf32>
    %207 = math.exp %206 : vector<8x32xf32>
    %c0_121 = arith.constant 0 : index
    %c0_122 = arith.constant 0 : index
    %208 = vector.load %arg7[%c0_121, %c0_122] : memref<32x32xf32, #tpu.memory_space<vmem>>, vector<32x32xf32>
    %cst_123 = arith.constant dense<0.000000e+00> : vector<8x32xf32>
    %209 = tpu.matmul %207, %208, %cst_123 {dimension_numbers = #tpu.dot_dimension_numbers<[1], [0], [0], [1], [0, 0, 1, 1], [], []>} : vector<8x32xf32>, vector<32x32xf32>, vector<8x32xf32> -> vector<8x32xf32>
    %cst_124 = arith.constant 1.000000e-30 : f32
    %210 = vector.broadcast %cst_124 : f32 to vector<8x32xf32>
    %211 = arith.addf %209, %210 : vector<8x32xf32>
    %212 = tpu.reciprocal %211 {approx = true} : vector<8x32xf32> -> vector<8x32xf32>
    %213 = arith.mulf %207, %212 : vector<8x32xf32>
    %c0_125 = arith.constant 0 : index
    %c0_126 = arith.constant 0 : index
    %214 = vector.load %arg9[%c0_125, %c0_126] : memref<32x256xf32, #tpu.memory_space<vmem>>, vector<32x256xf32>
    %cst_127 = arith.constant dense<0.000000e+00> : vector<8x256xf32>
    %215 = tpu.matmul %213, %214, %cst_127 {dimension_numbers = #tpu.dot_dimension_numbers<[1], [0], [0], [1], [0, 0, 1, 1], [], []>} : vector<8x32xf32>, vector<32x256xf32>, vector<8x256xf32> -> vector<8x256xf32>
    %216 = arith.mulf %215, %8 : vector<8x256xf32>
    %c0_128 = arith.constant 0 : index
    %c0_129 = arith.constant 0 : index
    %217 = vector.load %arg10[%c0_128, %c0_129] : memref<256x32xf32, #tpu.memory_space<vmem>>, vector<256x32xf32>
    %cst_130 = arith.constant dense<0.000000e+00> : vector<8x32xf32>
    %218 = tpu.matmul %216, %217, %cst_130 {dimension_numbers = #tpu.dot_dimension_numbers<[1], [0], [0], [1], [0, 0, 1, 1], [], []>} : vector<8x256xf32>, vector<256x32xf32>, vector<8x32xf32> -> vector<8x32xf32>
    %c0_131 = arith.constant 0 : index
    %c0_132 = arith.constant 0 : index
    %219 = vector.load %arg11[%c0_131, %c0_132] : memref<1x32xf32, #tpu.memory_space<vmem>>, vector<1x32xf32>
    %220 = vector.broadcast %219 : vector<1x32xf32> to vector<8x32xf32>
    %221 = arith.addf %218, %220 : vector<8x32xf32>
    %222 = arith.addf %221, %195 : vector<8x32xf32>
    %223 = vector.extract_strided_slice %9 {offsets = [0, 5], sizes = [8, 1], strides = [1, 1]} : vector<8x8xf32> to vector<8x1xf32>
    %cst_133 = arith.constant 1.000000e+00 : f32
    %224 = vector.broadcast %cst_133 : f32 to vector<8x1xf32>
    %225 = arith.subf %224, %223 : vector<8x1xf32>
    %226 = vector.broadcast %225 : vector<8x1xf32> to vector<8x32xf32>
    %227 = arith.mulf %222, %226 : vector<8x32xf32>
    %228 = arith.addf %193, %227 : vector<8x32xf32>
    %229 = vector.extract_strided_slice %6 {offsets = [0, 192], sizes = [8, 32], strides = [1, 1]} : vector<8x256xf32> to vector<8x32xf32>
    %230 = vector.extract_strided_slice %0 {offsets = [0, 192], sizes = [8, 32], strides = [1, 1]} : vector<8x256xf32> to vector<8x32xf32>
    %c0_134 = arith.constant 0 : index
    %c0_135 = arith.constant 0 : index
    %231 = vector.load %arg5[%c0_134, %c0_135] : memref<32x256xf32, #tpu.memory_space<vmem>>, vector<32x256xf32>
    %cst_136 = arith.constant dense<0.000000e+00> : vector<8x256xf32>
    %232 = tpu.matmul %229, %231, %cst_136 {dimension_numbers = #tpu.dot_dimension_numbers<[1], [0], [0], [1], [0, 0, 1, 1], [], []>} : vector<8x32xf32>, vector<32x256xf32>, vector<8x256xf32> -> vector<8x256xf32>
    %233 = arith.mulf %232, %7 : vector<8x256xf32>
    %c0_137 = arith.constant 0 : index
    %c0_138 = arith.constant 0 : index
    %234 = vector.load %arg6[%c0_137, %c0_138] : memref<256x32xf32, #tpu.memory_space<vmem>>, vector<256x32xf32>
    %cst_139 = arith.constant dense<0.000000e+00> : vector<8x32xf32>
    %235 = tpu.matmul %233, %234, %cst_139 {dimension_numbers = #tpu.dot_dimension_numbers<[1], [0], [0], [1], [0, 0, 1, 1], [], []>} : vector<8x256xf32>, vector<256x32xf32>, vector<8x32xf32> -> vector<8x32xf32>
    %236 = arith.mulf %235, %15 : vector<8x32xf32>
    %237 = arith.addf %236, %17 : vector<8x32xf32>
    %cst_140 = arith.constant dense<0xFF800000> : vector<8xf32>
    %238 = vector.multi_reduction <maximumf>, %237, %cst_140 [1] : vector<8x32xf32> to vector<8xf32>
    %239 = vector.shape_cast %238 : vector<8xf32> to vector<8x1xf32>
    %240 = vector.broadcast %239 : vector<8x1xf32> to vector<8x32xf32>
    %241 = arith.subf %237, %240 : vector<8x32xf32>
    %242 = math.exp %241 : vector<8x32xf32>
    %c0_141 = arith.constant 0 : index
    %c0_142 = arith.constant 0 : index
    %243 = vector.load %arg7[%c0_141, %c0_142] : memref<32x32xf32, #tpu.memory_space<vmem>>, vector<32x32xf32>
    %cst_143 = arith.constant dense<0.000000e+00> : vector<8x32xf32>
    %244 = tpu.matmul %242, %243, %cst_143 {dimension_numbers = #tpu.dot_dimension_numbers<[1], [0], [0], [1], [0, 0, 1, 1], [], []>} : vector<8x32xf32>, vector<32x32xf32>, vector<8x32xf32> -> vector<8x32xf32>
    %cst_144 = arith.constant 1.000000e-30 : f32
    %245 = vector.broadcast %cst_144 : f32 to vector<8x32xf32>
    %246 = arith.addf %244, %245 : vector<8x32xf32>
    %247 = tpu.reciprocal %246 {approx = true} : vector<8x32xf32> -> vector<8x32xf32>
    %248 = arith.mulf %242, %247 : vector<8x32xf32>
    %c0_145 = arith.constant 0 : index
    %c0_146 = arith.constant 0 : index
    %249 = vector.load %arg9[%c0_145, %c0_146] : memref<32x256xf32, #tpu.memory_space<vmem>>, vector<32x256xf32>
    %cst_147 = arith.constant dense<0.000000e+00> : vector<8x256xf32>
    %250 = tpu.matmul %248, %249, %cst_147 {dimension_numbers = #tpu.dot_dimension_numbers<[1], [0], [0], [1], [0, 0, 1, 1], [], []>} : vector<8x32xf32>, vector<32x256xf32>, vector<8x256xf32> -> vector<8x256xf32>
    %251 = arith.mulf %250, %8 : vector<8x256xf32>
    %c0_148 = arith.constant 0 : index
    %c0_149 = arith.constant 0 : index
    %252 = vector.load %arg10[%c0_148, %c0_149] : memref<256x32xf32, #tpu.memory_space<vmem>>, vector<256x32xf32>
    %cst_150 = arith.constant dense<0.000000e+00> : vector<8x32xf32>
    %253 = tpu.matmul %251, %252, %cst_150 {dimension_numbers = #tpu.dot_dimension_numbers<[1], [0], [0], [1], [0, 0, 1, 1], [], []>} : vector<8x256xf32>, vector<256x32xf32>, vector<8x32xf32> -> vector<8x32xf32>
    %c0_151 = arith.constant 0 : index
    %c0_152 = arith.constant 0 : index
    %254 = vector.load %arg11[%c0_151, %c0_152] : memref<1x32xf32, #tpu.memory_space<vmem>>, vector<1x32xf32>
    %255 = vector.broadcast %254 : vector<1x32xf32> to vector<8x32xf32>
    %256 = arith.addf %253, %255 : vector<8x32xf32>
    %257 = arith.addf %256, %230 : vector<8x32xf32>
    %258 = vector.extract_strided_slice %9 {offsets = [0, 6], sizes = [8, 1], strides = [1, 1]} : vector<8x8xf32> to vector<8x1xf32>
    %cst_153 = arith.constant 1.000000e+00 : f32
    %259 = vector.broadcast %cst_153 : f32 to vector<8x1xf32>
    %260 = arith.subf %259, %258 : vector<8x1xf32>
    %261 = vector.broadcast %260 : vector<8x1xf32> to vector<8x32xf32>
    %262 = arith.mulf %257, %261 : vector<8x32xf32>
    %263 = arith.addf %228, %262 : vector<8x32xf32>
    %264 = vector.extract_strided_slice %6 {offsets = [0, 224], sizes = [8, 32], strides = [1, 1]} : vector<8x256xf32> to vector<8x32xf32>
    %265 = vector.extract_strided_slice %0 {offsets = [0, 224], sizes = [8, 32], strides = [1, 1]} : vector<8x256xf32> to vector<8x32xf32>
    %c0_154 = arith.constant 0 : index
    %c0_155 = arith.constant 0 : index
    %266 = vector.load %arg5[%c0_154, %c0_155] : memref<32x256xf32, #tpu.memory_space<vmem>>, vector<32x256xf32>
    %cst_156 = arith.constant dense<0.000000e+00> : vector<8x256xf32>
    %267 = tpu.matmul %264, %266, %cst_156 {dimension_numbers = #tpu.dot_dimension_numbers<[1], [0], [0], [1], [0, 0, 1, 1], [], []>} : vector<8x32xf32>, vector<32x256xf32>, vector<8x256xf32> -> vector<8x256xf32>
    %268 = arith.mulf %267, %7 : vector<8x256xf32>
    %c0_157 = arith.constant 0 : index
    %c0_158 = arith.constant 0 : index
    %269 = vector.load %arg6[%c0_157, %c0_158] : memref<256x32xf32, #tpu.memory_space<vmem>>, vector<256x32xf32>
    %cst_159 = arith.constant dense<0.000000e+00> : vector<8x32xf32>
    %270 = tpu.matmul %268, %269, %cst_159 {dimension_numbers = #tpu.dot_dimension_numbers<[1], [0], [0], [1], [0, 0, 1, 1], [], []>} : vector<8x256xf32>, vector<256x32xf32>, vector<8x32xf32> -> vector<8x32xf32>
    %271 = arith.mulf %270, %15 : vector<8x32xf32>
    %272 = arith.addf %271, %17 : vector<8x32xf32>
    %cst_160 = arith.constant dense<0xFF800000> : vector<8xf32>
    %273 = vector.multi_reduction <maximumf>, %272, %cst_160 [1] : vector<8x32xf32> to vector<8xf32>
    %274 = vector.shape_cast %273 : vector<8xf32> to vector<8x1xf32>
    %275 = vector.broadcast %274 : vector<8x1xf32> to vector<8x32xf32>
    %276 = arith.subf %272, %275 : vector<8x32xf32>
    %277 = math.exp %276 : vector<8x32xf32>
    %c0_161 = arith.constant 0 : index
    %c0_162 = arith.constant 0 : index
    %278 = vector.load %arg7[%c0_161, %c0_162] : memref<32x32xf32, #tpu.memory_space<vmem>>, vector<32x32xf32>
    %cst_163 = arith.constant dense<0.000000e+00> : vector<8x32xf32>
    %279 = tpu.matmul %277, %278, %cst_163 {dimension_numbers = #tpu.dot_dimension_numbers<[1], [0], [0], [1], [0, 0, 1, 1], [], []>} : vector<8x32xf32>, vector<32x32xf32>, vector<8x32xf32> -> vector<8x32xf32>
    %cst_164 = arith.constant 1.000000e-30 : f32
    %280 = vector.broadcast %cst_164 : f32 to vector<8x32xf32>
    %281 = arith.addf %279, %280 : vector<8x32xf32>
    %282 = tpu.reciprocal %281 {approx = true} : vector<8x32xf32> -> vector<8x32xf32>
    %283 = arith.mulf %277, %282 : vector<8x32xf32>
    %c0_165 = arith.constant 0 : index
    %c0_166 = arith.constant 0 : index
    %284 = vector.load %arg9[%c0_165, %c0_166] : memref<32x256xf32, #tpu.memory_space<vmem>>, vector<32x256xf32>
    %cst_167 = arith.constant dense<0.000000e+00> : vector<8x256xf32>
    %285 = tpu.matmul %283, %284, %cst_167 {dimension_numbers = #tpu.dot_dimension_numbers<[1], [0], [0], [1], [0, 0, 1, 1], [], []>} : vector<8x32xf32>, vector<32x256xf32>, vector<8x256xf32> -> vector<8x256xf32>
    %286 = arith.mulf %285, %8 : vector<8x256xf32>
    %c0_168 = arith.constant 0 : index
    %c0_169 = arith.constant 0 : index
    %287 = vector.load %arg10[%c0_168, %c0_169] : memref<256x32xf32, #tpu.memory_space<vmem>>, vector<256x32xf32>
    %cst_170 = arith.constant dense<0.000000e+00> : vector<8x32xf32>
    %288 = tpu.matmul %286, %287, %cst_170 {dimension_numbers = #tpu.dot_dimension_numbers<[1], [0], [0], [1], [0, 0, 1, 1], [], []>} : vector<8x256xf32>, vector<256x32xf32>, vector<8x32xf32> -> vector<8x32xf32>
    %c0_171 = arith.constant 0 : index
    %c0_172 = arith.constant 0 : index
    %289 = vector.load %arg11[%c0_171, %c0_172] : memref<1x32xf32, #tpu.memory_space<vmem>>, vector<1x32xf32>
    %290 = vector.broadcast %289 : vector<1x32xf32> to vector<8x32xf32>
    %291 = arith.addf %288, %290 : vector<8x32xf32>
    %292 = arith.addf %291, %265 : vector<8x32xf32>
    %293 = vector.extract_strided_slice %9 {offsets = [0, 7], sizes = [8, 1], strides = [1, 1]} : vector<8x8xf32> to vector<8x1xf32>
    %cst_173 = arith.constant 1.000000e+00 : f32
    %294 = vector.broadcast %cst_173 : f32 to vector<8x1xf32>
    %295 = arith.subf %294, %293 : vector<8x1xf32>
    %296 = vector.broadcast %295 : vector<8x1xf32> to vector<8x32xf32>
    %297 = arith.mulf %292, %296 : vector<8x32xf32>
    %298 = arith.addf %263, %297 : vector<8x32xf32>
    %cst_174 = arith.constant 1.000000e+00 : f32
    %299 = vector.broadcast %cst_174 : f32 to vector<8x8xf32>
    %300 = arith.subf %299, %9 : vector<8x8xf32>
    %cst_175 = arith.constant dense<0.000000e+00> : vector<8xf32>
    %301 = vector.multi_reduction <add>, %300, %cst_175 [1] : vector<8x8xf32> to vector<8xf32>
    %302 = vector.shape_cast %301 : vector<8xf32> to vector<8x1xf32>
    %cst_176 = arith.constant 1.000000e-07 : f32
    %303 = vector.broadcast %cst_176 : f32 to vector<8x1xf32>
    %304 = arith.addf %302, %303 : vector<8x1xf32>
    %305 = vector.broadcast %304 : vector<8x1xf32> to vector<8x32xf32>
    %306 = arith.divf %298, %305 : vector<8x32xf32>
    %c0_177 = arith.constant 0 : index
    %c0_178 = arith.constant 0 : index
    %307 = vector.load %arg12[%c0_177, %c0_178] : memref<8x32xf32, #tpu.memory_space<vmem>>, vector<8x32xf32>
    tpu.vector_store %arg12[%c0_177, %c0_178], %306 {strides = array<i32>} : memref<8x32xf32, #tpu.memory_space<vmem>>, vector<8x32xf32>,
    return
  }
  func.func @transform_0(%arg0: i32) -> (i32, i32) {
    %c0_i32 = arith.constant 0 : i32
    %c0_i32_0 = arith.constant 0 : i32
    return %arg0, %c0_i32 : i32, i32
  }
  func.func @transform_1(%arg0: i32) -> (i32, i32) {
    %c0_i32 = arith.constant 0 : i32
    %c0_i32_0 = arith.constant 0 : i32
    return %arg0, %c0_i32 : i32, i32
  }
  func.func @transform_2(%arg0: i32) -> (i32, i32) {
    %c0_i32 = arith.constant 0 : i32
    %c0_i32_0 = arith.constant 0 : i32
    %c0_i32_1 = arith.constant 0 : i32
    return %c0_i32, %c0_i32_0 : i32, i32
  }
  func.func @transform_3(%arg0: i32) -> (i32, i32) {
    %c0_i32 = arith.constant 0 : i32
    %c0_i32_0 = arith.constant 0 : i32
    %c0_i32_1 = arith.constant 0 : i32
    return %c0_i32, %c0_i32_0 : i32, i32
  }
  func.func @transform_4(%arg0: i32) -> (i32, i32) {
    %c0_i32 = arith.constant 0 : i32
    %c0_i32_0 = arith.constant 0 : i32
    %c0_i32_1 = arith.constant 0 : i32
    return %c0_i32, %c0_i32_0 : i32, i32
  }
  func.func @transform_5(%arg0: i32) -> (i32, i32) {
    %c0_i32 = arith.constant 0 : i32
    %c0_i32_0 = arith.constant 0 : i32
    %c0_i32_1 = arith.constant 0 : i32
    return %c0_i32, %c0_i32_0 : i32, i32
  }
  func.func @transform_6(%arg0: i32) -> (i32, i32) {
    %c0_i32 = arith.constant 0 : i32
    %c0_i32_0 = arith.constant 0 : i32
    %c0_i32_1 = arith.constant 0 : i32
    return %c0_i32, %c0_i32_0 : i32, i32
  }
  func.func @transform_7(%arg0: i32) -> (i32, i32) {
    %c0_i32 = arith.constant 0 : i32
    %c0_i32_0 = arith.constant 0 : i32
    %c0_i32_1 = arith.constant 0 : i32
    return %c0_i32, %c0_i32_0 : i32, i32
  }
  func.func @transform_8(%arg0: i32) -> (i32, i32) {
    %c0_i32 = arith.constant 0 : i32
    %c0_i32_0 = arith.constant 0 : i32
    %c0_i32_1 = arith.constant 0 : i32
    return %c0_i32, %c0_i32_0 : i32, i32
  }
  func.func @transform_9(%arg0: i32) -> (i32, i32) {
    %c0_i32 = arith.constant 0 : i32
    %c0_i32_0 = arith.constant 0 : i32
    %c0_i32_1 = arith.constant 0 : i32
    return %c0_i32, %c0_i32_0 : i32, i32
  }
  func.func @transform_10(%arg0: i32) -> (i32, i32) {
    %c0_i32 = arith.constant 0 : i32
    %c0_i32_0 = arith.constant 0 : i32
    %c0_i32_1 = arith.constant 0 : i32
    return %c0_i32, %c0_i32_0 : i32, i32
  }
  func.func @transform_11(%arg0: i32) -> (i32, i32) {
    %c0_i32 = arith.constant 0 : i32
    %c0_i32_0 = arith.constant 0 : i32
    return %arg0, %c0_i32 : i32, i32
  }
}

</mosaic_0001>

<bundles_post_ra>
// kernel: tpu_custom_call.1
= control target key start
LH: loop header
LB: loop body
LE: loop exit
PB: predicated region body
PF: predicated region fallthrough
CT: control target
= control target key end

     0   :  { %16 = vsyncpa [#allocation3], 0  ;;  %s6729_s0 = inlined_call_operand.vmem [shape: f32[8,256], index: 0, kind: input, shape index: {}]   ;;  %s6730_s1 = inlined_call_operand.vmem [shape: f32[8,8], index: 1, kind: input, shape index: {}]   ;;  %s6731_s2 = inlined_call_operand.hbm [shape: f32[256,768], index: 2, kind: input, shape index: {}]   ;;  %s6732_s3 = inlined_call_operand.vmem [shape: f32[1,768], index: 3, kind: input, shape index: {}]   ;;  %s6733_s4 = inlined_call_operand.vmem [shape: f32[32,256], index: 4, kind: input, shape index: {}]   ;;  %s6734_s5 = inlined_call_operand.vmem [shape: f32[256,32], index: 5, kind: input, shape index: {}]   ;;  %s6735_s6 = inlined_call_operand.vmem [shape: f32[32,32], index: 6, kind: input, shape index: {}]   ;;  %s6736_s7 = inlined_call_operand.vmem [shape: f32[8,32], index: 7, kind: input, shape index: {}]   ;;  %s6737_s8 = inlined_call_operand.vmem [shape: f32[32,256], index: 8, kind: input, shape index: {}]   ;;  %s6738_s9 = inlined_call_operand.vmem [shape: f32[256,32], index: 9, kind: input, shape index: {}]   ;;  %s6739_s10 = inlined_call_operand.vmem [shape: f32[1,32], index: 10, kind: input, shape index: {}]   ;;  %s6740_s11 = inlined_call_operand.hbm [shape: f32[8,32], index: 11, kind: output, shape index: {}]  }
   0x1   :  { %17 = vsyncpa [#allocation4], 0  ;;  %s4725_s17 = smov [#allocation2]  }
   0x2   :  { %s27_s18 = sshll.u32 %s4725_s17, 4  ;;  %s28_s18 = int_to_ptr.vmem [resolvable:$true] %s27_s18 }
   0x3   :  { %s4689_s19 = scalar_lea.vmem %s28_s18, 24576  ;;  %p4694_p1 = scmp.lt.s32.totalorder %s28_s18, %s28_s18 }
   0x4   :  { %p4690_p0 = scmp.ne.s32.totalorder %s28_s18, %s4689_s19  ;;  %p4695_p2 = scmp.lt.s32.totalorder %s4689_s19, %s4689_s19 }
   0x6   :  { %p4696_p3 = por %p4695_p2, %p4694_p1 }
   0x8   :  { %p4697_p4 = pnand %p4696_p3, %p4690_p0 }
   0xa   :  { %4700 = shalt.err (!%p4697_p4)
}
   0xb   :  { %s4726_s20 = smov 768   ;;  %s4727_s21 = smov 48  }
   0xc   :  { %33 = dma.hbm_to_vmem [thread:$0]  %s6731_s2, 24576, %s28_s18, [#allocation3], %s4726_s20, %s4726_s20, %s4727_s21  }
   0xd   :  { %4721 = dma.done.wait [#allocation3], 24576  }
   0xe   :  { %4722 = vsyncadd [#allocation3], 4294942720  ;;  %v146_v0 = vld [vmem:[#allocation2 + $0x2d8] sm:$0xff]  ;;  %v145_v1 = vld [vmem:[#allocation2 + $0x2d0] sm:$0xff]  ;;  %vm4729_vm0 = vmmov 0   ;;  %vm494_vm1 = vcmask 64512  }
   0xf   :  { %v140_v2 = vld [vmem:[#allocation2 + $0x2a8] sm:$0xff]  ;;  %279 = vmatprep.subr.mxu0 %v146_v0  ;;  %v139_v3 = vld [vmem:[#allocation2 + $0x2a0] sm:$0xff]  ;;  %v134_v4 = vld [vmem:[#allocation2 + $0x278] sm:$0xff]  ;;  %vm579_vm2 = vcmask 261120   ;;  %s4730_s17 = smov 96   ;;  %s4731_s18 = smov 32  }
  0x10   :  { %280 = vmatpush1.msra.mxu0 %v145_v1  ;;  %v133_v5 = vld [vmem:[#allocation2 + $0x270] sm:$0xff]  ;;  %v128_v6 = vld [vmem:[#allocation2 + $0x248] sm:$0xff]  ;;  %v127_v7 = vld [vmem:[#allocation2 + $0x240] sm:$0xff]  ;;  %s4732_s23 = smov 64  }
  0x11   :  { %281 = vmatprep.subr.mxu0 %v140_v2  ;;  %v122_v8 = vld [vmem:[#allocation2 + $0x218] sm:$0xff]  ;;  %v121_v9 = vld [vmem:[#allocation2 + $0x210] sm:$0xff]  ;;  %v116_v10 = vld [vmem:[#allocation2 + $0x1e8] sm:$0xff] }
  0x12   :  { %282 = vmatpush1.msra.mxu0 %v139_v3  ;;  %v115_v11 = vld [vmem:[#allocation2 + $0x1e0] sm:$0xff]  ;;  %v110_v12 = vld [vmem:[#allocation2 + $0x1b8] sm:$0xff]  ;;  %v109_v13 = vld [vmem:[#allocation2 + $0x1b0] sm:$0xff] }
  0x13   :  { %283 = vmatprep.subr.mxu0 %v134_v4  ;;  %v104_v14 = vld [vmem:[#allocation2 + $0x188] sm:$0xff]  ;;  %v103_v15 = vld [vmem:[#allocation2 + $0x180] sm:$0xff]  ;;  %v98_v16 = vld [vmem:[#allocation2 + $0x158] sm:$0xff] }
  0x14   :  { %284 = vmatpush1.msra.mxu0 %v133_v5  ;;  %v97_v17 = vld [vmem:[#allocation2 + $0x150] sm:$0xff]  ;;  %v92_v18 = vld [vmem:[#allocation2 + $0x128] sm:$0xff]  ;;  %v91_v19 = vld [vmem:[#allocation2 + $0x120] sm:$0xff] }
  0x15   :  { %285 = vmatprep.subr.mxu0 %v128_v6  ;;  %v86_v20 = vld [vmem:[#allocation2 + $0xf8] sm:$0xff]  ;;  %v85_v21 = vld [vmem:[#allocation2 + $0xf0] sm:$0xff]  ;;  %v80_v22 = vld [vmem:[#allocation2 + $0xc8] sm:$0xff] }
  0x16   :  { %286 = vmatpush1.msra.mxu0 %v127_v7  ;;  %v79_v23 = vld [vmem:[#allocation2 + $0xc0] sm:$0xff]  ;;  %v74_v24 = vld [vmem:[#allocation2 + $0x98] sm:$0xff]  ;;  %v4808_v25 = vld [vmem:[%s6729_s0 + $0x8] sm:$0xff] }
  0x17   :  { %287 = vmatprep.subr.mxu0 %v122_v8  ;;  %343 = vmatprep.mubr.f32.mxu0 %v4808_v25  ;;  %v148_v26 = vld [vmem:[#allocation2 + $0x2e8] sm:$0xff]  ;;  %v147_v27 = vld [vmem:[#allocation2 + $0x2e0] sm:$0xff]  ;;  %v142_v28 = vld [vmem:[#allocation2 + $0x2b8] sm:$0xff] }
  0x18   :  { %288 = vmatpush1.msra.mxu0 %v121_v9  ;;  %v73_v29 = vld [vmem:[#allocation2 + $0x90] sm:$0xff]  ;;  %350 = vmatprep.subr.mxu1 %v148_v26  ;;  %v68_v31 = vld [vmem:[#allocation2 + $0x68] sm:$0xff]  ;;  %v67_v33 = vld [vmem:[#allocation2 + $0x60] sm:$0xff] }
  0x19   :  { %289 = vmatprep.subr.mxu0 %v116_v10  ;;  %v141_v30 = vld [vmem:[#allocation2 + $0x2b0] sm:$0xff]  ;;  %351 = vmatpush1.msra.mxu1 %v147_v27  ;;  %v136_v32 = vld [vmem:[#allocation2 + $0x288] sm:$0xff]  ;;  %v135_v34 = vld [vmem:[#allocation2 + $0x280] sm:$0xff] }
  0x1a   :  { %290 = vmatpush1.msra.mxu0 %v115_v11  ;;  %352 = vmatprep.subr.mxu1 %v142_v28  ;;  %v62_v35 = vld [vmem:[#allocation2 + $0x38] sm:$0xff]  ;;  %v61_v37 = vld [vmem:[#allocation2 + $0x30] sm:$0xff]  ;;  %v56_v39 = vld [vmem:[#allocation2 + $0x8] sm:$0xff] }
  0x1b   :  { %291 = vmatprep.subr.mxu0 %v110_v12  ;;  %353 = vmatpush1.msra.mxu1 %v141_v30  ;;  %v130_v36 = vld [vmem:[#allocation2 + $0x258] sm:$0xff]  ;;  %v129_v38 = vld [vmem:[#allocation2 + $0x250] sm:$0xff]  ;;  %v124_v40 = vld [vmem:[#allocation2 + $0x228] sm:$0xff] }
  0x1c   :  { %292 = vmatpush1.msra.mxu0 %v109_v13  ;;  %354 = vmatprep.subr.mxu1 %v136_v32  ;;  %v55_v41 = vld [vmem:[#allocation2] sm:$0xff]  ;;  %v242_v43 = vld [vmem:[#allocation2 + $0x5d8] sm:$0xff]  ;;  %v241_v45 = vld [vmem:[#allocation2 + $0x5d0] sm:$0xff] }
  0x1d   :  { %293 = vmatprep.subr.mxu0 %v104_v14  ;;  %355 = vmatpush1.msra.mxu1 %v135_v34  ;;  %v123_v42 = vld [vmem:[#allocation2 + $0x220] sm:$0xff]  ;;  %v118_v44 = vld [vmem:[#allocation2 + $0x1f8] sm:$0xff]  ;;  %v117_v46 = vld [vmem:[#allocation2 + $0x1f0] sm:$0xff] }
  0x1e   :  { %294 = vmatpush1.msra.mxu0 %v103_v15  ;;  %356 = vmatprep.subr.mxu1 %v130_v36  ;;  %v236_v47 = vld [vmem:[#allocation2 + $0x5a8] sm:$0xff]  ;;  %v235_v49 = vld [vmem:[#allocation2 + $0x5a0] sm:$0xff]  ;;  %v230_v51 = vld [vmem:[#allocation2 + $0x578] sm:$0xff] }
  0x1f   :  { %295 = vmatprep.subr.mxu0 %v98_v16  ;;  %357 = vmatpush1.msra.mxu1 %v129_v38  ;;  %v112_v48 = vld [vmem:[#allocation2 + $0x1c8] sm:$0xff]  ;;  %v111_v50 = vld [vmem:[#allocation2 + $0x1c0] sm:$0xff]  ;;  %v106_v52 = vld [vmem:[#allocation2 + $0x198] sm:$0xff] }
  0x20   :  { %296 = vmatpush1.msra.mxu0 %v97_v17  ;;  %358 = vmatprep.subr.mxu1 %v124_v40  ;;  %v229_v53 = vld [vmem:[#allocation2 + $0x570] sm:$0xff]  ;;  %v224_v55 = vld [vmem:[#allocation2 + $0x548] sm:$0xff]  ;;  %v223_v57 = vld [vmem:[#allocation2 + $0x540] sm:$0xff] }
  0x21   :  { %297 = vmatprep.subr.mxu0 %v92_v18  ;;  %359 = vmatpush1.msra.mxu1 %v123_v42  ;;  %v105_v54 = vld [vmem:[#allocation2 + $0x190] sm:$0xff]  ;;  %v100_v56 = vld [vmem:[#allocation2 + $0x168] sm:$0xff]  ;;  %v99_v58 = vld [vmem:[#allocation2 + $0x160] sm:$0xff] }
  0x22   :  { %298 = vmatpush1.msra.mxu0 %v91_v19  ;;  %360 = vmatprep.subr.mxu1 %v118_v44  ;;  %v218_v59 = vld [vmem:[#allocation2 + $0x518] sm:$0xff]  ;;  %v217_v61 = vld [vmem:[#allocation2 + $0x510] sm:$0xff]  ;;  %v212_v63 = vld [vmem:[#allocation2 + $0x4e8] sm:$0xff] }
  0x23   :  { %299 = vmatprep.subr.mxu0 %v86_v20  ;;  %361 = vmatpush1.msra.mxu1 %v117_v46  ;;  %v94_v60 = vld [vmem:[#allocation2 + $0x138] sm:$0xff]  ;;  %v93_v62 = vld [vmem:[#allocation2 + $0x130] sm:$0xff]  ;;  %v88_v0 = vld [vmem:[#allocation2 + $0x108] sm:$0xff] }
  0x24   :  { %300 = vmatpush1.msra.mxu0 %v85_v21  ;;  %362 = vmatprep.subr.mxu1 %v112_v48  ;;  %v211_v1 = vld [vmem:[#allocation2 + $0x4e0] sm:$0xff]  ;;  %v206_v3 = vld [vmem:[#allocation2 + $0x4b8] sm:$0xff]  ;;  %v205_v5 = vld [vmem:[#allocation2 + $0x4b0] sm:$0xff] }
  0x25   :  { %301 = vmatprep.subr.mxu0 %v80_v22  ;;  %363 = vmatpush1.msra.mxu1 %v111_v50  ;;  %v87_v2 = vld [vmem:[#allocation2 + $0x100] sm:$0xff]  ;;  %v82_v4 = vld [vmem:[#allocation2 + $0xd8] sm:$0xff]  ;;  %v81_v6 = vld [vmem:[#allocation2 + $0xd0] sm:$0xff] }
  0x26   :  { %302 = vmatpush1.msra.mxu0 %v79_v23  ;;  %364 = vmatprep.subr.mxu1 %v106_v52  ;;  %v200_v7 = vld [vmem:[#allocation2 + $0x488] sm:$0xff]  ;;  %v199_v9 = vld [vmem:[#allocation2 + $0x480] sm:$0xff]  ;;  %v194_v11 = vld [vmem:[#allocation2 + $0x458] sm:$0xff] }
  0x27   :  { %303 = vmatprep.subr.mxu0 %v74_v24  ;;  %365 = vmatpush1.msra.mxu1 %v105_v54  ;;  %v76_v8 = vld [vmem:[#allocation2 + $0xa8] sm:$0xff]  ;;  %v75_v10 = vld [vmem:[#allocation2 + $0xa0] sm:$0xff]  ;;  %v70_v12 = vld [vmem:[#allocation2 + $0x78] sm:$0xff] }
  0x28   :  { %304 = vmatpush1.msra.mxu0 %v73_v29  ;;  %366 = vmatprep.subr.mxu1 %v100_v56  ;;  %v193_v13 = vld [vmem:[#allocation2 + $0x450] sm:$0xff]  ;;  %v188_v15 = vld [vmem:[#allocation2 + $0x428] sm:$0xff]  ;;  %v187_v17 = vld [vmem:[#allocation2 + $0x420] sm:$0xff] }
  0x29   :  { %305 = vmatprep.subr.mxu0 %v68_v31  ;;  %367 = vmatpush1.msra.mxu1 %v99_v58  ;;  %v69_v14 = vld [vmem:[#allocation2 + $0x70] sm:$0xff]  ;;  %v64_v16 = vld [vmem:[#allocation2 + $0x48] sm:$0xff]  ;;  %v63_v18 = vld [vmem:[#allocation2 + $0x40] sm:$0xff] }
  0x2a   :  { %306 = vmatpush1.msra.mxu0 %v67_v33  ;;  %368 = vmatprep.subr.mxu1 %v94_v60  ;;  %v182_v19 = vld [vmem:[#allocation2 + $0x3f8] sm:$0xff]  ;;  %v181_v21 = vld [vmem:[#allocation2 + $0x3f0] sm:$0xff]  ;;  %v176_v23 = vld [vmem:[#allocation2 + $0x3c8] sm:$0xff] }
  0x2b   :  { %307 = vmatprep.subr.mxu0 %v62_v35  ;;  %369 = vmatpush1.msra.mxu1 %v93_v62  ;;  %v58_v20 = vld [vmem:[#allocation2 + $0x18] sm:$0xff]  ;;  %v57_v22 = vld [vmem:[#allocation2 + $0x10] sm:$0xff]  ;;  %v244_v24 = vld [vmem:[#allocation2 + $0x5e8] sm:$0xff] }
  0x2c   :  { %308 = vmatpush1.msra.mxu0 %v61_v37  ;;  %370 = vmatprep.subr.mxu1 %v88_v0  ;;  %v175_v26 = vld [vmem:[#allocation2 + $0x3c0] sm:$0xff]  ;;  %v170_v28 = vld [vmem:[#allocation2 + $0x398] sm:$0xff]  ;;  %v169_v30 = vld [vmem:[#allocation2 + $0x390] sm:$0xff] }
  0x2d   :  { %309 = vmatprep.subr.mxu0 %v56_v39  ;;  %371 = vmatpush1.msra.mxu1 %v87_v2  ;;  %v243_v27 = vld [vmem:[#allocation2 + $0x5e0] sm:$0xff]  ;;  %v238_v29 = vld [vmem:[#allocation2 + $0x5b8] sm:$0xff]  ;;  %v237_v31 = vld [vmem:[#allocation2 + $0x5b0] sm:$0xff] }
  0x2e   :  { %310 = vmatpush1.msra.mxu0 %v55_v41  ;;  %372 = vmatprep.subr.mxu1 %v82_v4  ;;  %v164_v32 = vld [vmem:[#allocation2 + $0x368] sm:$0xff]  ;;  %v163_v34 = vld [vmem:[#allocation2 + $0x360] sm:$0xff]  ;;  %v158_v36 = vld [vmem:[#allocation2 + $0x338] sm:$0xff]  ;;  %v6741_v4 = vmov 0.0  }
  0x2f   :  { %311 = vmatprep.subr.mxu0 %v242_v43  ;;  %373 = vmatpush1.msra.mxu1 %v81_v6  ;;  %v232_v33 = vld [vmem:[#allocation2 + $0x588] sm:$0xff]  ;;  %v231_v35 = vld [vmem:[#allocation2 + $0x580] sm:$0xff]  ;;  %v226_v37 = vld [vmem:[#allocation2 + $0x558] sm:$0xff] }
  0x30   :  { %312 = vmatpush2.msra.mxu0 %v241_v45  ;;  %374 = vmatprep.subr.mxu1 %v76_v8  ;;  %v157_v38 = vld [vmem:[#allocation2 + $0x330] sm:$0xff]  ;;  %v152_v40 = vld [vmem:[#allocation2 + $0x308] sm:$0xff]  ;;  %v151_v42 = vld [vmem:[#allocation2 + $0x300] sm:$0xff] }
  0x31   :  { %313 = vmatprep.subr.mxu0 %v236_v47  ;;  %375 = vmatpush1.msra.mxu1 %v75_v10  ;;  %v225_v39 = vld [vmem:[#allocation2 + $0x550] sm:$0xff]  ;;  %v220_v41 = vld [vmem:[#allocation2 + $0x528] sm:$0xff]  ;;  %v219_v43 = vld [vmem:[#allocation2 + $0x520] sm:$0xff] }
  0x32   :  { %314 = vmatpush2.msra.mxu0 %v235_v49  ;;  %376 = vmatprep.subr.mxu1 %v70_v12  ;;  %v4814_v44 = vld [vmem:[%s6729_s0] sm:$0xff]  ;;  %v214_v45 = vld [vmem:[#allocation2 + $0x4f8] sm:$0xff]  ;;  %v213_v46 = vld [vmem:[#allocation2 + $0x4f0] sm:$0xff] }
  0x33   :  { %315 = vmatprep.subr.mxu0 %v230_v51  ;;  %377 = vmatpush1.msra.mxu1 %v69_v14  ;;  %v208_v47 = vld [vmem:[#allocation2 + $0x4c8] sm:$0xff]  ;;  %v207_v48 = vld [vmem:[#allocation2 + $0x4c0] sm:$0xff]  ;;  %v202_v49 = vld [vmem:[#allocation2 + $0x498] sm:$0xff]  ;;  %v249_v14 = vlaneseq }
  0x34   :  { %316 = vmatpush2.msra.mxu0 %v229_v53  ;;  %378 = vmatprep.subr.mxu1 %v64_v16  ;;  %v201_v50 = vld [vmem:[#allocation2 + $0x490] sm:$0xff]  ;;  %v196_v51 = vld [vmem:[#allocation2 + $0x468] sm:$0xff]  ;;  %v195_v52 = vld [vmem:[#allocation2 + $0x460] sm:$0xff] }
  0x35   :  { %317 = vmatprep.subr.mxu0 %v224_v55  ;;  %379 = vmatpush1.msra.mxu1 %v63_v18  ;;  %v190_v53 = vld [vmem:[#allocation2 + $0x438] sm:$0xff]  ;;  %v189_v54 = vld [vmem:[#allocation2 + $0x430] sm:$0xff]  ;;  %v184_v55 = vld [vmem:[#allocation2 + $0x408] sm:$0xff] }
  0x36   :  { %318 = vmatpush2.msra.mxu0 %v223_v57  ;;  %380 = vmatprep.subr.mxu1 %v58_v20  ;;  %v183_v56 = vld [vmem:[#allocation2 + $0x400] sm:$0xff]  ;;  %v178_v57 = vld [vmem:[#allocation2 + $0x3d8] sm:$0xff]  ;;  %v177_v58 = vld [vmem:[#allocation2 + $0x3d0] sm:$0xff] }
  0x37   :  { %319 = vmatprep.subr.mxu0 %v218_v59  ;;  %381 = vmatpush1.msra.mxu1 %v57_v22  ;;  %v172_v59 = vld [vmem:[#allocation2 + $0x3a8] sm:$0xff]  ;;  %v166_v60 = vld [vmem:[#allocation2 + $0x378] sm:$0xff]  ;;  %v493_v2 = vld [vmem:[%s6736_s7] sm:$0xff] }
  0x38   :  { %320 = vmatpush2.msra.mxu0 %v217_v61  ;;  %382 = vmatprep.subr.mxu1 %v244_v24  ;;  %v165_v61 = vld [vmem:[#allocation2 + $0x370] sm:$0xff]  ;;  %v160_v62 = vld [vmem:[#allocation2 + $0x348] sm:$0xff]  ;;  %v154_v0 = vld [vmem:[#allocation2 + $0x318] sm:$0xff] }
  0x39   :  { %321 = vmatprep.subr.mxu0 %v212_v63  ;;  %383 = vmatpush2.msra.mxu1 %v243_v27  ;;  %v159_v63 = vld [vmem:[#allocation2 + $0x340] sm:$0xff]  ;;  %v4838_v6 = vld [vmem:[%s6733_s4 + $0x30] sm:$0xff]  ;;  %v4917_v24 = vld [vmem:[%s6734_s5 + $0xe8] sm:$0xff] }
  0x3a   :  { %322 = vmatpush2.msra.mxu0 %v211_v1  ;;  %384 = vmatprep.subr.mxu1 %v238_v29  ;;  %v153_v1 = vld [vmem:[#allocation2 + $0x310] sm:$0xff]  ;;  %v4849_v8 = vld [vmem:[%s6733_s4 + $0x20] sm:$0xff]  ;;  %6939 = vst [vmem:[#allocation15_spill] sm:$0xff] %v4917_v24  ;;  %v4941_v29 = vld [vmem:[%s6734_s5 + $0xd8] sm:$0xff] }
  0x3b   :  { %323 = vmatprep.subr.mxu0 %v206_v3  ;;  %385 = vmatpush2.msra.mxu1 %v237_v31  ;;  %v4825_v3 = vld [vmem:[%s6733_s4 + $0x38] sm:$0xff]  ;;  %v4864_v10 = vld [vmem:[%s6733_s4 + $0x10] sm:$0xff]  ;;  %v4876_v12 = vld [vmem:[%s6733_s4] sm:$0xff]  ;;  %6943 = vst [vmem:[#allocation19_spill] sm:$0xff] %v4941_v29 }
  0x3c   :  { %324 = vmatpush2.msra.mxu0 %v205_v5  ;;  %386 = vmatprep.subr.mxu1 %v232_v33  ;;  %6932 = vst [vmem:[#allocation8_spill] sm:$0xff] %v4825_v3  ;;  %v492_v5 = vld [vmem:[%s6730_s1] sm:$0xff]  ;;  %v4904_v22 = vld [vmem:[%s6734_s5 + $0xf0] sm:$0xff]  ;;  %v4965_v33 = vld [vmem:[%s6734_s5 + $0xc8] sm:$0xff] }
  0x3d   :  { %325 = vmatprep.subr.mxu0 %v200_v7  ;;  %387 = vmatpush2.msra.mxu1 %v231_v35  ;;  %v4843_v7 = vld [vmem:[%s6733_s4 + $0x28] sm:$0xff]  ;;  %6937 = vst [vmem:[#allocation13_spill] sm:$0xff] %v4904_v22  ;;  %v4929_v27 = vld [vmem:[%s6734_s5 + $0xe0] sm:$0xff]  ;;  %v4953_v31 = vld [vmem:[%s6734_s5 + $0xd0] sm:$0xff] }
  0x3e   :  { %326 = vmatpush2.msra.mxu0 %v199_v9  ;;  %388 = vmatprep.subr.mxu1 %v226_v37  ;;  %v4855_v9 = vld [vmem:[%s6733_s4 + $0x18] sm:$0xff]  ;;  %6941 = vst [vmem:[#allocation17_spill] sm:$0xff] %v4929_v27  ;;  %6945 = vst [vmem:[#allocation21_spill] sm:$0xff] %v4953_v31  ;;  %v4977_v35 = vld [vmem:[%s6734_s5 + $0xc0] sm:$0xff] }
  0x3f   :  { %327 = vmatprep.subr.mxu0 %v194_v11  ;;  %389 = vmatpush2.msra.mxu1 %v225_v39  ;;  %v4870_v11 = vld [vmem:[%s6733_s4 + $0x8] sm:$0xff]  ;;  %6947 = vst [vmem:[#allocation23_spill] sm:$0xff] %v4965_v33  ;;  %6949 = vst [vmem:[#allocation25_spill] sm:$0xff] %v4977_v35  ;;  %v4989_v37 = vld [vmem:[%s6734_s5 + $0xb8] sm:$0xff] }
  0x40   :  { %328 = vmatpush2.msra.mxu0 %v193_v13  ;;  %390 = vmatprep.subr.mxu1 %v220_v41  ;;  %v4882_v13 = vld [vmem:[%s6734_s5 + $0xf8] sm:$0xff]  ;;  %6951 = vst [vmem:[#allocation27_spill] sm:$0xff] %v4989_v37  ;;  %v5001_v39 = vld [vmem:[%s6734_s5 + $0xb0] sm:$0xff]  ;;  %v5013_v41 = vld [vmem:[%s6734_s5 + $0xa8] sm:$0xff] }
  0x41   :  { %329 = vmatprep.subr.mxu0 %v188_v15  ;;  %391 = vmatpush2.msra.mxu1 %v219_v43  ;;  %6933 = vst [vmem:[#allocation9_spill] sm:$0xff] %v4882_v13  ;;  %v4885_v15 = vshrl.u32 %v249_v14, 7  ;;  %6953 = vst [vmem:[#allocation29_spill] sm:$0xff] %v5001_v39 }
  0x42   :  { %330 = vmatpush2.msra.mxu0 %v187_v17  ;;  %392 = vmatprep.subr.mxu1 %v214_v45  ;;  %v4891_v17 = vld [vmem:[%s6732_s3] sm:$0x3f]  ;;  %6955 = vst [vmem:[#allocation31_spill] sm:$0xff] %v5013_v41 }
  0x43   :  { %331 = vmatprep.subr.mxu0 %v182_v19  ;;  %393 = vmatpush2.msra.mxu1 %v213_v46  ;;  %6934 = vst [vmem:[#allocation10_spill] sm:$0xff] %v4885_v15  ;;  %v251_v16 = vsub.s32 0, %v4885_v15  ;;  %v5025_v45 = vld [vmem:[%s6734_s5 + $0xa0] sm:$0xff] }
  0x44   :  { %332 = vmatpush2.msra.mxu0 %v181_v21  ;;  %414 = vmatprep.mubr.f32.mxu1 %v4808_v25  ;;  %v4899_v21 = vld [vmem:[%s6734_s5 + $0x78] sm:$0xff]  ;;  %6957 = vst [vmem:[#allocation33_spill] sm:$0xff] %v5025_v45  ;;  %v5031_v46 = vld [vmem:[%s6734_s5 + $0x20] sm:$0xff] }
  0x45   :  { %333 = vmatprep.subr.mxu0 %v176_v23  ;;  %394 = vmatprep.subr.mxu1 %v208_v47  ;;  %v252_v18 = vrot.slane %v4891_v17, %v251_v16  ;;  %6936 = vst [vmem:[#allocation12_spill] sm:$0xff] %v4899_v21  ;;  %v4911_v23 = vld [vmem:[%s6734_s5 + $0x70] sm:$0xff]  ;;  %6958 = vst [vmem:[#allocation34_spill] sm:$0xff] %v5031_v46 }
  0x46   :  { %334 = vmatpush2.msra.mxu0 %v175_v26  ;;  %395 = vmatpush2.msra.mxu1 %v207_v48  ;;  %6938 = vst [vmem:[#allocation14_spill] sm:$0xff] %v4911_v23  ;;  %v4923_v26 = vld [vmem:[%s6734_s5 + $0x68] sm:$0xff]  ;;  %v5037_v48 = vld [vmem:[%s6734_s5 + $0x98] sm:$0xff] }
  0x47   :  { %335 = vmatprep.subr.mxu0 %v170_v28  ;;  %396 = vmatprep.subr.mxu1 %v202_v49  ;;  %6940 = vst [vmem:[#allocation16_spill] sm:$0xff] %v4923_v26  ;;  %v4935_v28 = vld [vmem:[%s6734_s5 + $0x60] sm:$0xff]  ;;  %6959 = vst [vmem:[#allocation35_spill] sm:$0xff] %v5037_v48  ;;  %v5043_v49 = vld [vmem:[%s6734_s5 + $0x18] sm:$0xff] }
  0x48   :  { %336 = vmatpush2.msra.mxu0 %v169_v30  ;;  %397 = vmatpush2.msra.mxu1 %v201_v50  ;;  %6942 = vst [vmem:[#allocation18_spill] sm:$0xff] %v4935_v28  ;;  %v4947_v30 = vld [vmem:[%s6734_s5 + $0x58] sm:$0xff]  ;;  %6960 = vst [vmem:[#allocation36_spill] sm:$0xff] %v5043_v49 }
  0x49   :  { %337 = vmatprep.subr.mxu0 %v164_v32  ;;  %398 = vmatprep.subr.mxu1 %v196_v51  ;;  %6944 = vst [vmem:[#allocation20_spill] sm:$0xff] %v4947_v30  ;;  %v4959_v32 = vld [vmem:[%s6734_s5 + $0x50] sm:$0xff] }
  0x4a   :  { %338 = vmatpush2.msra.mxu0 %v163_v34  ;;  %399 = vmatpush2.msra.mxu1 %v195_v52  ;;  %6946 = vst [vmem:[#allocation22_spill] sm:$0xff] %v4959_v32  ;;  %v4971_v34 = vld [vmem:[%s6734_s5 + $0x48] sm:$0xff]  ;;  %v5051_v52 = vld [vmem:[%s6734_s5 + $0x90] sm:$0xff] }
  0x4b   :  { %339 = vmatprep.subr.mxu0 %v158_v36  ;;  %400 = vmatprep.subr.mxu1 %v190_v53  ;;  %6948 = vst [vmem:[#allocation24_spill] sm:$0xff] %v4971_v34  ;;  %v4983_v36 = vld [vmem:[%s6734_s5 + $0x40] sm:$0xff]  ;;  %6961 = vst [vmem:[#allocation37_spill] sm:$0xff] %v5051_v52  ;;  %v5057_v53 = vld [vmem:[%s6734_s5 + $0x10] sm:$0xff] }
  0x4c   :  { %340 = vmatpush2.msra.mxu0 %v157_v38  ;;  %401 = vmatpush2.msra.mxu1 %v189_v54  ;;  %6950 = vst [vmem:[#allocation26_spill] sm:$0xff] %v4983_v36  ;;  %v4995_v38 = vld [vmem:[%s6734_s5 + $0x38] sm:$0xff]  ;;  %6962 = vst [vmem:[#allocation38_spill] sm:$0xff] %v5057_v53  ;;  %v5063_v54 = vld [vmem:[%s6734_s5 + $0x88] sm:$0xff] }
  0x4d   :  { %341 = vmatprep.subr.mxu0 %v152_v40  ;;  %402 = vmatprep.subr.mxu1 %v184_v55  ;;  %6952 = vst [vmem:[#allocation28_spill] sm:$0xff] %v4995_v38  ;;  %v5007_v40 = vld [vmem:[%s6734_s5 + $0x30] sm:$0xff]  ;;  %6963 = vst [vmem:[#allocation39_spill] sm:$0xff] %v5063_v54  ;;  %v5069_v55 = vld [vmem:[%s6734_s5 + $0x8] sm:$0xff] }
  0x4e   :  { %342 = vmatpush2.msra.mxu0 %v151_v42  ;;  %403 = vmatpush2.msra.mxu1 %v183_v56  ;;  %6954 = vst [vmem:[#allocation30_spill] sm:$0xff] %v5007_v40  ;;  %v5019_v42 = vld [vmem:[%s6734_s5 + $0x28] sm:$0xff]  ;;  %6964 = vst [vmem:[#allocation40_spill] sm:$0xff] %v5069_v55  ;;  %v5075_v56 = vld [vmem:[%s6734_s5 + $0x80] sm:$0xff] }
  0x4f   :  { %344 = vmatmul.mubr.f32.vlgmr.msra.gmra.mxu0 %v4814_v44  ;;  %404 = vmatprep.subr.mxu1 %v178_v57  ;;  %6956 = vst [vmem:[#allocation32_spill] sm:$0xff] %v5019_v42  ;;  %6965 = vst [vmem:[#allocation41_spill] sm:$0xff] %v5075_v56  ;;  %v5080_v57 = vld [vmem:[%s6734_s5] sm:$0xff] }
  0x50   :  { %485 = vmatprep.mubr.f32.mxu0 %v4808_v25  ;;  %v171_v25 = vld [vmem:[#allocation2 + $0x3a0] sm:$0xff]  ;;  %405 = vmatpush2.msra.mxu1 %v177_v58  ;;  %6966 = vst [vmem:[#allocation42_spill] sm:$0xff] %v5080_v57  ;;  %v263_v58 = vsub.s32 3, %v4885_v15 }
  0x51   :  { %406 = vmatprep.subr.mxu1 %v172_v59  ;;  %v259_v59 = vsub.s32 2, %v4885_v15 }
  0x52   :  { %407 = vmatpush2.msra.mxu1 %v171_v25  ;;  %v264_v25 = vrot.slane %v4891_v17, %v263_v58 }
  0x53   :  { %408 = vmatprep.subr.mxu1 %v166_v60  ;;  %v260_v60 = vrot.slane %v4891_v17, %v259_v59  ;;  %v5110_v59 = vld [vmem:[%s6735_s6 + $0x18] sm:$0xff] }
  0x54   :  { %409 = vmatpush2.msra.mxu1 %v165_v61 }
  0x55   :  { %410 = vmatprep.subr.mxu1 %v160_v62 }
  0x56   :  { %411 = vmatpush2.msra.mxu1 %v159_v63 }
  0x57   :  { %412 = vmatprep.subr.mxu1 %v154_v0 }
  0x58   :  { %413 = vmatpush2.msra.mxu1 %v153_v1 }
  0x59   :  { %415 = vmatmul.mubr.f32.vlgmr.msra.gmra.mxu1 %v4814_v44  ;;  %4397 = vmatprep.subr.mxu1 %v6741_v4 }
  0x5a   :  { %4398 = vmatpush3.msra.mxu1 %v493_v2  ;;  %4399 = vmatprep.mubr.msk.f32.mxu1 %vm4729_vm0, %v6741_v4 }
  0x5b   :  { %607 = vmatprep.subr.mxu1 %v4825_v3 }
  0x5d   :  { %4400 = vmatmul.mubr.msk.f32.vlgmr.msra.gmra.mxu1 %vm494_vm1, %v492_v5 }
  0x5e   :  { %608 = vmatpush1.msra.mxu1 %v4838_v6  ;;  %647 = vmatprep.mubr.f32.mxu1 %v6741_v4 }
  0x5f   :  { %609 = vmatprep.subr.mxu1 %v4843_v7 }
  0x60   :  { %610 = vmatpush1.msra.mxu1 %v4849_v8 }
  0x61   :  { %611 = vmatprep.subr.mxu1 %v4855_v9 }
  0x62   :  { %612 = vmatpush1.msra.mxu1 %v4864_v10 }
  0x63   :  { %613 = vmatprep.subr.mxu1 %v4870_v11 }
  0x64   :  { %614 = vmatpush1.msra.mxu1 %v4876_v12 }
  0x65   :  { %3797 = vmatprep.subr.mxu1 %v4882_v13 }
 0x10f   :  { %v345_v19 = vpop.f32.mrf.mxu0 }
 0x110   :  { %v4894_v20 = vadd.f32 %v345_v19, %v252_v18 }
 0x112   :  { %6935 = vst [vmem:[#allocation11_spill] sm:$0xff] %v4894_v20  ;;  %3770 = vmatmul.mubr.msk.f32.vlgmr.msra.gmra.mxu1 %vm579_vm2, %v4894_v20 }
 0x113   :  { %3798 = vmatpush3.msra.mxu1 %v4899_v21 }
 0x114   :  { %3799 = vmatprep.subr.mxu1 %v4904_v22 }
 0x115   :  { %3800 = vmatpush3.msra.mxu1 %v4911_v23 }
 0x116   :  { %3801 = vmatprep.subr.mxu1 %v4917_v24 }
 0x117   :  { %3802 = vmatpush3.msra.mxu1 %v4923_v26 }
 0x118   :  { %3803 = vmatprep.subr.mxu1 %v4929_v27 }
 0x119   :  { %3804 = vmatpush3.msra.mxu1 %v4935_v28  ;;  %v416_v43 = vpop.f32.mrf.mxu1 }
 0x11a   :  { %3805 = vmatprep.subr.mxu1 %v4941_v29  ;;  %v5091_v63 = vadd.f32 %v416_v43, %v260_v60  ;;  %v5129_v60 = vld [vmem:[%s6735_s6] sm:$0xff] }
 0x11b   :  { %3806 = vmatpush3.msra.mxu1 %v4947_v30  ;;  %v418_v47 = vpop.f32.mrf.mxu1 }
 0x11c   :  { %3807 = vmatprep.subr.mxu1 %v4953_v31  ;;  %v5089_v62 = vadd.f32 %v418_v47, %v264_v25  ;;  %6967 = vst [vmem:[#allocation43_spill] sm:$0xff] %v5091_v63  ;;  %v5115_v25 = vld [vmem:[%s6735_s6 + $0x10] sm:$0xff] }
 0x11d   :  { %3808 = vmatpush3.msra.mxu1 %v4959_v32  ;;  %v564_v50 = vpop.f32.mrf.mxu1 }
 0x11e   :  { %3809 = vmatprep.subr.mxu1 %v4965_v33  ;;  %v568_v5 = vsub.f32 1.0, %v564_v50  ;;  %v5099_v47 = vmul.f32 -1000000.0, %v564_v50  ;;  %v5122_v50 = vld [vmem:[%s6735_s6 + $0x8] sm:$0xff] }
 0x11f   :  { %3810 = vmatpush3.msra.mxu1 %v4971_v34  ;;  %v4401_v51 = vpop.f32.mrf.mxu1 }
 0x120   :  { %3811 = vmatprep.subr.mxu1 %v4977_v35  ;;  %v5097_v18 = vmul.f32 0.17677669, %v568_v5  ;;  %6968 = vst [vmem:[#allocation44_spill] sm:$0xff] %v5099_v47  ;;  %v138_v5 = vld [vmem:[#allocation2 + $0x298] sm:$0xff] }
 0x121   :  { %3812 = vmatpush3.msra.mxu1 %v4983_v36 }
 0x122   :  { %3813 = vmatprep.subr.mxu1 %v4989_v37 }
 0x123   :  { %3814 = vmatpush3.msra.mxu1 %v4995_v38 }
 0x124   :  { %3815 = vmatprep.subr.mxu1 %v5001_v39 }
 0x125   :  { %3816 = vmatpush3.msra.mxu1 %v5007_v40 }
 0x126   :  { %3817 = vmatprep.subr.mxu1 %v5013_v41 }
 0x127   :  { %3818 = vmatpush3.msra.mxu1 %v5019_v42 }
 0x128   :  { %3819 = vmatprep.subr.mxu1 %v5025_v45 }
 0x129   :  { %3820 = vmatpush3.msra.mxu1 %v5031_v46 }
 0x12a   :  { %3821 = vmatprep.subr.mxu1 %v5037_v48 }
 0x12b   :  { %3822 = vmatpush3.msra.mxu1 %v5043_v49 }
 0x12c   :  { %3823 = vmatprep.subr.mxu1 %v5051_v52 }
 0x12d   :  { %3824 = vmatpush3.msra.mxu1 %v5057_v53 }
 0x12e   :  { %3825 = vmatprep.subr.mxu1 %v5063_v54 }
 0x12f   :  { %3826 = vmatpush3.msra.mxu1 %v5069_v55 }
 0x130   :  { %3827 = vmatprep.subr.mxu1 %v5075_v56 }
 0x131   :  { %3828 = vmatpush3.msra.mxu1 %v5080_v57 }
 0x132   :  { %4402 = vmatprep.subr.mxu1 %v6741_v4 }
 0x1d2   :  { %v649_v61 = vpop.f32.mrf.mxu1 }
 0x1d3   :  { %v654_v2 = vmul.f32 %v649_v61, %v5091_v63  ;;  %v150_v61 = vld [vmem:[#allocation2 + $0x2f8] sm:$0xff] }
 0x1d4   :  { %v651_v0 = vpop.f32.mrf.mxu1  ;;  %421 = vmatprep.subr.mxu0 %v150_v61  ;;  %v113_v61 = vld [vmem:[#allocation2 + $0x1d0] sm:$0xff] }
 0x1d5   :  { %v655_v1 = vmul.f32 %v651_v0, %v5089_v62  ;;  %v149_v0 = vld [vmem:[#allocation2 + $0x2f0] sm:$0xff] }
 0x1d6   :  { %422 = vmatpush1.msra.mxu0 %v149_v0  ;;  %v108_v0 = vld [vmem:[#allocation2 + $0x1a8] sm:$0xff] }
 0x1d7   :  { %752 = vmatprep.mubr.f32.mxu1 %v655_v1  ;;  %v144_v1 = vld [vmem:[#allocation2 + $0x2c8] sm:$0xff] }
 0x1d8   :  { %753 = vmatmul.mubr.f32.vlgmr.msra.gmra.mxu1 %v654_v2  ;;  %v143_v2 = vld [vmem:[#allocation2 + $0x2c0] sm:$0xff]  ;;  %423 = vmatprep.subr.mxu0 %v144_v1 }
 0x1d9   :  { %4410 = vmatprep.mubr.msk.f32.mxu1 %vm4729_vm0, %v6741_v4  ;;  %4403 = vmatpush3.msra.mxu1 %v5110_v59  ;;  %v107_v1 = vld [vmem:[#allocation2 + $0x1a0] sm:$0xff] }
 0x1da   :  { %4404 = vmatprep.subr.mxu1 %v6741_v4  ;;  %424 = vmatpush1.msra.mxu0 %v143_v2  ;;  %v102_v2 = vld [vmem:[#allocation2 + $0x178] sm:$0xff] }
 0x1db   :  { %4405 = vmatpush3.msra.mxu1 %v5115_v25  ;;  %425 = vmatprep.subr.mxu0 %v138_v5  ;;  %v101_v5 = vld [vmem:[#allocation2 + $0x170] sm:$0xff] }
 0x1dc   :  { %4406 = vmatprep.subr.mxu1 %v6741_v4 }
 0x1dd   :  { %4407 = vmatpush3.msra.mxu1 %v5122_v50 }
 0x1de   :  { %4408 = vmatprep.subr.mxu1 %v6741_v4  ;;  %v120_v4 = vld [vmem:[#allocation2 + $0x208] sm:$0xff] }
 0x1df   :  { %4409 = vmatpush3.msra.mxu1 %v5129_v60 }
 0x298   :  { %v3829_v14 = vpop.f32.mrf.mxu1 }
 0x29a   :  { %v3830_v16 = vpop.f32.mrf.mxu1 }
 0x29b   :  { %v3831_v19 = vadd.f32 %v3830_v16, %v3829_v14  ;;  %v137_v14 = vld [vmem:[#allocation2 + $0x290] sm:$0xff]  ;;  %v132_v16 = vld [vmem:[#allocation2 + $0x268] sm:$0xff] }
 0x29c   :  { %426 = vmatpush1.msra.mxu0 %v137_v14  ;;  %v96_v14 = vld [vmem:[#allocation2 + $0x148] sm:$0xff] }
 0x29d   :  { %v758_v43 = vmul.f32 %v3831_v19, %v5097_v18  ;;  %v131_v19 = vld [vmem:[#allocation2 + $0x260] sm:$0xff]  ;;  %427 = vmatprep.subr.mxu0 %v132_v16 }
 0x29e   :  { %428 = vmatpush1.msra.mxu0 %v131_v19  ;;  %v95_v16 = vld [vmem:[#allocation2 + $0x140] sm:$0xff]  ;;  %v90_v19 = vld [vmem:[#allocation2 + $0x118] sm:$0xff] }
 0x29f   :  { %v5103_v51 = vadd.f32 %v758_v43, %v5099_v47  ;;  %v126_v43 = vld [vmem:[#allocation2 + $0x238] sm:$0xff] }
 0x2a0   :  { %429 = vmatprep.subr.mxu0 %v126_v43  ;;  %v114_v47 = vld [vmem:[#allocation2 + $0x1d8] sm:$0xff]  ;;  %v89_v43 = vld [vmem:[#allocation2 + $0x110] sm:$0xff] }
 0x2a1   :  { %v760_v58 = vsel %vm579_vm2, %v5103_v51, -inf }
 0x2a2   :  { %761 = vmax.xlane.f32.xlu0 %v760_v58  ;;  %v125_v58 = vld [vmem:[#allocation2 + $0x230] sm:$0xff] }
 0x2a3   :  { %430 = vmatpush1.msra.mxu0 %v125_v58  ;;  %v84_v58 = vld [vmem:[#allocation2 + $0xe8] sm:$0xff] }
 0x2a4   :  { %431 = vmatprep.subr.mxu0 %v120_v4  ;;  %v83_v4 = vld [vmem:[#allocation2 + $0xe0] sm:$0xff] }
 0x2b8   :  { %1047 = vrot.lane.b32.xlu0 %v4894_v20, %s4730_s17 }
 0x2bc   :  { %1820 = vrot.lane.b32.xlu0 %v4894_v20, %s4731_s18  ;;  %v119_v20 = vld [vmem:[#allocation2 + $0x200] sm:$0xff] }
 0x2bd   :  { %432 = vmatpush1.msra.mxu0 %v119_v20  ;;  %v78_v20 = vld [vmem:[#allocation2 + $0xb8] sm:$0xff] }
 0x2be   :  { %433 = vmatprep.subr.mxu0 %v114_v47  ;;  %v77_v47 = vld [vmem:[#allocation2 + $0xb0] sm:$0xff] }
 0x2bf   :  { %434 = vmatpush1.msra.mxu0 %v113_v61  ;;  %v72_v61 = vld [vmem:[#allocation2 + $0x88] sm:$0xff] }
 0x2c0   :  { %435 = vmatprep.subr.mxu0 %v108_v0  ;;  %v71_v0 = vld [vmem:[#allocation2 + $0x80] sm:$0xff] }
 0x2c1   :  { %436 = vmatpush1.msra.mxu0 %v107_v1  ;;  %v66_v1 = vld [vmem:[#allocation2 + $0x58] sm:$0xff] }
 0x2c2   :  { %437 = vmatprep.subr.mxu0 %v102_v2  ;;  %v65_v2 = vld [vmem:[#allocation2 + $0x50] sm:$0xff] }
 0x2c3   :  { %438 = vmatpush1.msra.mxu0 %v101_v5  ;;  %v60_v5 = vld [vmem:[#allocation2 + $0x28] sm:$0xff] }
 0x2c4   :  { %439 = vmatprep.subr.mxu0 %v96_v14  ;;  %v59_v14 = vld [vmem:[#allocation2 + $0x20] sm:$0xff] }
 0x2c5   :  { %440 = vmatpush1.msra.mxu0 %v95_v16  ;;  %v246_v16 = vld [vmem:[#allocation2 + $0x5f8] sm:$0xff] }
 0x2c6   :  { %441 = vmatprep.subr.mxu0 %v90_v19  ;;  %v245_v19 = vld [vmem:[#allocation2 + $0x5f0] sm:$0xff] }
 0x2c7   :  { %442 = vmatpush1.msra.mxu0 %v89_v43  ;;  %v240_v43 = vld [vmem:[#allocation2 + $0x5c8] sm:$0xff] }
 0x2c8   :  { %443 = vmatprep.subr.mxu0 %v84_v58  ;;  %v239_v58 = vld [vmem:[#allocation2 + $0x5c0] sm:$0xff] }
 0x2c9   :  { %444 = vmatpush1.msra.mxu0 %v83_v4  ;;  %v234_v4 = vld [vmem:[#allocation2 + $0x598] sm:$0xff] }
 0x2ca   :  { %445 = vmatprep.subr.mxu0 %v78_v20  ;;  %v233_v20 = vld [vmem:[#allocation2 + $0x590] sm:$0xff] }
 0x2cb   :  { %446 = vmatpush1.msra.mxu0 %v77_v47  ;;  %v228_v47 = vld [vmem:[#allocation2 + $0x568] sm:$0xff] }
 0x2cc   :  { %447 = vmatprep.subr.mxu0 %v72_v61  ;;  %v227_v61 = vld [vmem:[#allocation2 + $0x560] sm:$0xff] }
 0x2cd   :  { %448 = vmatpush1.msra.mxu0 %v71_v0  ;;  %v222_v0 = vld [vmem:[#allocation2 + $0x538] sm:$0xff] }
 0x2ce   :  { %449 = vmatprep.subr.mxu0 %v66_v1  ;;  %v221_v1 = vld [vmem:[#allocation2 + $0x530] sm:$0xff] }
 0x2cf   :  { %450 = vmatpush1.msra.mxu0 %v65_v2  ;;  %v216_v2 = vld [vmem:[#allocation2 + $0x508] sm:$0xff] }
 0x2d0   :  { %451 = vmatprep.subr.mxu0 %v60_v5  ;;  %v215_v5 = vld [vmem:[#allocation2 + $0x500] sm:$0xff] }
 0x2d1   :  { %452 = vmatpush1.msra.mxu0 %v59_v14  ;;  %v210_v14 = vld [vmem:[#allocation2 + $0x4d8] sm:$0xff] }
 0x2d2   :  { %453 = vmatprep.subr.mxu0 %v246_v16  ;;  %v209_v16 = vld [vmem:[#allocation2 + $0x4d0] sm:$0xff] }
 0x2d3   :  { %454 = vmatpush2.msra.mxu0 %v245_v19  ;;  %v204_v19 = vld [vmem:[#allocation2 + $0x4a8] sm:$0xff] }
 0x2d4   :  { %455 = vmatprep.subr.mxu0 %v240_v43  ;;  %v203_v43 = vld [vmem:[#allocation2 + $0x4a0] sm:$0xff] }
 0x2d5   :  { %456 = vmatpush2.msra.mxu0 %v239_v58  ;;  %v198_v58 = vld [vmem:[#allocation2 + $0x478] sm:$0xff] }
 0x2d6   :  { %457 = vmatprep.subr.mxu0 %v234_v4  ;;  %v197_v4 = vld [vmem:[#allocation2 + $0x470] sm:$0xff] }
 0x2d7   :  { %458 = vmatpush2.msra.mxu0 %v233_v20 }
 0x2d8   :  { %459 = vmatprep.subr.mxu0 %v228_v47 }
 0x2d9   :  { %460 = vmatpush2.msra.mxu0 %v227_v61 }
 0x2da   :  { %461 = vmatprep.subr.mxu0 %v222_v0 }
 0x2db   :  { %462 = vmatpush2.msra.mxu0 %v221_v1  ;;  %v6969_v1 = vmov 0.0  }
 0x2dc   :  { %463 = vmatprep.subr.mxu0 %v216_v2  ;;  %v192_v2 = vld [vmem:[#allocation2 + $0x448] sm:$0xff] }
 0x2dd   :  { %464 = vmatpush2.msra.mxu0 %v215_v5  ;;  %v191_v5 = vld [vmem:[#allocation2 + $0x440] sm:$0xff] }
 0x2de   :  { %465 = vmatprep.subr.mxu0 %v210_v14  ;;  %v186_v14 = vld [vmem:[#allocation2 + $0x418] sm:$0xff] }
 0x2df   :  { %466 = vmatpush2.msra.mxu0 %v209_v16  ;;  %v185_v16 = vld [vmem:[#allocation2 + $0x410] sm:$0xff] }
 0x2e0   :  { %467 = vmatprep.subr.mxu0 %v204_v19  ;;  %v180_v19 = vld [vmem:[#allocation2 + $0x3e8] sm:$0xff] }
 0x2e1   :  { %468 = vmatpush2.msra.mxu0 %v203_v43  ;;  %v179_v43 = vld [vmem:[#allocation2 + $0x3e0] sm:$0xff] }
 0x2e2   :  { %469 = vmatprep.subr.mxu0 %v198_v58  ;;  %v173_v58 = vld [vmem:[#allocation2 + $0x3b0] sm:$0xff] }
 0x2e3   :  { %470 = vmatpush2.msra.mxu0 %v197_v4  ;;  %v5147_v4 = vld [vmem:[%s6737_s8 + $0x38] sm:$0xff] }
 0x2e4   :  { %471 = vmatprep.subr.mxu0 %v192_v2  ;;  %6970 = vst [vmem:[#allocation45_spill] sm:$0xff] %v5147_v4  ;;  %880 = vmatprep.subr.mxu1 %v5147_v4  ;;  %v5159_v2 = vld [vmem:[%s6737_s8 + $0x28] sm:$0xff] }
 0x2e5   :  { %472 = vmatpush2.msra.mxu0 %v191_v5  ;;  %6972 = vst [vmem:[#allocation47_spill] sm:$0xff] %v5159_v2  ;;  %v5164_v5 = vld [vmem:[%s6737_s8 + $0x20] sm:$0xff] }
 0x2e6   :  { %473 = vmatprep.subr.mxu0 %v186_v14  ;;  %v162_v14 = vld [vmem:[#allocation2 + $0x358] sm:$0xff] }
 0x2e7   :  { %474 = vmatpush2.msra.mxu0 %v185_v16  ;;  %v5170_v16 = vld [vmem:[%s6737_s8 + $0x18] sm:$0xff] }
 0x2e8   :  { %475 = vmatprep.subr.mxu0 %v180_v19  ;;  %v5175_v19 = vld [vmem:[%s6737_s8 + $0x10] sm:$0xff] }
 0x2e9   :  { %476 = vmatpush2.msra.mxu0 %v179_v43  ;;  %v161_v43 = vld [vmem:[#allocation2 + $0x350] sm:$0xff] }
 0x32b   :  { %v762_v20 = vpop.xlane.xlu0 %761 }
 0x32c   :  { %v763_v47 = vsub.f32 %v5103_v51, %v762_v20  ;;  %v174_v51 = vld [vmem:[#allocation2 + $0x3b8] sm:$0xff]  ;;  %v168_v20 = vld [vmem:[#allocation2 + $0x388] sm:$0xff] }
 0x32d   :  { %477 = vmatprep.subr.mxu0 %v174_v51  ;;  %v5181_v51 = vld [vmem:[%s6737_s8 + $0x8] sm:$0xff] }
 0x32e   :  { %v764_v61 = vmul.f32 1.442695, %v763_v47  ;;  %v5153_v47 = vld [vmem:[%s6737_s8 + $0x30] sm:$0xff]  ;;  %478 = vmatpush2.msra.mxu0 %v173_v58  ;;  %6973 = vst [vmem:[#allocation48_spill] sm:$0xff] %v5181_v51  ;;  %v156_v58 = vld [vmem:[#allocation2 + $0x328] sm:$0xff] }
 0x32f   :  { %6971 = vst [vmem:[#allocation46_spill] sm:$0xff] %v5153_v47  ;;  %479 = vmatprep.subr.mxu0 %v168_v20  ;;  %v5200_v20 = vld [vmem:[%s6738_s9 + $0xf8] sm:$0xff] }
 0x330   :  { %4515 = vpow2.f32 %v764_v61  ;;  %v167_v61 = vld [vmem:[#allocation2 + $0x380] sm:$0xff]  ;;  %6975 = vst [vmem:[#allocation50_spill] sm:$0xff] %v5200_v20 }
 0x331   :  { %480 = vmatpush2.msra.mxu0 %v167_v61 }
 0x332   :  { %481 = vmatprep.subr.mxu0 %v162_v14 }
 0x333   :  { %482 = vmatpush2.msra.mxu0 %v161_v43 }
 0x334   :  { %483 = vmatprep.subr.mxu0 %v156_v58  ;;  %v5236_v58 = vld [vmem:[%s6738_s9 + $0x78] sm:$0xff] }
 0x33d   :  { %v5139_v0 = vpop.eup %4515 }
 0x33e   :  { %4411 = vmatmul.mubr.msk.f32.vlgmr.msra.gmra.mxu1 %vm579_vm2, %v5139_v0 }
 0x33f   :  { %920 = vmatprep.mubr.f32.mxu1 %v6969_v1  ;;  %881 = vmatpush1.msra.mxu1 %v5153_v47  ;;  %v155_v47 = vld [vmem:[#allocation2 + $0x320] sm:$0xff] }
 0x340   :  { %882 = vmatprep.subr.mxu1 %v5159_v2  ;;  %v5187_v2 = vld [vmem:[%s6737_s8] sm:$0xff]  ;;  %484 = vmatpush2.msra.mxu0 %v155_v47 }
 0x341   :  { %883 = vmatpush1.msra.mxu1 %v5164_v5  ;;  %6974 = vst [vmem:[#allocation49_spill] sm:$0xff] %v5187_v2  ;;  %486 = vmatmul.mubr.f32.vlgmr.msra.gmra.mxu0 %v4814_v44 }
 0x342   :  { %884 = vmatprep.subr.mxu1 %v5170_v16  ;;  %3872 = vmatprep.subr.mxu0 %v4882_v13 }
 0x343   :  { %885 = vmatpush1.msra.mxu1 %v5175_v19  ;;  %3873 = vmatpush3.msra.mxu0 %v4899_v21 }
 0x344   :  { %886 = vmatprep.subr.mxu1 %v5181_v51  ;;  %3874 = vmatprep.subr.mxu0 %v4904_v22 }
 0x345   :  { %887 = vmatpush1.msra.mxu1 %v5187_v2  ;;  %3875 = vmatpush3.msra.mxu0 %v4911_v23 }
 0x346   :  { %3876 = vmatprep.subr.mxu0 %v4917_v24  ;;  %3837 = vmatprep.subr.mxu1 %v5200_v20 }
 0x347   :  { %3877 = vmatpush3.msra.mxu0 %v4923_v26 }
 0x348   :  { %3878 = vmatprep.subr.mxu0 %v4929_v27  ;;  %v271_v27 = vsub.s32 5, %v4885_v15 }
 0x349   :  { %3879 = vmatpush3.msra.mxu0 %v4935_v28  ;;  %v267_v28 = vsub.s32 4, %v4885_v15 }
 0x34a   :  { %3880 = vmatprep.subr.mxu0 %v4941_v29  ;;  %v5421_v29 = vpop.f32.mrf.mxu0  ;;  %v272_v23 = vrot.slane %v4891_v17, %v271_v27 }
 0x34b   :  { %3881 = vmatpush3.msra.mxu0 %v4947_v30  ;;  %v5417_v30 = vld [vmem:[%s6738_s9] sm:$0xff]  ;;  %6984 = vst [vmem:[#allocation59_spill] sm:$0xff] %v5421_v29  ;;  %v268_v24 = vrot.slane %v4891_v17, %v267_v28  ;;  %v1048_v17 = vpop.permute.xlu0 %1047 }
 0x34c   :  { %3882 = vmatprep.subr.mxu0 %v4953_v31  ;;  %v5411_v31 = vld [vmem:[%s6738_s9 + $0x80] sm:$0xff]  ;;  %6983 = vst [vmem:[#allocation58_spill] sm:$0xff] %v5417_v30 }
 0x34d   :  { %3883 = vmatpush3.msra.mxu0 %v4959_v32  ;;  %v5405_v32 = vld [vmem:[%s6738_s9 + $0x8] sm:$0xff]  ;;  %6982 = vst [vmem:[#allocation57_spill] sm:$0xff] %v5411_v31 }
 0x34e   :  { %3884 = vmatprep.subr.mxu0 %v4965_v33  ;;  %v5399_v33 = vld [vmem:[%s6738_s9 + $0x88] sm:$0xff]  ;;  %6981 = vst [vmem:[#allocation56_spill] sm:$0xff] %v5405_v32 }
 0x34f   :  { %3885 = vmatpush3.msra.mxu0 %v4971_v34  ;;  %v5393_v34 = vld [vmem:[%s6738_s9 + $0x10] sm:$0xff]  ;;  %6980 = vst [vmem:[#allocation55_spill] sm:$0xff] %v5399_v33 }
 0x350   :  { %3886 = vmatprep.subr.mxu0 %v4977_v35  ;;  %v5385_v35 = vld [vmem:[%s6738_s9 + $0x90] sm:$0xff]  ;;  %6979 = vst [vmem:[#allocation54_spill] sm:$0xff] %v5393_v34 }
 0x351   :  { %3887 = vmatpush3.msra.mxu0 %v4983_v36  ;;  %v5379_v36 = vld [vmem:[%s6738_s9 + $0x18] sm:$0xff]  ;;  %6978 = vst [vmem:[#allocation53_spill] sm:$0xff] %v5385_v35 }
 0x352   :  { %3888 = vmatprep.subr.mxu0 %v4989_v37  ;;  %v5373_v37 = vld [vmem:[%s6738_s9 + $0x98] sm:$0xff]  ;;  %6977 = vst [vmem:[#allocation52_spill] sm:$0xff] %v5379_v36 }
 0x353   :  { %3889 = vmatpush3.msra.mxu0 %v4995_v38  ;;  %v5367_v38 = vld [vmem:[%s6738_s9 + $0x20] sm:$0xff]  ;;  %6976 = vst [vmem:[#allocation51_spill] sm:$0xff] %v5373_v37 }
 0x354   :  { %3890 = vmatprep.subr.mxu0 %v5001_v39  ;;  %v5361_v39 = vld [vmem:[%s6738_s9 + $0xa0] sm:$0xff] }
 0x355   :  { %3891 = vmatpush3.msra.mxu0 %v5007_v40  ;;  %v5355_v40 = vld [vmem:[%s6738_s9 + $0x28] sm:$0xff] }
 0x356   :  { %3892 = vmatprep.subr.mxu0 %v5013_v41  ;;  %v5349_v41 = vld [vmem:[%s6738_s9 + $0xa8] sm:$0xff] }
 0x357   :  { %3893 = vmatpush3.msra.mxu0 %v5019_v42  ;;  %v5343_v42 = vld [vmem:[%s6738_s9 + $0x30] sm:$0xff] }
 0x358   :  { %3894 = vmatprep.subr.mxu0 %v5025_v45  ;;  %v5337_v45 = vld [vmem:[%s6738_s9 + $0xb0] sm:$0xff] }
 0x359   :  { %3895 = vmatpush3.msra.mxu0 %v5031_v46  ;;  %v5331_v46 = vld [vmem:[%s6738_s9 + $0x38] sm:$0xff] }
 0x35a   :  { %3896 = vmatprep.subr.mxu0 %v5037_v48  ;;  %v5325_v48 = vld [vmem:[%s6738_s9 + $0xb8] sm:$0xff] }
 0x35b   :  { %3897 = vmatpush3.msra.mxu0 %v5043_v49  ;;  %v5319_v49 = vld [vmem:[%s6738_s9 + $0x40] sm:$0xff] }
 0x35c   :  { %3898 = vmatprep.subr.mxu0 %v5051_v52  ;;  %v5313_v52 = vld [vmem:[%s6738_s9 + $0xc0] sm:$0xff] }
 0x35d   :  { %3899 = vmatpush3.msra.mxu0 %v5057_v53  ;;  %v5307_v53 = vld [vmem:[%s6738_s9 + $0x48] sm:$0xff] }
 0x35e   :  { %3900 = vmatprep.subr.mxu0 %v5063_v54  ;;  %v5301_v54 = vld [vmem:[%s6738_s9 + $0xc8] sm:$0xff] }
 0x35f   :  { %3901 = vmatpush3.msra.mxu0 %v5069_v55  ;;  %v5295_v55 = vld [vmem:[%s6738_s9 + $0x50] sm:$0xff] }
 0x360   :  { %3902 = vmatprep.subr.mxu0 %v5075_v56  ;;  %v5241_v56 = vld [vmem:[%s6738_s9 + $0xf0] sm:$0xff] }
 0x361   :  { %3903 = vmatpush3.msra.mxu0 %v5080_v57  ;;  %v5289_v57 = vld [vmem:[%s6738_s9 + $0xd0] sm:$0xff] }
 0x362   :  { %3912 = vmatprep.subr.mxu0 %v5200_v20  ;;  %v5283_v20 = vld [vmem:[%s6738_s9 + $0x58] sm:$0xff] }
 0x3fe   :  { %v839_v44 = vpop.f32.mrf.mxu1 }
 0x3ff   :  { %v840_v47 = vadd.f32 1e-30, %v839_v44  ;;  %v5247_v44 = vld [vmem:[%s6738_s9 + $0x70] sm:$0xff] }
 0x400   :  { %v4412_v61 = vpop.f32.mrf.mxu1 }
 0x401   :  { %4517 = vrcp.f32 %v840_v47  ;;  %v5259_v47 = vld [vmem:[%s6738_s9 + $0x68] sm:$0xff]  ;;  %v5265_v61 = vld [vmem:[%s6738_s9 + $0xe0] sm:$0xff]  ;;  %v487_v26 = vpop.f32.mrf.mxu0 }
 0x402   :  { %v5427_v21 = vadd.f32 %v487_v26, %v268_v24 }
 0x403   :  { %v489_v22 = vpop.f32.mrf.mxu0 }
 0x404   :  { %v5429_v2 = vadd.f32 %v489_v22, %v272_v23 }
 0x40e   :  { %v4518_v14 = vpop.eup %4517 }
 0x40f   :  { %v844_v43 = vmul.f32 %v4518_v14, %v5139_v0  ;;  %v5253_v0 = vld [vmem:[%s6738_s9 + $0xe8] sm:$0xff]  ;;  %v5271_v14 = vld [vmem:[%s6738_s9 + $0x60] sm:$0xff] }
 0x411   :  { %3772 = vmatmul.mubr.msk.f32.vlgmr.msra.gmra.mxu1 %vm579_vm2, %v844_v43  ;;  %v5277_v43 = vld [vmem:[%s6738_s9 + $0xd8] sm:$0xff] }
 0x412   :  { %3838 = vmatpush3.msra.mxu1 %v5236_v58 }
 0x413   :  { %3839 = vmatprep.subr.mxu1 %v5241_v56 }
 0x414   :  { %3840 = vmatpush3.msra.mxu1 %v5247_v44 }
 0x415   :  { %3841 = vmatprep.subr.mxu1 %v5253_v0 }
 0x416   :  { %3842 = vmatpush3.msra.mxu1 %v5259_v47 }
 0x417   :  { %3843 = vmatprep.subr.mxu1 %v5265_v61 }
 0x418   :  { %3844 = vmatpush3.msra.mxu1 %v5271_v14 }
 0x419   :  { %3845 = vmatprep.subr.mxu1 %v5277_v43 }
 0x41a   :  { %3846 = vmatpush3.msra.mxu1 %v5283_v20 }
 0x41b   :  { %3847 = vmatprep.subr.mxu1 %v5289_v57 }
 0x41c   :  { %3848 = vmatpush3.msra.mxu1 %v5295_v55 }
 0x41d   :  { %3849 = vmatprep.subr.mxu1 %v5301_v54 }
 0x41e   :  { %3850 = vmatpush3.msra.mxu1 %v5307_v53 }
 0x41f   :  { %3851 = vmatprep.subr.mxu1 %v5313_v52 }
 0x420   :  { %3852 = vmatpush3.msra.mxu1 %v5319_v49 }
 0x421   :  { %3853 = vmatprep.subr.mxu1 %v5325_v48 }
 0x422   :  { %3854 = vmatpush3.msra.mxu1 %v5331_v46 }
 0x423   :  { %3855 = vmatprep.subr.mxu1 %v5337_v45 }
 0x424   :  { %3856 = vmatpush3.msra.mxu1 %v5343_v42 }
 0x425   :  { %3857 = vmatprep.subr.mxu1 %v5349_v41 }
 0x426   :  { %3858 = vmatpush3.msra.mxu1 %v5355_v40 }
 0x427   :  { %3859 = vmatprep.subr.mxu1 %v5361_v39 }
 0x428   :  { %3860 = vmatpush3.msra.mxu1 %v5367_v38 }
 0x429   :  { %3861 = vmatprep.subr.mxu1 %v5373_v37 }
 0x42a   :  { %3862 = vmatpush3.msra.mxu1 %v5379_v36 }
 0x42b   :  { %3863 = vmatprep.subr.mxu1 %v5385_v35 }
 0x42c   :  { %3864 = vmatpush3.msra.mxu1 %v5393_v34 }
 0x42d   :  { %3865 = vmatprep.subr.mxu1 %v5399_v33 }
 0x42e   :  { %3866 = vmatpush3.msra.mxu1 %v5405_v32 }
 0x42f   :  { %3867 = vmatprep.subr.mxu1 %v5411_v31 }
 0x430   :  { %3868 = vmatpush3.msra.mxu1 %v5417_v30 }
 0x431   :  { %1075 = vmatprep.subr.mxu1 %v4825_v3 }
 0x4d1   :  { %v922_v13 = vpop.f32.mrf.mxu1 }
 0x4d2   :  { %v927_v29 = vmul.f32 %v922_v13, %v5427_v21 }
 0x4d3   :  { %v924_v51 = vpop.f32.mrf.mxu1 }
 0x4d4   :  { %v928_v3 = vmul.f32 %v924_v51, %v5429_v2 }
 0x4d6   :  { %1032 = vmatprep.mubr.f32.mxu1 %v928_v3 }
 0x4d7   :  { %1033 = vmatmul.mubr.f32.vlgmr.msra.gmra.mxu1 %v927_v29 }
 0x4d8   :  { %1076 = vmatpush1.msra.mxu1 %v4838_v6  ;;  %1115 = vmatprep.mubr.f32.mxu1 %v6969_v1 }
 0x4d9   :  { %1077 = vmatprep.subr.mxu1 %v4843_v7 }
 0x4da   :  { %1078 = vmatpush1.msra.mxu1 %v4849_v8 }
 0x4db   :  { %1079 = vmatprep.subr.mxu1 %v4855_v9 }
 0x4dc   :  { %1080 = vmatpush1.msra.mxu1 %v4864_v10 }
 0x4dd   :  { %1081 = vmatprep.subr.mxu1 %v4870_v11 }
 0x4de   :  { %1082 = vmatpush1.msra.mxu1 %v4876_v12 }
 0x4df   :  { %3774 = vmatmul.mubr.msk.f32.vlgmr.msra.gmra.mxu1 %vm579_vm2, %v1048_v17  ;;  %4413 = vmatprep.subr.mxu1 %v6969_v1 }
 0x4e0   :  { %4414 = vmatpush3.msra.mxu1 %v5110_v59  ;;  %4421 = vmatprep.mubr.msk.f32.mxu1 %vm4729_vm0, %v6969_v1 }
 0x4e1   :  { %4415 = vmatprep.subr.mxu1 %v6969_v1 }
 0x4e2   :  { %4416 = vmatpush3.msra.mxu1 %v5115_v25 }
 0x4e3   :  { %4417 = vmatprep.subr.mxu1 %v6969_v1 }
 0x4e4   :  { %4418 = vmatpush3.msra.mxu1 %v5122_v50 }
 0x4e5   :  { %4419 = vmatprep.subr.mxu1 %v6969_v1 }
 0x4e6   :  { %4420 = vmatpush3.msra.mxu1 %v5129_v60 }
 0x4e7   :  { %1304 = vmatprep.subr.mxu1 %v5147_v4 }
 0x597   :  { %v3869_v3 = vpop.f32.mrf.mxu1 }
 0x599   :  { %v3870_v13 = vpop.f32.mrf.mxu1 }
 0x59a   :  { %v5453_v22 = vadd.f32 %v3870_v13, %v3869_v3  ;;  %v6986_v3 = vld [vmem:[#allocation44_spill] sm:$0xff] }
 0x59c   :  { %6985 = vst [vmem:[#allocation60_spill] sm:$0xff] %v5453_v22 }
 0x59f   :  { %v1117_v23 = vpop.f32.mrf.mxu1 }
 0x5a0   :  { %v1122_v27 = vmul.f32 %v1117_v23, %v5091_v63 }
 0x5a1   :  { %v1119_v24 = vpop.f32.mrf.mxu1 }
 0x5a2   :  { %v1123_v26 = vmul.f32 %v1119_v24, %v5089_v62  ;;  %v6987_v24 = vld [vmem:[#allocation11_spill] sm:$0xff] }
 0x5a4   :  { %1188 = vmatprep.mubr.f32.mxu0 %v1123_v26 }
 0x5a5   :  { %1189 = vmatmul.mubr.f32.vlgmr.msra.gmra.mxu0 %v1122_v27 }
 0x5a6   :  { %3913 = vmatpush3.msra.mxu0 %v5236_v58 }
 0x5a7   :  { %3914 = vmatprep.subr.mxu0 %v5241_v56 }
 0x5a8   :  { %3915 = vmatpush3.msra.mxu0 %v5247_v44 }
 0x5a9   :  { %3916 = vmatprep.subr.mxu0 %v5253_v0 }
 0x5aa   :  { %3917 = vmatpush3.msra.mxu0 %v5259_v47 }
 0x5ab   :  { %3918 = vmatprep.subr.mxu0 %v5265_v61 }
 0x5ac   :  { %3919 = vmatpush3.msra.mxu0 %v5271_v14 }
 0x5ad   :  { %3920 = vmatprep.subr.mxu0 %v5277_v43 }
 0x5ae   :  { %3921 = vmatpush3.msra.mxu0 %v5283_v20 }
 0x5af   :  { %3922 = vmatprep.subr.mxu0 %v5289_v57 }
 0x5b0   :  { %3923 = vmatpush3.msra.mxu0 %v5295_v55 }
 0x5b1   :  { %3924 = vmatprep.subr.mxu0 %v5301_v54 }
 0x5b2   :  { %3925 = vmatpush3.msra.mxu0 %v5307_v53 }
 0x5b3   :  { %3926 = vmatprep.subr.mxu0 %v5313_v52 }
 0x5b4   :  { %3927 = vmatpush3.msra.mxu0 %v5319_v49 }
 0x5b5   :  { %3928 = vmatprep.subr.mxu0 %v5325_v48 }
 0x5b6   :  { %3929 = vmatpush3.msra.mxu0 %v5331_v46 }
 0x5b7   :  { %3930 = vmatprep.subr.mxu0 %v5337_v45 }
 0x5b8   :  { %3931 = vmatpush3.msra.mxu0 %v5343_v42 }
 0x5b9   :  { %3932 = vmatprep.subr.mxu0 %v5349_v41 }
 0x5ba   :  { %3933 = vmatpush3.msra.mxu0 %v5355_v40 }
 0x5bb   :  { %3934 = vmatprep.subr.mxu0 %v5361_v39 }
 0x5bc   :  { %3935 = vmatpush3.msra.mxu0 %v5367_v38 }
 0x5bd   :  { %3936 = vmatprep.subr.mxu0 %v5373_v37 }
 0x5be   :  { %3937 = vmatpush3.msra.mxu0 %v5379_v36 }
 0x5bf   :  { %3938 = vmatprep.subr.mxu0 %v5385_v35 }
 0x5c0   :  { %3939 = vmatpush3.msra.mxu0 %v5393_v34 }
 0x5c1   :  { %3940 = vmatprep.subr.mxu0 %v5399_v33 }
 0x5c2   :  { %3941 = vmatpush3.msra.mxu0 %v5405_v32 }
 0x5c3   :  { %3942 = vmatprep.subr.mxu0 %v5411_v31 }
 0x5c4   :  { %3943 = vmatpush3.msra.mxu0 %v5417_v30 }
 0x5c5   :  { %1691 = vmatprep.subr.mxu0 %v5147_v4  ;;  %v6988_v4 = vld [vmem:[#allocation46_spill] sm:$0xff] }
 0x665   :  { %v3904_v28 = vpop.f32.mrf.mxu0 }
 0x667   :  { %v3905_v29 = vpop.f32.mrf.mxu0 }
 0x668   :  { %v3906_v51 = vadd.f32 %v3905_v29, %v3904_v28  ;;  %v6989_v28 = vld [vmem:[#allocation47_spill] sm:$0xff]  ;;  %v6990_v29 = vld [vmem:[#allocation48_spill] sm:$0xff] }
 0x66a   :  { %v1194_v17 = vmul.f32 %v3906_v51, %v5097_v18  ;;  %v6991_v51 = vld [vmem:[#allocation49_spill] sm:$0xff] }
 0x66c   :  { %v1195_v13 = vadd.f32 %v1194_v17, %v6986_v3 }
 0x66e   :  { %v1196_v23 = vsel %vm579_vm2, %v1195_v13, -inf }
 0x66f   :  { %1197 = vmax.xlane.f32.xlu1 %v1196_v23 }
 0x680   :  { %1434 = vrot.lane.b32.xlu1 %v6987_v24, %s4732_s23 }
 0x6f8   :  { %v1198_v26 = vpop.xlane.xlu1 %1197 }
 0x6f9   :  { %v1199_v27 = vsub.f32 %v1195_v13, %v1198_v26 }
 0x6fb   :  { %v1200_v22 = vmul.f32 1.442695, %v1199_v27 }
 0x6fc   :  { %v1435_v27 = vpop.permute.xlu1 %1434 }
 0x6fd   :  { %4519 = vpow2.f32 %v1200_v22  ;;  %v6992_v22 = vld [vmem:[#allocation8_spill] sm:$0xff] }
 0x70a   :  { %v4520_v15 = vpop.eup %4519 }
 0x70b   :  { %4422 = vmatmul.mubr.msk.f32.vlgmr.msra.gmra.mxu1 %vm579_vm2, %v4520_v15 }
 0x70c   :  { %1305 = vmatpush1.msra.mxu1 %v6988_v4  ;;  %1344 = vmatprep.mubr.f32.mxu1 %v6969_v1 }
 0x70d   :  { %1306 = vmatprep.subr.mxu1 %v6989_v28 }
 0x70e   :  { %1307 = vmatpush1.msra.mxu1 %v5164_v5 }
 0x70f   :  { %1308 = vmatprep.subr.mxu1 %v5170_v16 }
 0x710   :  { %1309 = vmatpush1.msra.mxu1 %v5175_v19 }
 0x711   :  { %1310 = vmatprep.subr.mxu1 %v6990_v29 }
 0x712   :  { %1311 = vmatpush1.msra.mxu1 %v6991_v51 }
 0x713   :  { %1462 = vmatprep.subr.mxu1 %v6992_v22  ;;  %v6995_v22 = vld [vmem:[#allocation13_spill] sm:$0xff] }
 0x7cb   :  { %v1271_v17 = vpop.f32.mrf.mxu1 }
 0x7cc   :  { %v1272_v13 = vadd.f32 1e-30, %v1271_v17  ;;  %v7001_v17 = vld [vmem:[#allocation19_spill] sm:$0xff] }
 0x7cd   :  { %v4423_v23 = vpop.f32.mrf.mxu1 }
 0x7ce   :  { %4521 = vrcp.f32 %v1272_v13  ;;  %v7003_v13 = vld [vmem:[#allocation21_spill] sm:$0xff]  ;;  %v7004_v23 = vld [vmem:[#allocation22_spill] sm:$0xff] }
 0x7db   :  { %v4522_v24 = vpop.eup %4521 }
 0x7dc   :  { %v1276_v26 = vmul.f32 %v4522_v24, %v4520_v15  ;;  %v6993_v15 = vld [vmem:[#allocation9_spill] sm:$0xff]  ;;  %v7005_v24 = vld [vmem:[#allocation23_spill] sm:$0xff] }
 0x7de   :  { %3776 = vmatmul.mubr.msk.f32.vlgmr.msra.gmra.mxu1 %vm579_vm2, %v1276_v26  ;;  %v7006_v26 = vld [vmem:[#allocation24_spill] sm:$0xff] }
 0x7df   :  { %1463 = vmatpush1.msra.mxu1 %v4838_v6  ;;  %1502 = vmatprep.mubr.f32.mxu1 %v6969_v1  ;;  %v6994_v6 = vld [vmem:[#allocation12_spill] sm:$0xff] }
 0x7e0   :  { %1464 = vmatprep.subr.mxu1 %v4843_v7  ;;  %v6996_v7 = vld [vmem:[#allocation14_spill] sm:$0xff] }
 0x7e1   :  { %1465 = vmatpush1.msra.mxu1 %v4849_v8  ;;  %v6997_v8 = vld [vmem:[#allocation15_spill] sm:$0xff] }
 0x7e2   :  { %1466 = vmatprep.subr.mxu1 %v4855_v9  ;;  %v6998_v9 = vld [vmem:[#allocation16_spill] sm:$0xff] }
 0x7e3   :  { %1467 = vmatpush1.msra.mxu1 %v4864_v10  ;;  %v6999_v10 = vld [vmem:[#allocation17_spill] sm:$0xff] }
 0x7e4   :  { %1468 = vmatprep.subr.mxu1 %v4870_v11  ;;  %v7000_v11 = vld [vmem:[#allocation18_spill] sm:$0xff] }
 0x7e5   :  { %1469 = vmatpush1.msra.mxu1 %v4876_v12  ;;  %v7002_v12 = vld [vmem:[#allocation20_spill] sm:$0xff] }
 0x7e6   :  { %3777 = vmatmul.mubr.msk.f32.vlgmr.msra.gmra.mxu1 %vm579_vm2, %v1435_v27  ;;  %3947 = vmatprep.subr.mxu1 %v6993_v15  ;;  %v7007_v27 = vld [vmem:[#allocation25_spill] sm:$0xff]  ;;  %v7008_v15 = vld [vmem:[#allocation26_spill] sm:$0xff] }
 0x7e7   :  { %3948 = vmatpush3.msra.mxu1 %v6994_v6  ;;  %v7009_v6 = vld [vmem:[#allocation27_spill] sm:$0xff] }
 0x7e8   :  { %3949 = vmatprep.subr.mxu1 %v6995_v22  ;;  %v7010_v22 = vld [vmem:[#allocation28_spill] sm:$0xff] }
 0x7e9   :  { %3950 = vmatpush3.msra.mxu1 %v6996_v7  ;;  %v7011_v7 = vld [vmem:[#allocation29_spill] sm:$0xff] }
 0x7ea   :  { %3951 = vmatprep.subr.mxu1 %v6997_v8  ;;  %v7012_v8 = vld [vmem:[#allocation30_spill] sm:$0xff] }
 0x7eb   :  { %3952 = vmatpush3.msra.mxu1 %v6998_v9  ;;  %v7013_v9 = vld [vmem:[#allocation31_spill] sm:$0xff] }
 0x7ec   :  { %3953 = vmatprep.subr.mxu1 %v6999_v10  ;;  %v7014_v10 = vld [vmem:[#allocation32_spill] sm:$0xff] }
 0x7ed   :  { %3954 = vmatpush3.msra.mxu1 %v7000_v11  ;;  %v7015_v11 = vld [vmem:[#allocation33_spill] sm:$0xff] }
 0x7ee   :  { %3955 = vmatprep.subr.mxu1 %v7001_v17  ;;  %v7016_v17 = vld [vmem:[#allocation34_spill] sm:$0xff] }
 0x7ef   :  { %3956 = vmatpush3.msra.mxu1 %v7002_v12  ;;  %v7017_v12 = vld [vmem:[#allocation35_spill] sm:$0xff] }
 0x7f0   :  { %3957 = vmatprep.subr.mxu1 %v7003_v13  ;;  %v7018_v13 = vld [vmem:[#allocation36_spill] sm:$0xff] }
 0x7f1   :  { %3958 = vmatpush3.msra.mxu1 %v7004_v23  ;;  %v7019_v23 = vld [vmem:[#allocation37_spill] sm:$0xff] }
 0x7f2   :  { %3959 = vmatprep.subr.mxu1 %v7005_v24  ;;  %v7020_v24 = vld [vmem:[#allocation38_spill] sm:$0xff] }
 0x7f3   :  { %3960 = vmatpush3.msra.mxu1 %v7006_v26  ;;  %v7021_v26 = vld [vmem:[#allocation39_spill] sm:$0xff] }
 0x7f4   :  { %3961 = vmatprep.subr.mxu1 %v7007_v27  ;;  %v7022_v27 = vld [vmem:[#allocation40_spill] sm:$0xff] }
 0x7f5   :  { %3962 = vmatpush3.msra.mxu1 %v7008_v15  ;;  %v7023_v15 = vld [vmem:[#allocation41_spill] sm:$0xff] }
 0x7f6   :  { %3963 = vmatprep.subr.mxu1 %v7009_v6  ;;  %v7024_v6 = vld [vmem:[#allocation42_spill] sm:$0xff] }
 0x7f7   :  { %3964 = vmatpush3.msra.mxu1 %v7010_v22 }
 0x7f8   :  { %3965 = vmatprep.subr.mxu1 %v7011_v7 }
 0x7f9   :  { %3966 = vmatpush3.msra.mxu1 %v7012_v8 }
 0x7fa   :  { %3967 = vmatprep.subr.mxu1 %v7013_v9 }
 0x7fb   :  { %3968 = vmatpush3.msra.mxu1 %v7014_v10 }
 0x7fc   :  { %3969 = vmatprep.subr.mxu1 %v7015_v11 }
 0x7fd   :  { %3970 = vmatpush3.msra.mxu1 %v7016_v17 }
 0x7fe   :  { %3971 = vmatprep.subr.mxu1 %v7017_v12 }
 0x7ff   :  { %3972 = vmatpush3.msra.mxu1 %v7018_v13  ;;  %v5562_v13 = vld [vmem:[%s6733_s4 + $0x38] sm:$0xff] }
 0x800   :  { %3973 = vmatprep.subr.mxu1 %v7019_v23  ;;  %v7025_v23 = vld [vmem:[#allocation50_spill] sm:$0xff] }
 0x801   :  { %3974 = vmatpush3.msra.mxu1 %v7020_v24 }
 0x802   :  { %3975 = vmatprep.subr.mxu1 %v7021_v26 }
 0x803   :  { %3976 = vmatpush3.msra.mxu1 %v7022_v27 }
 0x804   :  { %3977 = vmatprep.subr.mxu1 %v7023_v15 }
 0x805   :  { %3978 = vmatpush3.msra.mxu1 %v7024_v6 }
 0x806   :  { %4424 = vmatprep.subr.mxu1 %v6969_v1 }
 0x89e   :  { %v1346_v22 = vpop.f32.mrf.mxu1 }
 0x89f   :  { %v1351_v9 = vmul.f32 %v1346_v22, %v5427_v21 }
 0x8a0   :  { %v1348_v7 = vpop.f32.mrf.mxu1 }
 0x8a1   :  { %v1352_v8 = vmul.f32 %v1348_v7, %v5429_v2 }
 0x8a3   :  { %1417 = vmatprep.mubr.f32.mxu0 %v1352_v8 }
 0x8a4   :  { %1418 = vmatmul.mubr.f32.vlgmr.msra.gmra.mxu0 %v1351_v9 }
 0x8a5   :  { %1692 = vmatpush1.msra.mxu0 %v6988_v4  ;;  %1731 = vmatprep.mubr.f32.mxu0 %v6969_v1 }
 0x8a6   :  { %v1504_v10 = vpop.f32.mrf.mxu1  ;;  %1693 = vmatprep.subr.mxu0 %v6989_v28 }
 0x8a7   :  { %1694 = vmatpush1.msra.mxu0 %v5164_v5  ;;  %v1509_v12 = vmul.f32 %v1504_v10, %v5091_v63 }
 0x8a8   :  { %v1506_v11 = vpop.f32.mrf.mxu1  ;;  %1695 = vmatprep.subr.mxu0 %v5170_v16 }
 0x8a9   :  { %v1510_v17 = vmul.f32 %v1506_v11, %v5089_v62  ;;  %1696 = vmatpush1.msra.mxu0 %v5175_v19 }
 0x8aa   :  { %1697 = vmatprep.subr.mxu0 %v6990_v29 }
 0x8ab   :  { %1575 = vmatprep.mubr.f32.mxu1 %v1510_v17  ;;  %1698 = vmatpush1.msra.mxu0 %v6991_v51  ;;  %v5615_v17 = vld [vmem:[%s6733_s4 + $0x30] sm:$0xff] }
 0x8ac   :  { %1576 = vmatmul.mubr.f32.vlgmr.msra.gmra.mxu1 %v1509_v12  ;;  %1848 = vmatprep.subr.mxu0 %v5562_v13  ;;  %v5622_v12 = vld [vmem:[%s6733_s4 + $0x28] sm:$0xff] }
 0x8ad   :  { %4425 = vmatpush3.msra.mxu1 %v5110_v59  ;;  %4432 = vmatprep.mubr.msk.f32.mxu1 %vm4729_vm0, %v6969_v1 }
 0x8ae   :  { %4426 = vmatprep.subr.mxu1 %v6969_v1 }
 0x8af   :  { %4427 = vmatpush3.msra.mxu1 %v5115_v25 }
 0x8b0   :  { %4428 = vmatprep.subr.mxu1 %v6969_v1 }
 0x8b1   :  { %4429 = vmatpush3.msra.mxu1 %v5122_v50 }
 0x8b2   :  { %4430 = vmatprep.subr.mxu1 %v6969_v1 }
 0x8b3   :  { %4431 = vmatpush3.msra.mxu1 %v5129_v60 }
 0x8b4   :  { %3987 = vmatprep.subr.mxu1 %v7025_v23 }
 0x96c   :  { %v3979_v24 = vpop.f32.mrf.mxu1 }
 0x96e   :  { %v3980_v26 = vpop.f32.mrf.mxu1 }
 0x96f   :  { %v3981_v59 = vadd.f32 %v3980_v26, %v3979_v24  ;;  %v5628_v24 = vld [vmem:[%s6733_s4 + $0x20] sm:$0xff]  ;;  %v5634_v26 = vld [vmem:[%s6733_s4 + $0x18] sm:$0xff] }
 0x971   :  { %v1581_v27 = vmul.f32 %v3981_v59, %v5097_v18  ;;  %v5640_v59 = vld [vmem:[%s6733_s4 + $0x10] sm:$0xff] }
 0x973   :  { %v1582_v15 = vadd.f32 %v1581_v27, %v6986_v3  ;;  %v5646_v27 = vld [vmem:[%s6733_s4 + $0x8] sm:$0xff] }
 0x975   :  { %v1583_v6 = vsel %vm579_vm2, %v1582_v15, -inf }
 0x976   :  { %1584 = vmax.xlane.f32.xlu1 %v1583_v6  ;;  %v5652_v6 = vld [vmem:[%s6733_s4] sm:$0xff] }
 0x9ff   :  { %v1585_v25 = vpop.xlane.xlu1 %1584 }
 0xa00   :  { %v1586_v22 = vsub.f32 %v1582_v15, %v1585_v25  ;;  %v1821_v15 = vpop.permute.xlu0 %1820  ;;  %v5659_v25 = vld [vmem:[%s6734_s5 + $0xf8] sm:$0xff] }
 0xa02   :  { %v1587_v7 = vmul.f32 1.442695, %v1586_v22  ;;  %v5665_v22 = vld [vmem:[%s6734_s5 + $0x78] sm:$0xff] }
 0xa04   :  { %4523 = vpow2.f32 %v1587_v7  ;;  %v5671_v7 = vld [vmem:[%s6734_s5 + $0xf0] sm:$0xff] }
 0xa05   :  { %7026 = vst [vmem:[#allocation44_spill] sm:$0xff] %v5671_v7 }
 0xa11   :  { %v4524_v50 = vpop.eup %4523 }
 0xa12   :  { %4433 = vmatmul.mubr.msk.f32.vlgmr.msra.gmra.mxu1 %vm579_vm2, %v4524_v50 }
 0xa13   :  { %3988 = vmatpush3.msra.mxu1 %v5236_v58 }
 0xa14   :  { %3989 = vmatprep.subr.mxu1 %v5241_v56 }
 0xa15   :  { %3990 = vmatpush3.msra.mxu1 %v5247_v44 }
 0xa16   :  { %3991 = vmatprep.subr.mxu1 %v5253_v0 }
 0xa17   :  { %3992 = vmatpush3.msra.mxu1 %v5259_v47 }
 0xa18   :  { %3993 = vmatprep.subr.mxu1 %v5265_v61 }
 0xa19   :  { %3994 = vmatpush3.msra.mxu1 %v5271_v14 }
 0xa1a   :  { %3995 = vmatprep.subr.mxu1 %v5277_v43 }
 0xa1b   :  { %3996 = vmatpush3.msra.mxu1 %v5283_v20 }
 0xa1c   :  { %3997 = vmatprep.subr.mxu1 %v5289_v57 }
 0xa1d   :  { %3998 = vmatpush3.msra.mxu1 %v5295_v55 }
 0xa1e   :  { %3999 = vmatprep.subr.mxu1 %v5301_v54 }
 0xa1f   :  { %4000 = vmatpush3.msra.mxu1 %v5307_v53 }
 0xa20   :  { %4001 = vmatprep.subr.mxu1 %v5313_v52 }
 0xa21   :  { %4002 = vmatpush3.msra.mxu1 %v5319_v49 }
 0xa22   :  { %4003 = vmatprep.subr.mxu1 %v5325_v48 }
 0xa23   :  { %4004 = vmatpush3.msra.mxu1 %v5331_v46 }
 0xa24   :  { %4005 = vmatprep.subr.mxu1 %v5337_v45 }
 0xa25   :  { %4006 = vmatpush3.msra.mxu1 %v5343_v42 }
 0xa26   :  { %4007 = vmatprep.subr.mxu1 %v5349_v41 }
 0xa27   :  { %4008 = vmatpush3.msra.mxu1 %v5355_v40 }
 0xa28   :  { %4009 = vmatprep.subr.mxu1 %v5361_v39 }
 0xa29   :  { %4010 = vmatpush3.msra.mxu1 %v5367_v38 }
 0xa2a   :  { %4011 = vmatprep.subr.mxu1 %v5373_v37 }
 0xa2b   :  { %4012 = vmatpush3.msra.mxu1 %v5379_v36 }
 0xa2c   :  { %4013 = vmatprep.subr.mxu1 %v5385_v35 }
 0xa2d   :  { %4014 = vmatpush3.msra.mxu1 %v5393_v34 }
 0xa2e   :  { %4015 = vmatprep.subr.mxu1 %v5399_v33 }
 0xa2f   :  { %4016 = vmatpush3.msra.mxu1 %v5405_v32 }
 0xa30   :  { %4017 = vmatprep.subr.mxu1 %v5411_v31 }
 0xa31   :  { %4018 = vmatpush3.msra.mxu1 %v5417_v30 }
 0xa32   :  { %4435 = vmatprep.subr.mxu1 %v6969_v1 }
 0xad2   :  { %v1658_v60 = vpop.f32.mrf.mxu1 }
 0xad3   :  { %v1659_v8 = vadd.f32 1e-30, %v1658_v60  ;;  %v5683_v60 = vld [vmem:[%s6734_s5 + $0xe8] sm:$0xff] }
 0xad4   :  { %v4434_v9 = vpop.f32.mrf.mxu1  ;;  %7028 = vst [vmem:[#allocation46_spill] sm:$0xff] %v5683_v60 }
 0xad5   :  { %4525 = vrcp.f32 %v1659_v8  ;;  %v5689_v8 = vld [vmem:[%s6734_s5 + $0x68] sm:$0xff]  ;;  %v5695_v9 = vld [vmem:[%s6734_s5 + $0xe0] sm:$0xff] }
 0xad6   :  { %7029 = vst [vmem:[#allocation47_spill] sm:$0xff] %v5689_v8  ;;  %7030 = vst [vmem:[#allocation48_spill] sm:$0xff] %v5695_v9 }
 0xae2   :  { %v4526_v10 = vpop.eup %4525 }
 0xae3   :  { %v1663_v11 = vmul.f32 %v4526_v10, %v4524_v50  ;;  %v5677_v50 = vld [vmem:[%s6734_s5 + $0x70] sm:$0xff]  ;;  %v5701_v10 = vld [vmem:[%s6734_s5 + $0x60] sm:$0xff] }
 0xae4   :  { %7027 = vst [vmem:[#allocation11_spill] sm:$0xff] %v5677_v50  ;;  %7031 = vst [vmem:[#allocation49_spill] sm:$0xff] %v5701_v10 }
 0xae5   :  { %3779 = vmatmul.mubr.msk.f32.vlgmr.msra.gmra.mxu0 %vm579_vm2, %v1663_v11  ;;  %v5707_v11 = vld [vmem:[%s6734_s5 + $0xd8] sm:$0xff] }
 0xae6   :  { %1849 = vmatpush1.msra.mxu0 %v5615_v17  ;;  %1888 = vmatprep.mubr.f32.mxu0 %v6969_v1  ;;  %7032 = vst [vmem:[#allocation8_spill] sm:$0xff] %v5707_v11 }
 0xae7   :  { %1850 = vmatprep.subr.mxu0 %v5622_v12 }
 0xae8   :  { %1851 = vmatpush1.msra.mxu0 %v5628_v24 }
 0xae9   :  { %1852 = vmatprep.subr.mxu0 %v5634_v26 }
 0xaea   :  { %1853 = vmatpush1.msra.mxu0 %v5640_v59 }
 0xaeb   :  { %1854 = vmatprep.subr.mxu0 %v5646_v27 }
 0xaec   :  { %1855 = vmatpush1.msra.mxu0 %v5652_v6 }
 0xaed   :  { %3780 = vmatmul.mubr.msk.f32.vlgmr.msra.gmra.mxu0 %vm579_vm2, %v1821_v15  ;;  %4022 = vmatprep.subr.mxu0 %v5659_v25  ;;  %v5713_v15 = vld [vmem:[%s6734_s5 + $0x58] sm:$0xff] }
 0xaee   :  { %4023 = vmatpush3.msra.mxu0 %v5665_v22  ;;  %7033 = vst [vmem:[#allocation9_spill] sm:$0xff] %v5713_v15 }
 0xaef   :  { %4024 = vmatprep.subr.mxu0 %v5671_v7 }
 0xaf0   :  { %4025 = vmatpush3.msra.mxu0 %v5677_v50 }
 0xaf1   :  { %4026 = vmatprep.subr.mxu0 %v5683_v60 }
 0xaf2   :  { %4027 = vmatpush3.msra.mxu0 %v5689_v8 }
 0xaf3   :  { %4028 = vmatprep.subr.mxu0 %v5695_v9  ;;  %v5719_v9 = vld [vmem:[%s6734_s5 + $0xd0] sm:$0xff] }
 0xaf4   :  { %4029 = vmatpush3.msra.mxu0 %v5701_v10  ;;  %7034 = vst [vmem:[#allocation12_spill] sm:$0xff] %v5719_v9  ;;  %v5725_v10 = vld [vmem:[%s6734_s5 + $0x50] sm:$0xff] }
 0xaf5   :  { %4030 = vmatprep.subr.mxu0 %v5707_v11  ;;  %7035 = vst [vmem:[#allocation13_spill] sm:$0xff] %v5725_v10  ;;  %v5731_v11 = vld [vmem:[%s6734_s5 + $0xc8] sm:$0xff] }
 0xaf6   :  { %4031 = vmatpush3.msra.mxu0 %v5713_v15  ;;  %7036 = vst [vmem:[#allocation14_spill] sm:$0xff] %v5731_v11  ;;  %v5737_v15 = vld [vmem:[%s6734_s5 + $0x48] sm:$0xff] }
 0xaf7   :  { %4032 = vmatprep.subr.mxu0 %v5719_v9  ;;  %7037 = vst [vmem:[#allocation15_spill] sm:$0xff] %v5737_v15  ;;  %v5743_v9 = vld [vmem:[%s6734_s5 + $0xc0] sm:$0xff] }
 0xaf8   :  { %4033 = vmatpush3.msra.mxu0 %v5725_v10  ;;  %7038 = vst [vmem:[#allocation16_spill] sm:$0xff] %v5743_v9  ;;  %v5749_v10 = vld [vmem:[%s6734_s5 + $0x40] sm:$0xff] }
 0xaf9   :  { %4034 = vmatprep.subr.mxu0 %v5731_v11  ;;  %7039 = vst [vmem:[#allocation17_spill] sm:$0xff] %v5749_v10  ;;  %v5755_v11 = vld [vmem:[%s6734_s5 + $0xb8] sm:$0xff] }
 0xafa   :  { %4035 = vmatpush3.msra.mxu0 %v5737_v15  ;;  %7040 = vst [vmem:[#allocation18_spill] sm:$0xff] %v5755_v11  ;;  %v5761_v15 = vld [vmem:[%s6734_s5 + $0x38] sm:$0xff] }
 0xafb   :  { %4036 = vmatprep.subr.mxu0 %v5743_v9  ;;  %7041 = vst [vmem:[#allocation19_spill] sm:$0xff] %v5761_v15  ;;  %v5767_v9 = vld [vmem:[%s6734_s5 + $0xb0] sm:$0xff] }
 0xafc   :  { %4037 = vmatpush3.msra.mxu0 %v5749_v10  ;;  %7042 = vst [vmem:[#allocation20_spill] sm:$0xff] %v5767_v9  ;;  %v5773_v10 = vld [vmem:[%s6734_s5 + $0x30] sm:$0xff] }
 0xafd   :  { %4038 = vmatprep.subr.mxu0 %v5755_v11  ;;  %7043 = vst [vmem:[#allocation21_spill] sm:$0xff] %v5773_v10  ;;  %v5779_v11 = vld [vmem:[%s6734_s5 + $0xa8] sm:$0xff] }
 0xafe   :  { %4039 = vmatpush3.msra.mxu0 %v5761_v15  ;;  %7044 = vst [vmem:[#allocation22_spill] sm:$0xff] %v5779_v11  ;;  %v5785_v15 = vld [vmem:[%s6734_s5 + $0x28] sm:$0xff] }
 0xaff   :  { %4040 = vmatprep.subr.mxu0 %v5767_v9  ;;  %7045 = vst [vmem:[#allocation23_spill] sm:$0xff] %v5785_v15  ;;  %v5791_v9 = vld [vmem:[%s6734_s5 + $0xa0] sm:$0xff] }
 0xb00   :  { %4041 = vmatpush3.msra.mxu0 %v5773_v10  ;;  %7046 = vst [vmem:[#allocation24_spill] sm:$0xff] %v5791_v9  ;;  %v5797_v10 = vld [vmem:[%s6734_s5 + $0x20] sm:$0xff] }
 0xb01   :  { %4042 = vmatprep.subr.mxu0 %v5779_v11  ;;  %7047 = vst [vmem:[#allocation25_spill] sm:$0xff] %v5797_v10  ;;  %v5803_v11 = vld [vmem:[%s6734_s5 + $0x98] sm:$0xff] }
 0xb02   :  { %4043 = vmatpush3.msra.mxu0 %v5785_v15  ;;  %7048 = vst [vmem:[#allocation26_spill] sm:$0xff] %v5803_v11  ;;  %v5809_v15 = vld [vmem:[%s6734_s5 + $0x18] sm:$0xff] }
 0xb03   :  { %4044 = vmatprep.subr.mxu0 %v5791_v9  ;;  %7049 = vst [vmem:[#allocation27_spill] sm:$0xff] %v5809_v15  ;;  %v5815_v9 = vld [vmem:[%s6734_s5 + $0x90] sm:$0xff] }
 0xb04   :  { %4045 = vmatpush3.msra.mxu0 %v5797_v10  ;;  %7050 = vst [vmem:[#allocation28_spill] sm:$0xff] %v5815_v9  ;;  %v5821_v10 = vld [vmem:[%s6734_s5 + $0x10] sm:$0xff] }
 0xb05   :  { %4046 = vmatprep.subr.mxu0 %v5803_v11  ;;  %7051 = vst [vmem:[#allocation29_spill] sm:$0xff] %v5821_v10  ;;  %v5827_v11 = vld [vmem:[%s6734_s5 + $0x88] sm:$0xff] }
 0xb06   :  { %4047 = vmatpush3.msra.mxu0 %v5809_v15  ;;  %7052 = vst [vmem:[#allocation30_spill] sm:$0xff] %v5827_v11  ;;  %v5833_v15 = vld [vmem:[%s6734_s5 + $0x8] sm:$0xff] }
 0xb07   :  { %4048 = vmatprep.subr.mxu0 %v5815_v9  ;;  %7053 = vst [vmem:[#allocation31_spill] sm:$0xff] %v5833_v15  ;;  %v5839_v9 = vld [vmem:[%s6734_s5 + $0x80] sm:$0xff] }
 0xb08   :  { %4049 = vmatpush3.msra.mxu0 %v5821_v10  ;;  %7054 = vst [vmem:[#allocation32_spill] sm:$0xff] %v5839_v9  ;;  %v5845_v10 = vld [vmem:[%s6734_s5] sm:$0xff] }
 0xb09   :  { %4050 = vmatprep.subr.mxu0 %v5827_v11  ;;  %7055 = vst [vmem:[#allocation33_spill] sm:$0xff] %v5845_v10  ;;  %v5849_v11 = vpop.f32.mrf.mxu0 }
 0xb0a   :  { %4051 = vmatpush3.msra.mxu0 %v5833_v15  ;;  %7056 = vst [vmem:[#allocation34_spill] sm:$0xff] %v5849_v11 }
 0xb0b   :  { %4052 = vmatprep.subr.mxu0 %v5839_v9  ;;  %v5851_v8 = vpop.f32.mrf.mxu0  ;;  %v5858_v9 = vld [vmem:[%s6735_s6 + $0x18] sm:$0xff] }
 0xb0c   :  { %4053 = vmatpush3.msra.mxu0 %v5845_v10  ;;  %7057 = vst [vmem:[#allocation35_spill] sm:$0xff] %v5851_v8 }
 0xb0d   :  { %4062 = vmatprep.subr.mxu0 %v7025_v23 }
 0xba5   :  { %v1733_v15 = vpop.f32.mrf.mxu0 }
 0xba6   :  { %v1738_v7 = vmul.f32 %v1733_v15, %v5427_v21  ;;  %v5875_v15 = vld [vmem:[%s6735_s6 + $0x8] sm:$0xff] }
 0xba7   :  { %v1735_v60 = vpop.f32.mrf.mxu0  ;;  %7059 = vst [vmem:[#allocation37_spill] sm:$0xff] %v5875_v15 }
 0xba8   :  { %v1739_v50 = vmul.f32 %v1735_v60, %v5429_v2  ;;  %v5867_v60 = vld [vmem:[%s6735_s6 + $0x10] sm:$0xff] }
 0xba9   :  { %7058 = vst [vmem:[#allocation36_spill] sm:$0xff] %v5867_v60 }
 0xbaa   :  { %1804 = vmatprep.mubr.f32.mxu1 %v1739_v50 }
 0xbab   :  { %1805 = vmatmul.mubr.f32.vlgmr.msra.gmra.mxu1 %v1738_v7 }
 0xbac   :  { %4436 = vmatpush3.msra.mxu1 %v5858_v9  ;;  %4443 = vmatprep.mubr.msk.f32.mxu1 %vm4729_vm0, %v6969_v1 }
 0xbad   :  { %v1890_v11 = vpop.f32.mrf.mxu0  ;;  %4437 = vmatprep.subr.mxu1 %v6969_v1 }
 0xbae   :  { %4438 = vmatpush3.msra.mxu1 %v5867_v60  ;;  %v1895_v8 = vmul.f32 %v1890_v11, %v5091_v63  ;;  %v5883_v60 = vld [vmem:[%s6735_s6] sm:$0xff] }
 0xbaf   :  { %v1892_v7 = vpop.f32.mrf.mxu0  ;;  %4439 = vmatprep.subr.mxu1 %v6969_v1  ;;  %7060 = vst [vmem:[#allocation38_spill] sm:$0xff] %v5883_v60 }
 0xbb0   :  { %v1896_v50 = vmul.f32 %v1892_v7, %v5089_v62  ;;  %4440 = vmatpush3.msra.mxu1 %v5875_v15  ;;  %v7061_v7 = vld [vmem:[#allocation45_spill] sm:$0xff] }
 0xbb1   :  { %4441 = vmatprep.subr.mxu1 %v6969_v1 }
 0xbb2   :  { %1961 = vmatprep.mubr.f32.mxu0 %v1896_v50  ;;  %4442 = vmatpush3.msra.mxu1 %v5883_v60 }
 0xbb3   :  { %1962 = vmatmul.mubr.f32.vlgmr.msra.gmra.mxu0 %v1895_v8  ;;  %2077 = vmatprep.subr.mxu1 %v7061_v7 }
 0xbb4   :  { %4063 = vmatpush3.msra.mxu0 %v5236_v58 }
 0xbb5   :  { %4064 = vmatprep.subr.mxu0 %v5241_v56 }
 0xbb6   :  { %4065 = vmatpush3.msra.mxu0 %v5247_v44 }
 0xbb7   :  { %4066 = vmatprep.subr.mxu0 %v5253_v0 }
 0xbb8   :  { %4067 = vmatpush3.msra.mxu0 %v5259_v47 }
 0xbb9   :  { %4068 = vmatprep.subr.mxu0 %v5265_v61 }
 0xbba   :  { %4069 = vmatpush3.msra.mxu0 %v5271_v14 }
 0xbbb   :  { %4070 = vmatprep.subr.mxu0 %v5277_v43 }
 0xbbc   :  { %4071 = vmatpush3.msra.mxu0 %v5283_v20 }
 0xbbd   :  { %4072 = vmatprep.subr.mxu0 %v5289_v57 }
 0xbbe   :  { %4073 = vmatpush3.msra.mxu0 %v5295_v55 }
 0xbbf   :  { %4074 = vmatprep.subr.mxu0 %v5301_v54 }
 0xbc0   :  { %4075 = vmatpush3.msra.mxu0 %v5307_v53 }
 0xbc1   :  { %4076 = vmatprep.subr.mxu0 %v5313_v52 }
 0xbc2   :  { %4077 = vmatpush3.msra.mxu0 %v5319_v49 }
 0xbc3   :  { %4078 = vmatprep.subr.mxu0 %v5325_v48 }
 0xbc4   :  { %4079 = vmatpush3.msra.mxu0 %v5331_v46 }
 0xbc5   :  { %4080 = vmatprep.subr.mxu0 %v5337_v45 }
 0xbc6   :  { %4081 = vmatpush3.msra.mxu0 %v5343_v42 }
 0xbc7   :  { %4082 = vmatprep.subr.mxu0 %v5349_v41 }
 0xbc8   :  { %4083 = vmatpush3.msra.mxu0 %v5355_v40 }
 0xbc9   :  { %4084 = vmatprep.subr.mxu0 %v5361_v39 }
 0xbca   :  { %4085 = vmatpush3.msra.mxu0 %v5367_v38 }
 0xbcb   :  { %4086 = vmatprep.subr.mxu0 %v5373_v37 }
 0xbcc   :  { %4087 = vmatpush3.msra.mxu0 %v5379_v36 }
 0xbcd   :  { %4088 = vmatprep.subr.mxu0 %v5385_v35 }
 0xbce   :  { %4089 = vmatpush3.msra.mxu0 %v5393_v34  ;;  %v7062_v34 = vld [vmem:[#allocation10_spill] sm:$0xff] }
 0xbcf   :  { %4090 = vmatprep.subr.mxu0 %v5399_v33  ;;  %v255_v33 = vsub.s32 1, %v7062_v34 }
 0xbd0   :  { %4091 = vmatpush3.msra.mxu0 %v5405_v32 }
 0xbd1   :  { %4092 = vmatprep.subr.mxu0 %v5411_v31  ;;  %v4593_v31 = vld [vmem:[%s6732_s3] sm:$0x3f] }
 0xbd2   :  { %4093 = vmatpush3.msra.mxu0 %v5417_v30  ;;  %v256_v32 = vrot.slane %v4593_v31, %v255_v33  ;;  %v7063_v30 = vld [vmem:[#allocation59_spill] sm:$0xff] }
 0xbd3   :  { %4446 = vmatprep.subr.mxu0 %v6969_v1 }
 0xbd4   :  { %v5927_v37 = vadd.f32 %v7063_v30, %v256_v32 }
 0xbd6   :  { %7064 = vst [vmem:[#allocation39_spill] sm:$0xff] %v5927_v37 }
 0xc6b   :  { %v5943_v30 = vpop.f32.mrf.mxu1 }
 0xc6c   :  { %7065 = vst [vmem:[#allocation40_spill] sm:$0xff] %v5943_v30  ;;  %v7084_v30 = vld [vmem:[#allocation21_spill] sm:$0xff] }
 0xc6d   :  { %v5945_v31 = vpop.f32.mrf.mxu1 }
 0xc6e   :  { %7066 = vst [vmem:[#allocation41_spill] sm:$0xff] %v5945_v31  ;;  %v7083_v31 = vld [vmem:[#allocation20_spill] sm:$0xff] }
 0xc73   :  { %v4054_v8 = vpop.f32.mrf.mxu0 }
 0xc75   :  { %v4055_v11 = vpop.f32.mrf.mxu0 }
 0xc76   :  { %v4056_v50 = vadd.f32 %v4055_v11, %v4054_v8 }
 0xc78   :  { %v1967_v7 = vmul.f32 %v4056_v50, %v5097_v18 }
 0xc7a   :  { %v1968_v36 = vadd.f32 %v1967_v7, %v6986_v3  ;;  %v7073_v7 = vld [vmem:[#allocation8_spill] sm:$0xff] }
 0xc7c   :  { %v1969_v35 = vsel %vm579_vm2, %v1968_v36, -inf }
 0xc7d   :  { %1970 = vmax.xlane.f32.xlu0 %v1969_v35 }
 0xc93   :  { %2588 = vrot.lane.b32.xlu0 %v5927_v37, %s4730_s17 }
 0xc97   :  { %3361 = vrot.lane.b32.xlu0 %v5927_v37, %s4731_s18 }
 0xd06   :  { %v1971_v8 = vpop.xlane.xlu0 %1970 }
 0xd07   :  { %v1972_v11 = vsub.f32 %v1968_v36, %v1971_v8  ;;  %v7074_v8 = vld [vmem:[#allocation9_spill] sm:$0xff] }
 0xd09   :  { %v1973_v50 = vmul.f32 1.442695, %v1972_v11  ;;  %v7075_v11 = vld [vmem:[#allocation12_spill] sm:$0xff] }
 0xd0b   :  { %4527 = vpow2.f32 %v1973_v50  ;;  %v7076_v50 = vld [vmem:[#allocation13_spill] sm:$0xff] }
 0xd18   :  { %v4528_v35 = vpop.eup %4527 }
 0xd19   :  { %4444 = vmatmul.mubr.msk.f32.vlgmr.msra.gmra.mxu1 %vm579_vm2, %v4528_v35 }
 0xd1a   :  { %2078 = vmatpush1.msra.mxu1 %v6988_v4  ;;  %2117 = vmatprep.mubr.f32.mxu1 %v6969_v1 }
 0xd1b   :  { %2079 = vmatprep.subr.mxu1 %v6989_v28  ;;  %v7070_v28 = vld [vmem:[#allocation47_spill] sm:$0xff] }
 0xd1c   :  { %2080 = vmatpush1.msra.mxu1 %v5164_v5  ;;  %v7067_v5 = vld [vmem:[#allocation44_spill] sm:$0xff] }
 0xd1d   :  { %2081 = vmatprep.subr.mxu1 %v5170_v16  ;;  %v7068_v16 = vld [vmem:[#allocation11_spill] sm:$0xff] }
 0xd1e   :  { %2082 = vmatpush1.msra.mxu1 %v5175_v19  ;;  %v7069_v19 = vld [vmem:[#allocation46_spill] sm:$0xff] }
 0xd1f   :  { %2083 = vmatprep.subr.mxu1 %v6990_v29  ;;  %v7071_v29 = vld [vmem:[#allocation48_spill] sm:$0xff] }
 0xd20   :  { %2084 = vmatpush1.msra.mxu1 %v6991_v51  ;;  %v7072_v51 = vld [vmem:[#allocation49_spill] sm:$0xff] }
 0xd21   :  { %2233 = vmatprep.subr.mxu1 %v5562_v13 }
 0xdd9   :  { %v2044_v32 = vpop.f32.mrf.mxu1 }
 0xdda   :  { %v2045_v33 = vadd.f32 1e-30, %v2044_v32  ;;  %v7078_v32 = vld [vmem:[#allocation15_spill] sm:$0xff] }
 0xddb   :  { %v4445_v34 = vpop.f32.mrf.mxu1 }
 0xddc   :  { %4529 = vrcp.f32 %v2045_v33  ;;  %v7079_v33 = vld [vmem:[#allocation16_spill] sm:$0xff]  ;;  %v7080_v34 = vld [vmem:[#allocation17_spill] sm:$0xff] }
 0xde9   :  { %v4530_v36 = vpop.eup %4529 }
 0xdea   :  { %v2049_v4 = vmul.f32 %v4530_v36, %v4528_v35  ;;  %v7077_v35 = vld [vmem:[#allocation14_spill] sm:$0xff] }
 0xdeb   :  { %v7081_v36 = vld [vmem:[#allocation18_spill] sm:$0xff] }
 0xdec   :  { %3782 = vmatmul.mubr.msk.f32.vlgmr.msra.gmra.mxu1 %vm579_vm2, %v2049_v4  ;;  %v7082_v4 = vld [vmem:[#allocation19_spill] sm:$0xff] }
 0xded   :  { %2234 = vmatpush1.msra.mxu1 %v5615_v17  ;;  %2273 = vmatprep.mubr.f32.mxu1 %v6969_v1 }
 0xdee   :  { %2235 = vmatprep.subr.mxu1 %v5622_v12 }
 0xdef   :  { %2236 = vmatpush1.msra.mxu1 %v5628_v24 }
 0xdf0   :  { %2237 = vmatprep.subr.mxu1 %v5634_v26 }
 0xdf1   :  { %2238 = vmatpush1.msra.mxu1 %v5640_v59 }
 0xdf2   :  { %2239 = vmatprep.subr.mxu1 %v5646_v27 }
 0xdf3   :  { %2240 = vmatpush1.msra.mxu1 %v5652_v6 }
 0xdf4   :  { %3783 = vmatmul.mubr.msk.f32.vlgmr.msra.gmra.mxu1 %vm579_vm2, %v5927_v37  ;;  %4097 = vmatprep.subr.mxu1 %v5659_v25  ;;  %v7085_v37 = vld [vmem:[#allocation22_spill] sm:$0xff] }
 0xdf5   :  { %4098 = vmatpush3.msra.mxu1 %v5665_v22 }
 0xdf6   :  { %4099 = vmatprep.subr.mxu1 %v7067_v5 }
 0xdf7   :  { %4100 = vmatpush3.msra.mxu1 %v7068_v16 }
 0xdf8   :  { %4101 = vmatprep.subr.mxu1 %v7069_v19 }
 0xdf9   :  { %4102 = vmatpush3.msra.mxu1 %v7070_v28 }
 0xdfa   :  { %4103 = vmatprep.subr.mxu1 %v7071_v29 }
 0xdfb   :  { %4104 = vmatpush3.msra.mxu1 %v7072_v51 }
 0xdfc   :  { %4105 = vmatprep.subr.mxu1 %v7073_v7 }
 0xdfd   :  { %4106 = vmatpush3.msra.mxu1 %v7074_v8 }
 0xdfe   :  { %4107 = vmatprep.subr.mxu1 %v7075_v11  ;;  %v7086_v11 = vld [vmem:[#allocation23_spill] sm:$0xff] }
 0xdff   :  { %4108 = vmatpush3.msra.mxu1 %v7076_v50  ;;  %v7087_v50 = vld [vmem:[#allocation24_spill] sm:$0xff] }
 0xe00   :  { %4109 = vmatprep.subr.mxu1 %v7077_v35  ;;  %v7088_v35 = vld [vmem:[#allocation25_spill] sm:$0xff] }
 0xe01   :  { %4110 = vmatpush3.msra.mxu1 %v7078_v32  ;;  %v7089_v32 = vld [vmem:[#allocation26_spill] sm:$0xff] }
 0xe02   :  { %4111 = vmatprep.subr.mxu1 %v7079_v33  ;;  %v7090_v33 = vld [vmem:[#allocation27_spill] sm:$0xff] }
 0xe03   :  { %4112 = vmatpush3.msra.mxu1 %v7080_v34  ;;  %v7091_v34 = vld [vmem:[#allocation28_spill] sm:$0xff] }
 0xe04   :  { %4113 = vmatprep.subr.mxu1 %v7081_v36  ;;  %v7092_v36 = vld [vmem:[#allocation29_spill] sm:$0xff] }
 0xe05   :  { %4114 = vmatpush3.msra.mxu1 %v7082_v4  ;;  %v7093_v4 = vld [vmem:[#allocation30_spill] sm:$0xff] }
 0xe06   :  { %4115 = vmatprep.subr.mxu1 %v7083_v31  ;;  %v7094_v31 = vld [vmem:[#allocation31_spill] sm:$0xff] }
 0xe07   :  { %4116 = vmatpush3.msra.mxu1 %v7084_v30  ;;  %v7095_v30 = vld [vmem:[#allocation32_spill] sm:$0xff] }
 0xe08   :  { %4117 = vmatprep.subr.mxu1 %v7085_v37 }
 0xe09   :  { %4118 = vmatpush3.msra.mxu1 %v7086_v11 }
 0xe0a   :  { %4119 = vmatprep.subr.mxu1 %v7087_v50 }
 0xe0b   :  { %4120 = vmatpush3.msra.mxu1 %v7088_v35 }
 0xe0c   :  { %4121 = vmatprep.subr.mxu1 %v7089_v32 }
 0xe0d   :  { %4122 = vmatpush3.msra.mxu1 %v7090_v33 }
 0xe0e   :  { %4123 = vmatprep.subr.mxu1 %v7091_v34 }
 0xe0f   :  { %4124 = vmatpush3.msra.mxu1 %v7092_v36 }
 0xe10   :  { %4125 = vmatprep.subr.mxu1 %v7093_v4 }
 0xe11   :  { %4126 = vmatpush3.msra.mxu1 %v7094_v31 }
 0xe12   :  { %4127 = vmatprep.subr.mxu1 %v7095_v30  ;;  %v7096_v30 = vld [vmem:[#allocation36_spill] sm:$0xff] }
 0xe13   :  { %4128 = vmatpush3.msra.mxu1 %v5845_v10 }
 0xe14   :  { %4137 = vmatprep.subr.mxu1 %v7025_v23 }
 0xeac   :  { %v2119_v50 = vpop.f32.mrf.mxu1 }
 0xead   :  { %v2124_v33 = vmul.f32 %v2119_v50, %v5427_v21 }
 0xeae   :  { %v2121_v35 = vpop.f32.mrf.mxu1 }
 0xeaf   :  { %v2125_v32 = vmul.f32 %v2121_v35, %v5429_v2  ;;  %v6007_v35 = vld [vmem:[%s6737_s8 + $0x38] sm:$0xff] }
 0xeb0   :  { %7097 = vst [vmem:[#allocation42_spill] sm:$0xff] %v6007_v35 }
 0xeb1   :  { %2190 = vmatprep.mubr.f32.mxu0 %v2125_v32 }
 0xeb2   :  { %2191 = vmatmul.mubr.f32.vlgmr.msra.gmra.mxu0 %v2124_v33 }
 0xeb3   :  { %4447 = vmatpush3.msra.mxu0 %v5858_v9  ;;  %4454 = vmatprep.mubr.msk.f32.mxu0 %vm4729_vm0, %v6969_v1 }
 0xeb4   :  { %v2275_v31 = vpop.f32.mrf.mxu1  ;;  %4448 = vmatprep.subr.mxu0 %v6969_v1 }
 0xeb5   :  { %4449 = vmatpush3.msra.mxu0 %v7096_v30  ;;  %v2280_v50 = vmul.f32 %v2275_v31, %v5091_v63  ;;  %v6086_v31 = vld [vmem:[%s6737_s8] sm:$0xff] }
 0xeb6   :  { %v2277_v10 = vpop.f32.mrf.mxu1  ;;  %4450 = vmatprep.subr.mxu0 %v6969_v1 }
 0xeb7   :  { %v2281_v23 = vmul.f32 %v2277_v10, %v5089_v62  ;;  %4451 = vmatpush3.msra.mxu0 %v5875_v15  ;;  %v6080_v10 = vld [vmem:[%s6737_s8 + $0x8] sm:$0xff] }
 0xeb8   :  { %4452 = vmatprep.subr.mxu0 %v6969_v1 }
 0xeb9   :  { %2346 = vmatprep.mubr.f32.mxu1 %v2281_v23  ;;  %4453 = vmatpush3.msra.mxu0 %v5883_v60 }
 0xeba   :  { %2347 = vmatmul.mubr.f32.vlgmr.msra.gmra.mxu1 %v2280_v50  ;;  %2462 = vmatprep.subr.mxu0 %v6007_v35 }
 0xebb   :  { %4138 = vmatpush3.msra.mxu1 %v5236_v58 }
 0xebc   :  { %4139 = vmatprep.subr.mxu1 %v5241_v56 }
 0xebd   :  { %4140 = vmatpush3.msra.mxu1 %v5247_v44 }
 0xebe   :  { %4141 = vmatprep.subr.mxu1 %v5253_v0  ;;  %v6049_v0 = vld [vmem:[%s6737_s8 + $0x30] sm:$0xff] }
 0xebf   :  { %4142 = vmatpush3.msra.mxu1 %v5259_v47  ;;  %v6056_v47 = vld [vmem:[%s6737_s8 + $0x28] sm:$0xff] }
 0xec0   :  { %4143 = vmatprep.subr.mxu1 %v5265_v61  ;;  %v6062_v61 = vld [vmem:[%s6737_s8 + $0x20] sm:$0xff] }
 0xec1   :  { %4144 = vmatpush3.msra.mxu1 %v5271_v14  ;;  %v6068_v14 = vld [vmem:[%s6737_s8 + $0x18] sm:$0xff] }
 0xec2   :  { %4145 = vmatprep.subr.mxu1 %v5277_v43  ;;  %v6074_v43 = vld [vmem:[%s6737_s8 + $0x10] sm:$0xff] }
 0xec3   :  { %4146 = vmatpush3.msra.mxu1 %v5283_v20 }
 0xec4   :  { %4147 = vmatprep.subr.mxu1 %v5289_v57 }
 0xec5   :  { %4148 = vmatpush3.msra.mxu1 %v5295_v55 }
 0xec6   :  { %4149 = vmatprep.subr.mxu1 %v5301_v54 }
 0xec7   :  { %4150 = vmatpush3.msra.mxu1 %v5307_v53  ;;  %v7098_v53 = vld [vmem:[#allocation51_spill] sm:$0xff] }
 0xec8   :  { %4151 = vmatprep.subr.mxu1 %v5313_v52  ;;  %v7099_v52 = vld [vmem:[#allocation52_spill] sm:$0xff] }
 0xec9   :  { %4152 = vmatpush3.msra.mxu1 %v5319_v49  ;;  %v7100_v49 = vld [vmem:[#allocation53_spill] sm:$0xff] }
 0xeca   :  { %4153 = vmatprep.subr.mxu1 %v5325_v48  ;;  %v7101_v48 = vld [vmem:[#allocation54_spill] sm:$0xff] }
 0xecb   :  { %4154 = vmatpush3.msra.mxu1 %v5331_v46  ;;  %v7102_v46 = vld [vmem:[#allocation55_spill] sm:$0xff] }
 0xecc   :  { %4155 = vmatprep.subr.mxu1 %v5337_v45  ;;  %v7103_v45 = vld [vmem:[#allocation56_spill] sm:$0xff] }
 0xecd   :  { %4156 = vmatpush3.msra.mxu1 %v5343_v42  ;;  %v7104_v42 = vld [vmem:[#allocation57_spill] sm:$0xff] }
 0xece   :  { %4157 = vmatprep.subr.mxu1 %v5349_v41  ;;  %v7105_v41 = vld [vmem:[#allocation58_spill] sm:$0xff] }
 0xecf   :  { %4158 = vmatpush3.msra.mxu1 %v5355_v40 }
 0xed0   :  { %4159 = vmatprep.subr.mxu1 %v5361_v39 }
 0xed1   :  { %4160 = vmatpush3.msra.mxu1 %v5367_v38 }
 0xed2   :  { %4161 = vmatprep.subr.mxu1 %v7098_v53 }
 0xed3   :  { %4162 = vmatpush3.msra.mxu1 %v7099_v52 }
 0xed4   :  { %4163 = vmatprep.subr.mxu1 %v7100_v49 }
 0xed5   :  { %4164 = vmatpush3.msra.mxu1 %v7101_v48  ;;  %v2589_v48 = vpop.permute.xlu0 %2588 }
 0xed6   :  { %4165 = vmatprep.subr.mxu1 %v7102_v46  ;;  %v7108_v46 = vld [vmem:[#allocation12_spill] sm:$0xff] }
 0xed7   :  { %4166 = vmatpush3.msra.mxu1 %v7103_v45  ;;  %v7109_v45 = vld [vmem:[#allocation13_spill] sm:$0xff] }
 0xed8   :  { %4167 = vmatprep.subr.mxu1 %v7104_v42  ;;  %v7110_v42 = vld [vmem:[#allocation14_spill] sm:$0xff] }
 0xed9   :  { %4168 = vmatpush3.msra.mxu1 %v7105_v41  ;;  %v7111_v41 = vld [vmem:[#allocation15_spill] sm:$0xff] }
 0xeda   :  { %4457 = vmatprep.subr.mxu1 %v6969_v1 }
 0xf72   :  { %v6090_v32 = vpop.f32.mrf.mxu0 }
 0xf73   :  { %7106 = vst [vmem:[#allocation50_spill] sm:$0xff] %v6090_v32 }
 0xf74   :  { %v6092_v33 = vpop.f32.mrf.mxu0 }
 0xf75   :  { %7107 = vst [vmem:[#allocation45_spill] sm:$0xff] %v6092_v33 }
 0xf7a   :  { %v4129_v39 = vpop.f32.mrf.mxu1 }
 0xf7c   :  { %v4130_v38 = vpop.f32.mrf.mxu1 }
 0xf7d   :  { %v4131_v40 = vadd.f32 %v4130_v38, %v4129_v39  ;;  %v7112_v39 = vld [vmem:[#allocation16_spill] sm:$0xff]  ;;  %v7113_v38 = vld [vmem:[#allocation17_spill] sm:$0xff] }
 0xf7f   :  { %v2352_v54 = vmul.f32 %v4131_v40, %v5097_v18  ;;  %v7114_v40 = vld [vmem:[#allocation18_spill] sm:$0xff] }
 0xf81   :  { %v2353_v55 = vadd.f32 %v2352_v54, %v6986_v3  ;;  %v7115_v54 = vld [vmem:[#allocation19_spill] sm:$0xff] }
 0xf83   :  { %v2354_v56 = vsel %vm579_vm2, %v2353_v55, -inf }
 0xf84   :  { %2355 = vmax.xlane.f32.xlu1 %v2354_v56  ;;  %v7117_v56 = vld [vmem:[#allocation21_spill] sm:$0xff] }
0x100d   :  { %v2356_v57 = vpop.xlane.xlu1 %2355 }
0x100e   :  { %v2357_v20 = vsub.f32 %v2353_v55, %v2356_v57  ;;  %v7116_v55 = vld [vmem:[#allocation20_spill] sm:$0xff] }
0x100f   :  { %v7118_v57 = vld [vmem:[#allocation24_spill] sm:$0xff] }
0x1010   :  { %v2358_v58 = vmul.f32 1.442695, %v2357_v20  ;;  %v7119_v20 = vld [vmem:[#allocation25_spill] sm:$0xff] }
0x1012   :  { %4531 = vpow2.f32 %v2358_v58  ;;  %v7120_v58 = vld [vmem:[#allocation26_spill] sm:$0xff] }
0x101f   :  { %v4532_v44 = vpop.eup %4531 }
0x1020   :  { %4455 = vmatmul.mubr.msk.f32.vlgmr.msra.gmra.mxu0 %vm579_vm2, %v4532_v44 }
0x1021   :  { %2463 = vmatpush1.msra.mxu0 %v6049_v0  ;;  %2502 = vmatprep.mubr.f32.mxu0 %v6969_v1 }
0x1022   :  { %2464 = vmatprep.subr.mxu0 %v6056_v47 }
0x1023   :  { %2465 = vmatpush1.msra.mxu0 %v6062_v61 }
0x1024   :  { %2466 = vmatprep.subr.mxu0 %v6068_v14 }
0x1025   :  { %2467 = vmatpush1.msra.mxu0 %v6074_v43 }
0x1026   :  { %2468 = vmatprep.subr.mxu0 %v6080_v10 }
0x1027   :  { %2469 = vmatpush1.msra.mxu0 %v6086_v31 }
0x1028   :  { %2616 = vmatprep.subr.mxu0 %v5562_v13 }
0x10e0   :  { %v2429_v23 = vpop.f32.mrf.mxu0 }
0x10e1   :  { %v2430_v50 = vadd.f32 1e-30, %v2429_v23  ;;  %v7122_v23 = vld [vmem:[#allocation31_spill] sm:$0xff] }
0x10e2   :  { %v4456_v53 = vpop.f32.mrf.mxu0 }
0x10e3   :  { %4533 = vrcp.f32 %v2430_v50  ;;  %v7123_v50 = vld [vmem:[#allocation32_spill] sm:$0xff]  ;;  %v7124_v53 = vld [vmem:[#allocation33_spill] sm:$0xff] }
0x10f0   :  { %v4534_v52 = vpop.eup %4533 }
0x10f1   :  { %v2434_v49 = vmul.f32 %v4534_v52, %v4532_v44  ;;  %v7121_v44 = vld [vmem:[#allocation27_spill] sm:$0xff]  ;;  %v6139_v52 = vld [vmem:[%s6738_s9 + $0xf8] sm:$0xff] }
0x10f2   :  { %7125 = vst [vmem:[#allocation10_spill] sm:$0xff] %v6139_v52 }
0x10f3   :  { %3785 = vmatmul.mubr.msk.f32.vlgmr.msra.gmra.mxu0 %vm579_vm2, %v2434_v49 }
0x10f4   :  { %2617 = vmatpush1.msra.mxu0 %v5615_v17  ;;  %2656 = vmatprep.mubr.f32.mxu0 %v6969_v1 }
0x10f5   :  { %2618 = vmatprep.subr.mxu0 %v5622_v12 }
0x10f6   :  { %2619 = vmatpush1.msra.mxu0 %v5628_v24 }
0x10f7   :  { %2620 = vmatprep.subr.mxu0 %v5634_v26 }
0x10f8   :  { %2621 = vmatpush1.msra.mxu0 %v5640_v59 }
0x10f9   :  { %2622 = vmatprep.subr.mxu0 %v5646_v27 }
0x10fa   :  { %2623 = vmatpush1.msra.mxu0 %v5652_v6 }
0x10fb   :  { %3786 = vmatmul.mubr.msk.f32.vlgmr.msra.gmra.mxu0 %vm579_vm2, %v2589_v48  ;;  %4172 = vmatprep.subr.mxu0 %v5659_v25 }
0x10fc   :  { %4173 = vmatpush3.msra.mxu0 %v5665_v22 }
0x10fd   :  { %4174 = vmatprep.subr.mxu0 %v7067_v5 }
0x10fe   :  { %4175 = vmatpush3.msra.mxu0 %v7068_v16 }
0x10ff   :  { %4176 = vmatprep.subr.mxu0 %v7069_v19 }
0x1100   :  { %4177 = vmatpush3.msra.mxu0 %v7070_v28 }
0x1101   :  { %4178 = vmatprep.subr.mxu0 %v7071_v29 }
0x1102   :  { %4179 = vmatpush3.msra.mxu0 %v7072_v51 }
0x1103   :  { %4180 = vmatprep.subr.mxu0 %v7073_v7 }
0x1104   :  { %4181 = vmatpush3.msra.mxu0 %v7074_v8 }
0x1105   :  { %4182 = vmatprep.subr.mxu0 %v7108_v46 }
0x1106   :  { %4183 = vmatpush3.msra.mxu0 %v7109_v45 }
0x1107   :  { %4184 = vmatprep.subr.mxu0 %v7110_v42 }
0x1108   :  { %4185 = vmatpush3.msra.mxu0 %v7111_v41 }
0x1109   :  { %4186 = vmatprep.subr.mxu0 %v7112_v39 }
0x110a   :  { %4187 = vmatpush3.msra.mxu0 %v7113_v38 }
0x110b   :  { %4188 = vmatprep.subr.mxu0 %v7114_v40 }
0x110c   :  { %4189 = vmatpush3.msra.mxu0 %v7115_v54 }
0x110d   :  { %4190 = vmatprep.subr.mxu0 %v7116_v55 }
0x110e   :  { %4191 = vmatpush3.msra.mxu0 %v7117_v56 }
0x110f   :  { %4192 = vmatprep.subr.mxu0 %v7085_v37 }
0x1110   :  { %4193 = vmatpush3.msra.mxu0 %v7086_v11 }
0x1111   :  { %4194 = vmatprep.subr.mxu0 %v7118_v57 }
0x1112   :  { %4195 = vmatpush3.msra.mxu0 %v7119_v20 }
0x1113   :  { %4196 = vmatprep.subr.mxu0 %v7120_v58 }
0x1114   :  { %4197 = vmatpush3.msra.mxu0 %v7121_v44 }
0x1115   :  { %4198 = vmatprep.subr.mxu0 %v7091_v34 }
0x1116   :  { %4199 = vmatpush3.msra.mxu0 %v7092_v36 }
0x1117   :  { %4200 = vmatprep.subr.mxu0 %v7093_v4 }
0x1118   :  { %4201 = vmatpush3.msra.mxu0 %v7122_v23 }
0x1119   :  { %4202 = vmatprep.subr.mxu0 %v7123_v50 }
0x111a   :  { %4203 = vmatpush3.msra.mxu0 %v7124_v53 }
0x111b   :  { %4212 = vmatprep.subr.mxu0 %v6139_v52 }
0x11b3   :  { %v2504_v49 = vpop.f32.mrf.mxu0 }
0x11b4   :  { %v2509_v32 = vmul.f32 %v2504_v49, %v5427_v21  ;;  %v6183_v49 = vld [vmem:[%s6738_s9 + $0x68] sm:$0xff] }
0x11b5   :  { %v2506_v48 = vpop.f32.mrf.mxu0  ;;  %7130 = vst [vmem:[#allocation47_spill] sm:$0xff] %v6183_v49 }
0x11b6   :  { %v2510_v33 = vmul.f32 %v2506_v48, %v5429_v2  ;;  %v6189_v48 = vld [vmem:[%s6738_s9 + $0xe0] sm:$0xff] }
0x11b7   :  { %7131 = vst [vmem:[#allocation48_spill] sm:$0xff] %v6189_v48 }
0x11b8   :  { %2575 = vmatprep.mubr.f32.mxu1 %v2510_v33 }
0x11b9   :  { %2576 = vmatmul.mubr.f32.vlgmr.msra.gmra.mxu1 %v2509_v32  ;;  %v6159_v32 = vld [vmem:[%s6738_s9 + $0x78] sm:$0xff] }
0x11ba   :  { %4458 = vmatpush3.msra.mxu1 %v5858_v9  ;;  %4465 = vmatprep.mubr.msk.f32.mxu1 %vm4729_vm0, %v6969_v1  ;;  %7126 = vst [vmem:[#allocation59_spill] sm:$0xff] %v6159_v32 }
0x11bb   :  { %v2658_v53 = vpop.f32.mrf.mxu0  ;;  %4459 = vmatprep.subr.mxu1 %v6969_v1 }
0x11bc   :  { %4460 = vmatpush3.msra.mxu1 %v7096_v30  ;;  %v2663_v33 = vmul.f32 %v2658_v53, %v5091_v63  ;;  %v6171_v53 = vld [vmem:[%s6738_s9 + $0x70] sm:$0xff] }
0x11bd   :  { %v2660_v50 = vpop.f32.mrf.mxu0  ;;  %4461 = vmatprep.subr.mxu1 %v6969_v1  ;;  %7128 = vst [vmem:[#allocation11_spill] sm:$0xff] %v6171_v53 }
0x11be   :  { %v2664_v52 = vmul.f32 %v2660_v50, %v5089_v62  ;;  %4462 = vmatpush3.msra.mxu1 %v5875_v15  ;;  %v6165_v50 = vld [vmem:[%s6738_s9 + $0xf0] sm:$0xff] }
0x11bf   :  { %4463 = vmatprep.subr.mxu1 %v6969_v1  ;;  %7127 = vst [vmem:[#allocation44_spill] sm:$0xff] %v6165_v50 }
0x11c0   :  { %2729 = vmatprep.mubr.f32.mxu0 %v2664_v52  ;;  %4464 = vmatpush3.msra.mxu1 %v5883_v60  ;;  %v6177_v52 = vld [vmem:[%s6738_s9 + $0xe8] sm:$0xff] }
0x11c1   :  { %2730 = vmatmul.mubr.f32.vlgmr.msra.gmra.mxu0 %v2663_v33  ;;  %2845 = vmatprep.subr.mxu1 %v6007_v35  ;;  %7129 = vst [vmem:[#allocation46_spill] sm:$0xff] %v6177_v52  ;;  %v6195_v33 = vld [vmem:[%s6738_s9 + $0x60] sm:$0xff] }
0x11c2   :  { %4213 = vmatpush3.msra.mxu0 %v6159_v32  ;;  %7132 = vst [vmem:[#allocation49_spill] sm:$0xff] %v6195_v33 }
0x11c3   :  { %4214 = vmatprep.subr.mxu0 %v6165_v50 }
0x11c4   :  { %4215 = vmatpush3.msra.mxu0 %v6171_v53 }
0x11c5   :  { %4216 = vmatprep.subr.mxu0 %v6177_v52  ;;  %v6201_v52 = vld [vmem:[%s6738_s9 + $0xd8] sm:$0xff] }
0x11c6   :  { %4217 = vmatpush3.msra.mxu0 %v6183_v49  ;;  %7133 = vst [vmem:[#allocation8_spill] sm:$0xff] %v6201_v52  ;;  %v6207_v49 = vld [vmem:[%s6738_s9 + $0x58] sm:$0xff] }
0x11c7   :  { %4218 = vmatprep.subr.mxu0 %v6189_v48  ;;  %7134 = vst [vmem:[#allocation9_spill] sm:$0xff] %v6207_v49  ;;  %v6213_v48 = vld [vmem:[%s6738_s9 + $0xd0] sm:$0xff] }
0x11c8   :  { %4219 = vmatpush3.msra.mxu0 %v6195_v33  ;;  %7135 = vst [vmem:[#allocation22_spill] sm:$0xff] %v6213_v48  ;;  %v6219_v33 = vld [vmem:[%s6738_s9 + $0x50] sm:$0xff] }
0x11c9   :  { %4220 = vmatprep.subr.mxu0 %v6201_v52  ;;  %7136 = vst [vmem:[#allocation23_spill] sm:$0xff] %v6219_v33  ;;  %v6225_v52 = vld [vmem:[%s6738_s9 + $0xc8] sm:$0xff] }
0x11ca   :  { %4221 = vmatpush3.msra.mxu0 %v6207_v49  ;;  %7137 = vst [vmem:[#allocation28_spill] sm:$0xff] %v6225_v52  ;;  %v6231_v49 = vld [vmem:[%s6738_s9 + $0x48] sm:$0xff] }
0x11cb   :  { %4222 = vmatprep.subr.mxu0 %v6213_v48  ;;  %7138 = vst [vmem:[#allocation29_spill] sm:$0xff] %v6231_v49  ;;  %v6237_v48 = vld [vmem:[%s6738_s9 + $0xc0] sm:$0xff] }
0x11cc   :  { %4223 = vmatpush3.msra.mxu0 %v6219_v33  ;;  %7139 = vst [vmem:[#allocation30_spill] sm:$0xff] %v6237_v48  ;;  %v6243_v33 = vld [vmem:[%s6738_s9 + $0x40] sm:$0xff] }
0x11cd   :  { %4224 = vmatprep.subr.mxu0 %v6225_v52  ;;  %7140 = vst [vmem:[#allocation36_spill] sm:$0xff] %v6243_v33  ;;  %v6249_v52 = vld [vmem:[%s6738_s9 + $0xb8] sm:$0xff] }
0x11ce   :  { %4225 = vmatpush3.msra.mxu0 %v6231_v49  ;;  %7141 = vst [vmem:[#allocation51_spill] sm:$0xff] %v6249_v52  ;;  %v6255_v49 = vld [vmem:[%s6738_s9 + $0x38] sm:$0xff] }
0x11cf   :  { %4226 = vmatprep.subr.mxu0 %v6237_v48  ;;  %7142 = vst [vmem:[#allocation52_spill] sm:$0xff] %v6255_v49  ;;  %v6261_v48 = vld [vmem:[%s6738_s9 + $0xb0] sm:$0xff] }
0x11d0   :  { %4227 = vmatpush3.msra.mxu0 %v6243_v33  ;;  %7143 = vst [vmem:[#allocation53_spill] sm:$0xff] %v6261_v48  ;;  %v6267_v33 = vld [vmem:[%s6738_s9 + $0x30] sm:$0xff] }
0x11d1   :  { %4228 = vmatprep.subr.mxu0 %v6249_v52  ;;  %7144 = vst [vmem:[#allocation54_spill] sm:$0xff] %v6267_v33  ;;  %v6273_v52 = vld [vmem:[%s6738_s9 + $0xa8] sm:$0xff] }
0x11d2   :  { %4229 = vmatpush3.msra.mxu0 %v6255_v49  ;;  %7145 = vst [vmem:[#allocation55_spill] sm:$0xff] %v6273_v52  ;;  %v6279_v49 = vld [vmem:[%s6738_s9 + $0x28] sm:$0xff] }
0x11d3   :  { %4230 = vmatprep.subr.mxu0 %v6261_v48  ;;  %7146 = vst [vmem:[#allocation56_spill] sm:$0xff] %v6279_v49  ;;  %v6285_v48 = vld [vmem:[%s6738_s9 + $0xa0] sm:$0xff] }
0x11d4   :  { %4231 = vmatpush3.msra.mxu0 %v6267_v33  ;;  %7147 = vst [vmem:[#allocation57_spill] sm:$0xff] %v6285_v48  ;;  %v6291_v33 = vld [vmem:[%s6738_s9 + $0x20] sm:$0xff] }
0x11d5   :  { %4232 = vmatprep.subr.mxu0 %v6273_v52  ;;  %7148 = vst [vmem:[#allocation58_spill] sm:$0xff] %v6291_v33  ;;  %v6297_v52 = vld [vmem:[%s6738_s9 + $0x98] sm:$0xff] }
0x11d6   :  { %4233 = vmatpush3.msra.mxu0 %v6279_v49  ;;  %7149 = vst [vmem:[#allocation12_spill] sm:$0xff] %v6297_v52  ;;  %v6303_v49 = vld [vmem:[%s6738_s9 + $0x18] sm:$0xff] }
0x11d7   :  { %4234 = vmatprep.subr.mxu0 %v6285_v48  ;;  %7150 = vst [vmem:[#allocation13_spill] sm:$0xff] %v6303_v49  ;;  %v6309_v48 = vld [vmem:[%s6738_s9 + $0x90] sm:$0xff] }
0x11d8   :  { %4235 = vmatpush3.msra.mxu0 %v6291_v33  ;;  %7151 = vst [vmem:[#allocation14_spill] sm:$0xff] %v6309_v48  ;;  %v6315_v33 = vld [vmem:[%s6738_s9 + $0x10] sm:$0xff] }
0x11d9   :  { %4236 = vmatprep.subr.mxu0 %v6297_v52  ;;  %7152 = vst [vmem:[#allocation15_spill] sm:$0xff] %v6315_v33  ;;  %v6321_v52 = vld [vmem:[%s6738_s9 + $0x88] sm:$0xff] }
0x11da   :  { %4237 = vmatpush3.msra.mxu0 %v6303_v49  ;;  %7153 = vst [vmem:[#allocation16_spill] sm:$0xff] %v6321_v52  ;;  %v6327_v49 = vld [vmem:[%s6738_s9 + $0x8] sm:$0xff] }
0x11db   :  { %4238 = vmatprep.subr.mxu0 %v6309_v48  ;;  %7154 = vst [vmem:[#allocation17_spill] sm:$0xff] %v6327_v49  ;;  %v6333_v48 = vld [vmem:[%s6738_s9 + $0x80] sm:$0xff] }
0x11dc   :  { %4239 = vmatpush3.msra.mxu0 %v6315_v33  ;;  %7155 = vst [vmem:[#allocation18_spill] sm:$0xff] %v6333_v48  ;;  %v6339_v33 = vld [vmem:[%s6738_s9] sm:$0xff] }
0x11dd   :  { %4240 = vmatprep.subr.mxu0 %v6321_v52  ;;  %7156 = vst [vmem:[#allocation19_spill] sm:$0xff] %v6339_v33 }
0x11de   :  { %4241 = vmatpush3.msra.mxu0 %v6327_v49 }
0x11df   :  { %4242 = vmatprep.subr.mxu0 %v6333_v48  ;;  %v7157_v48 = vld [vmem:[#allocation39_spill] sm:$0xff] }
0x11e0   :  { %4243 = vmatpush3.msra.mxu0 %v6339_v33 }
0x11e1   :  { %4468 = vmatprep.subr.mxu0 %v6969_v1 }
0x1281   :  { %v4204_v52 = vpop.f32.mrf.mxu0 }
0x1283   :  { %v4205_v53 = vpop.f32.mrf.mxu0 }
0x1284   :  { %v4206_v50 = vadd.f32 %v4205_v53, %v4204_v52  ;;  %v7189_v52 = vld [vmem:[#allocation13_spill] sm:$0xff] }
0x1286   :  { %v2735_v49 = vmul.f32 %v4206_v50, %v5097_v18 }
0x1288   :  { %v2736_v32 = vadd.f32 %v2735_v49, %v6986_v3  ;;  %v7190_v49 = vld [vmem:[#allocation14_spill] sm:$0xff] }
0x128a   :  { %v2737_v35 = vsel %vm579_vm2, %v2736_v32, -inf }
0x128b   :  { %2738 = vmax.xlane.f32.xlu1 %v2737_v35 }
0x129c   :  { %2975 = vrot.lane.b32.xlu1 %v7157_v48, %s4732_s23  ;;  %v7191_v48 = vld [vmem:[#allocation15_spill] sm:$0xff] }
0x1314   :  { %v2739_v60 = vpop.xlane.xlu1 %2738 }
0x1315   :  { %v2740_v63 = vsub.f32 %v2736_v32, %v2739_v60 }
0x1317   :  { %v2741_v15 = vmul.f32 1.442695, %v2740_v63  ;;  %v6358_v63 = vpop.f32.mrf.mxu1 }
0x1319   :  { %4535 = vpow2.f32 %v2741_v15  ;;  %v6360_v60 = vpop.f32.mrf.mxu1 }
0x1326   :  { %v4536_v33 = vpop.eup %4535 }
0x1327   :  { %4466 = vmatmul.mubr.msk.f32.vlgmr.msra.gmra.mxu1 %vm579_vm2, %v4536_v33 }
0x1328   :  { %2846 = vmatpush1.msra.mxu1 %v6049_v0  ;;  %2885 = vmatprep.mubr.f32.mxu1 %v6969_v1 }
0x1329   :  { %2847 = vmatprep.subr.mxu1 %v6056_v47 }
0x132a   :  { %2848 = vmatpush1.msra.mxu1 %v6062_v61 }
0x132b   :  { %2849 = vmatprep.subr.mxu1 %v6068_v14 }
0x132c   :  { %2850 = vmatpush1.msra.mxu1 %v6074_v43 }
0x132d   :  { %2851 = vmatprep.subr.mxu1 %v6080_v10 }
0x132e   :  { %2852 = vmatpush1.msra.mxu1 %v6086_v31 }
0x132f   :  { %3003 = vmatprep.subr.mxu1 %v5562_v13  ;;  %v2976_v13 = vpop.permute.xlu1 %2975 }
0x13e7   :  { %v2812_v15 = vpop.f32.mrf.mxu1 }
0x13e8   :  { %v2813_v35 = vadd.f32 1e-30, %v2812_v15  ;;  %v7193_v15 = vld [vmem:[#allocation17_spill] sm:$0xff] }
0x13e9   :  { %v4467_v32 = vpop.f32.mrf.mxu1 }
0x13ea   :  { %4537 = vrcp.f32 %v2813_v35  ;;  %v7194_v35 = vld [vmem:[#allocation18_spill] sm:$0xff]  ;;  %v7195_v32 = vld [vmem:[#allocation19_spill] sm:$0xff] }
0x13f7   :  { %v4538_v50 = vpop.eup %4537 }
0x13f8   :  { %v2817_v53 = vmul.f32 %v4538_v50, %v4536_v33  ;;  %v7192_v33 = vld [vmem:[#allocation16_spill] sm:$0xff]  ;;  %v4733_v50 = vmov 1  }
0x13f9   :  { %4508 = vset.pattern.permute.xlu1 %v4733_v50  ;;  %v6480_v50 = vld [vmem:[%s6729_s0 + $0x8] sm:$0xff] }
0x13fa   :  { %3788 = vmatmul.mubr.msk.f32.vlgmr.msra.gmra.mxu1 %vm579_vm2, %v2817_v53 }
0x13fb   :  { %3004 = vmatpush1.msra.mxu1 %v5615_v17  ;;  %3043 = vmatprep.mubr.f32.mxu1 %v6969_v1  ;;  %v7158_v17 = vld [vmem:[#allocation32_spill] sm:$0xff] }
0x13fc   :  { %3005 = vmatprep.subr.mxu1 %v5622_v12  ;;  %v7160_v12 = vld [vmem:[#allocation10_spill] sm:$0xff] }
0x13fd   :  { %3006 = vmatpush1.msra.mxu1 %v5628_v24 }
0x13fe   :  { %3007 = vmatprep.subr.mxu1 %v5634_v26 }
0x13ff   :  { %3008 = vmatpush1.msra.mxu1 %v5640_v59 }
0x1400   :  { %3009 = vmatprep.subr.mxu1 %v5646_v27 }
0x1401   :  { %3010 = vmatpush1.msra.mxu1 %v5652_v6 }
0x1402   :  { %3789 = vmatmul.mubr.msk.f32.vlgmr.msra.gmra.mxu1 %vm579_vm2, %v2976_v13  ;;  %4247 = vmatprep.subr.mxu1 %v5659_v25 }
0x1403   :  { %4248 = vmatpush3.msra.mxu1 %v5665_v22 }
0x1404   :  { %4249 = vmatprep.subr.mxu1 %v7067_v5  ;;  %v7161_v5 = vld [vmem:[#allocation37_spill] sm:$0xff] }
0x1405   :  { %4250 = vmatpush3.msra.mxu1 %v7068_v16  ;;  %v7162_v16 = vld [vmem:[#allocation43_spill] sm:$0xff] }
0x1406   :  { %4251 = vmatprep.subr.mxu1 %v7069_v19 }
0x1407   :  { %4252 = vmatpush3.msra.mxu1 %v7070_v28  ;;  %v7164_v28 = vld [vmem:[#allocation42_spill] sm:$0xff] }
0x1408   :  { %4253 = vmatprep.subr.mxu1 %v7071_v29  ;;  %v7165_v29 = vld [vmem:[#allocation59_spill] sm:$0xff] }
0x1409   :  { %4254 = vmatpush3.msra.mxu1 %v7072_v51  ;;  %v7167_v51 = vld [vmem:[#allocation11_spill] sm:$0xff] }
0x140a   :  { %4255 = vmatprep.subr.mxu1 %v7073_v7  ;;  %v7168_v7 = vld [vmem:[#allocation46_spill] sm:$0xff] }
0x140b   :  { %4256 = vmatpush3.msra.mxu1 %v7074_v8  ;;  %v7169_v8 = vld [vmem:[#allocation47_spill] sm:$0xff] }
0x140c   :  { %4257 = vmatprep.subr.mxu1 %v7108_v46  ;;  %v7174_v46 = vld [vmem:[#allocation22_spill] sm:$0xff] }
0x140d   :  { %4258 = vmatpush3.msra.mxu1 %v7109_v45  ;;  %v7175_v45 = vld [vmem:[#allocation23_spill] sm:$0xff] }
0x140e   :  { %4259 = vmatprep.subr.mxu1 %v7110_v42  ;;  %v7176_v42 = vld [vmem:[#allocation28_spill] sm:$0xff] }
0x140f   :  { %4260 = vmatpush3.msra.mxu1 %v7111_v41  ;;  %v7177_v41 = vld [vmem:[#allocation29_spill] sm:$0xff] }
0x1410   :  { %4261 = vmatprep.subr.mxu1 %v7112_v39  ;;  %v7178_v39 = vld [vmem:[#allocation30_spill] sm:$0xff] }
0x1411   :  { %4262 = vmatpush3.msra.mxu1 %v7113_v38  ;;  %v7179_v38 = vld [vmem:[#allocation36_spill] sm:$0xff] }
0x1412   :  { %4263 = vmatprep.subr.mxu1 %v7114_v40  ;;  %v7180_v40 = vld [vmem:[#allocation51_spill] sm:$0xff] }
0x1413   :  { %4264 = vmatpush3.msra.mxu1 %v7115_v54  ;;  %v7181_v54 = vld [vmem:[#allocation52_spill] sm:$0xff] }
0x1414   :  { %4265 = vmatprep.subr.mxu1 %v7116_v55  ;;  %v7182_v55 = vld [vmem:[#allocation53_spill] sm:$0xff] }
0x1415   :  { %4266 = vmatpush3.msra.mxu1 %v7117_v56  ;;  %v7183_v56 = vld [vmem:[#allocation54_spill] sm:$0xff] }
0x1416   :  { %4267 = vmatprep.subr.mxu1 %v7085_v37  ;;  %v7159_v37 = vld [vmem:[#allocation33_spill] sm:$0xff] }
0x1417   :  { %4268 = vmatpush3.msra.mxu1 %v7086_v11  ;;  %v7170_v11 = vld [vmem:[#allocation48_spill] sm:$0xff] }
0x1418   :  { %4269 = vmatprep.subr.mxu1 %v7118_v57  ;;  %v7184_v57 = vld [vmem:[#allocation55_spill] sm:$0xff] }
0x1419   :  { %4270 = vmatpush3.msra.mxu1 %v7119_v20  ;;  %v7185_v20 = vld [vmem:[#allocation56_spill] sm:$0xff] }
0x141a   :  { %4271 = vmatprep.subr.mxu1 %v7120_v58  ;;  %v7186_v58 = vld [vmem:[#allocation57_spill] sm:$0xff] }
0x141b   :  { %4272 = vmatpush3.msra.mxu1 %v7121_v44  ;;  %v7187_v44 = vld [vmem:[#allocation58_spill] sm:$0xff] }
0x141c   :  { %4273 = vmatprep.subr.mxu1 %v7091_v34  ;;  %v7171_v34 = vld [vmem:[#allocation49_spill] sm:$0xff] }
0x141d   :  { %4274 = vmatpush3.msra.mxu1 %v7092_v36  ;;  %v7172_v36 = vld [vmem:[#allocation8_spill] sm:$0xff] }
0x141e   :  { %4275 = vmatprep.subr.mxu1 %v7093_v4  ;;  %v7173_v4 = vld [vmem:[#allocation9_spill] sm:$0xff] }
0x141f   :  { %4276 = vmatpush3.msra.mxu1 %v7122_v23  ;;  %v7188_v23 = vld [vmem:[#allocation12_spill] sm:$0xff] }
0x1420   :  { %4277 = vmatprep.subr.mxu1 %v7158_v17 }
0x1421   :  { %4278 = vmatpush3.msra.mxu1 %v7159_v37 }
0x1422   :  { %4287 = vmatprep.subr.mxu1 %v7160_v12 }
0x14ba   :  { %v2887_v24 = vpop.f32.mrf.mxu1 }
0x14bb   :  { %v2892_v27 = vmul.f32 %v2887_v24, %v5427_v21  ;;  %v4634_v24 = vld [vmem:[%s6730_s1] sm:$0xff] }
0x14bc   :  { %v2889_v26 = vpop.f32.mrf.mxu1 }
0x14bd   :  { %v2893_v59 = vmul.f32 %v2889_v26, %v5429_v2  ;;  %v6455_v26 = vsub.f32 1.0, %v4634_v24  ;;  %v4637_v24 = vld [vmem:[%s6733_s4 + $0x38] sm:$0xff] }
0x14bf   :  { %2958 = vmatprep.mubr.f32.mxu0 %v2893_v59 }
0x14c0   :  { %2959 = vmatmul.mubr.f32.vlgmr.msra.gmra.mxu0 %v2892_v27 }
0x14c1   :  { %4469 = vmatpush3.msra.mxu0 %v5858_v9  ;;  %4476 = vmatprep.mubr.msk.f32.mxu0 %vm4729_vm0, %v6969_v1  ;;  %v7163_v9 = vld [vmem:[#allocation38_spill] sm:$0xff] }
0x14c2   :  { %v3045_v6 = vpop.f32.mrf.mxu1  ;;  %4470 = vmatprep.subr.mxu0 %v6969_v1 }
0x14c3   :  { %4471 = vmatpush3.msra.mxu0 %v7096_v30  ;;  %v3050_v19 = vmul.f32 %v3045_v6, %v7162_v16  ;;  %v7166_v30 = vld [vmem:[#allocation44_spill] sm:$0xff]  ;;  %v3747_v6 = vsel %vm494_vm1, %v6455_v26, 0.0 }
0x14c4   :  { %v3047_v25 = vpop.f32.mrf.mxu1  ;;  %4472 = vmatprep.subr.mxu0 %v6969_v1 }
0x14c5   :  { %v3051_v22 = vmul.f32 %v3047_v25, %v5089_v62  ;;  %4473 = vmatpush3.msra.mxu0 %v7161_v5  ;;  %v4734_v25 = vmov 2   ;;  %v4735_v5 = vmov 3  }
0x14c6   :  { %4474 = vmatprep.subr.mxu0 %v6969_v1 }
0x14c7   :  { %3116 = vmatprep.mubr.f32.mxu1 %v3051_v22  ;;  %4475 = vmatpush3.msra.mxu0 %v7163_v9  ;;  %v6466_v22 = vld [vmem:[%s6729_s0] sm:$0xff]  ;;  %v4737_v9 = vmov 6  }
0x14c8   :  { %3117 = vmatmul.mubr.f32.vlgmr.msra.gmra.mxu1 %v3050_v19  ;;  %3232 = vmatprep.subr.mxu0 %v7164_v28  ;;  %v4736_v19 = vmov 4  }
0x14c9   :  { %4288 = vmatpush3.msra.mxu1 %v7165_v29 }
0x14ca   :  { %4289 = vmatprep.subr.mxu1 %v7166_v30 }
0x14cb   :  { %4290 = vmatpush3.msra.mxu1 %v7167_v51 }
0x14cc   :  { %4291 = vmatprep.subr.mxu1 %v7168_v7 }
0x14cd   :  { %4292 = vmatpush3.msra.mxu1 %v7169_v8 }
0x14ce   :  { %4293 = vmatprep.subr.mxu1 %v7170_v11 }
0x14cf   :  { %4294 = vmatpush3.msra.mxu1 %v7171_v34 }
0x14d0   :  { %4295 = vmatprep.subr.mxu1 %v7172_v36 }
0x14d1   :  { %4296 = vmatpush3.msra.mxu1 %v7173_v4 }
0x14d2   :  { %4297 = vmatprep.subr.mxu1 %v7174_v46 }
0x14d3   :  { %4298 = vmatpush3.msra.mxu1 %v7175_v45 }
0x14d4   :  { %4299 = vmatprep.subr.mxu1 %v7176_v42 }
0x14d5   :  { %4300 = vmatpush3.msra.mxu1 %v7177_v41 }
0x14d6   :  { %4301 = vmatprep.subr.mxu1 %v7178_v39 }
0x14d7   :  { %4302 = vmatpush3.msra.mxu1 %v7179_v38 }
0x14d8   :  { %4303 = vmatprep.subr.mxu1 %v7180_v40 }
0x14d9   :  { %4304 = vmatpush3.msra.mxu1 %v7181_v54 }
0x14da   :  { %4305 = vmatprep.subr.mxu1 %v7182_v55 }
0x14db   :  { %4306 = vmatpush3.msra.mxu1 %v7183_v56 }
0x14dc   :  { %4307 = vmatprep.subr.mxu1 %v7184_v57 }
0x14dd   :  { %4308 = vmatpush3.msra.mxu1 %v7185_v20 }
0x14de   :  { %4309 = vmatprep.subr.mxu1 %v7186_v58 }
0x14df   :  { %4310 = vmatpush3.msra.mxu1 %v7187_v44 }
0x14e0   :  { %4311 = vmatprep.subr.mxu1 %v7188_v23 }
0x14e1   :  { %4312 = vmatpush3.msra.mxu1 %v7189_v52 }
0x14e2   :  { %4313 = vmatprep.subr.mxu1 %v7190_v49 }
0x14e3   :  { %4314 = vmatpush3.msra.mxu1 %v7191_v48 }
0x14e4   :  { %4315 = vmatprep.subr.mxu1 %v7192_v33 }
0x14e5   :  { %4316 = vmatpush3.msra.mxu1 %v7193_v15 }
0x14e6   :  { %4317 = vmatprep.subr.mxu1 %v7194_v35 }
0x14e7   :  { %4318 = vmatpush3.msra.mxu1 %v7195_v32 }
0x14e8   :  { %4479 = vmatprep.subr.mxu1 %v6969_v1 }
0x1588   :  { %v4279_v53 = vpop.f32.mrf.mxu1 }
0x158a   :  { %v4280_v13 = vpop.f32.mrf.mxu1 }
0x158b   :  { %v4281_v17 = vadd.f32 %v4280_v13, %v4279_v53 }
0x158d   :  { %v3122_v37 = vmul.f32 %v4281_v17, %v5097_v18 }
0x158f   :  { %v3123_v59 = vadd.f32 %v3122_v37, %v6986_v3 }
0x1591   :  { %v3124_v27 = vsel %vm579_vm2, %v3123_v59, -inf }
0x1592   :  { %3125 = vmax.xlane.f32.xlu1 %v3124_v27 }
0x1596   :  { %3748 = vadd.xlane.f32.xlu1 %v3747_v6 }
0x15a7   :  { %1429 = vperm.xlu1 %4508, %v6455_v26  }
0x15ab   :  { %4509 = vset.pattern.permute.xlu1 %v4734_v25 }
0x15ac   :  { %1815 = vperm.xlu1 %4509, %v6455_v26  }
0x15b0   :  { %1424 = vrot.lane.b32.xlu1 %v6466_v22, %s4730_s17 }
0x15b1   :  { %4510 = vset.pattern.permute.xlu1 %v4735_v5 }
0x15b4   :  { %2201 = vperm.xlu1 %4510, %v6455_v26  }
0x15b8   :  { %1810 = vrot.lane.b32.xlu1 %v6466_v22, %s4732_s23 }
0x15b9   :  { %4511 = vset.pattern.permute.xlu1 %v4736_v19 }
0x15bc   :  { %2583 = vperm.xlu1 %4511, %v6455_v26  }
0x15c0   :  { %2196 = vrot.lane.b32.xlu1 %v6466_v22, %s4731_s18 }
0x15c1   :  { %4513 = vset.pattern.permute.xlu1 %v4737_v9 }
0x15c4   :  { %3356 = vperm.xlu1 %4513, %v6455_v26  }
0x15c8   :  { %2965 = vrot.lane.b32.xlu1 %v6480_v50, %s4730_s17 }
0x15cc   :  { %3351 = vrot.lane.b32.xlu1 %v6480_v50, %s4732_s23 }
0x15d0   :  { %3737 = vrot.lane.b32.xlu1 %v6480_v50, %s4731_s18 }
0x161b   :  { %v3126_v53 = vpop.xlane.xlu1 %3125 }
0x161c   :  { %v3127_v13 = vsub.f32 %v3123_v59, %v3126_v53  ;;  %v6500_v59 = vpop.f32.mrf.mxu0  ;;  %v4638_v53 = vld [vmem:[%s6733_s4 + $0x30] sm:$0xff] }
0x161e   :  { %v3128_v17 = vmul.f32 1.442695, %v3127_v13  ;;  %v6502_v27 = vpop.f32.mrf.mxu0  ;;  %v4639_v13 = vld [vmem:[%s6733_s4 + $0x28] sm:$0xff] }
0x1620   :  { %4539 = vpow2.f32 %v3128_v17  ;;  %v4640_v17 = vld [vmem:[%s6733_s4 + $0x20] sm:$0xff] }
0x162d   :  { %v4540_v37 = vpop.eup %4539 }
0x162e   :  { %4477 = vmatmul.mubr.msk.f32.vlgmr.msra.gmra.mxu0 %vm579_vm2, %v4540_v37 }
0x162f   :  { %3233 = vmatpush1.msra.mxu0 %v6049_v0  ;;  %3272 = vmatprep.mubr.f32.mxu0 %v6969_v1 }
0x1630   :  { %3234 = vmatprep.subr.mxu0 %v6056_v47 }
0x1631   :  { %3235 = vmatpush1.msra.mxu0 %v6062_v61 }
0x1632   :  { %3236 = vmatprep.subr.mxu0 %v6068_v14 }
0x1633   :  { %3237 = vmatpush1.msra.mxu0 %v6074_v43 }
0x1634   :  { %3238 = vmatprep.subr.mxu0 %v6080_v10 }
0x1635   :  { %3239 = vmatpush1.msra.mxu0 %v6086_v31 }
0x1636   :  { %3389 = vmatprep.subr.mxu0 %v4637_v24  ;;  %v4642_v24 = vld [vmem:[%s6733_s4 + $0x10] sm:$0xff] }
0x16ee   :  { %v3199_v6 = vpop.f32.mrf.mxu0 }
0x16ef   :  { %v3200_v25 = vadd.f32 1e-30, %v3199_v6  ;;  %v4643_v6 = vld [vmem:[%s6733_s4 + $0x8] sm:$0xff] }
0x16f0   :  { %v4478_v5 = vpop.f32.mrf.mxu0 }
0x16f1   :  { %4541 = vrcp.f32 %v3200_v25  ;;  %v3362_v25 = vpop.permute.xlu0 %3361  ;;  %v4644_v5 = vld [vmem:[%s6733_s4] sm:$0xff] }
0x16fe   :  { %v4542_v19 = vpop.eup %4541 }
0x16ff   :  { %v3204_v9 = vmul.f32 %v4542_v19, %v4540_v37  ;;  %v4641_v37 = vld [vmem:[%s6733_s4 + $0x18] sm:$0xff] }
0x1700   :  { %v4645_v19 = vld [vmem:[%s6734_s5 + $0xf8] sm:$0xff] }
0x1701   :  { %3791 = vmatmul.mubr.msk.f32.vlgmr.msra.gmra.mxu0 %vm579_vm2, %v3204_v9  ;;  %v4646_v9 = vld [vmem:[%s6734_s5 + $0x78] sm:$0xff] }
0x1702   :  { %3390 = vmatpush1.msra.mxu0 %v4638_v53  ;;  %3429 = vmatprep.mubr.f32.mxu0 %v6969_v1  ;;  %v4647_v53 = vld [vmem:[%s6734_s5 + $0xf0] sm:$0xff] }
0x1703   :  { %3391 = vmatprep.subr.mxu0 %v4639_v13  ;;  %v4648_v13 = vld [vmem:[%s6734_s5 + $0x70] sm:$0xff] }
0x1704   :  { %3392 = vmatpush1.msra.mxu0 %v4640_v17  ;;  %v4649_v17 = vld [vmem:[%s6734_s5 + $0xe8] sm:$0xff] }
0x1705   :  { %3393 = vmatprep.subr.mxu0 %v4641_v37  ;;  %v4650_v37 = vld [vmem:[%s6734_s5 + $0x68] sm:$0xff] }
0x1706   :  { %3394 = vmatpush1.msra.mxu0 %v4642_v24  ;;  %v4651_v24 = vld [vmem:[%s6734_s5 + $0xe0] sm:$0xff] }
0x1707   :  { %3395 = vmatprep.subr.mxu0 %v4643_v6  ;;  %v4652_v6 = vld [vmem:[%s6734_s5 + $0x60] sm:$0xff] }
0x1708   :  { %3396 = vmatpush1.msra.mxu0 %v4644_v5  ;;  %v4654_v5 = vld [vmem:[%s6734_s5 + $0x58] sm:$0xff] }
0x1709   :  { %3792 = vmatmul.mubr.msk.f32.vlgmr.msra.gmra.mxu0 %vm579_vm2, %v3362_v25  ;;  %4322 = vmatprep.subr.mxu0 %v4645_v19  ;;  %v4653_v25 = vld [vmem:[%s6734_s5 + $0xd8] sm:$0xff]  ;;  %v4655_v19 = vld [vmem:[%s6734_s5 + $0xd0] sm:$0xff] }
0x170a   :  { %4323 = vmatpush3.msra.mxu0 %v4646_v9  ;;  %v4656_v9 = vld [vmem:[%s6734_s5 + $0x50] sm:$0xff] }
0x170b   :  { %4324 = vmatprep.subr.mxu0 %v4647_v53  ;;  %v4657_v53 = vld [vmem:[%s6734_s5 + $0xc8] sm:$0xff] }
0x170c   :  { %4325 = vmatpush3.msra.mxu0 %v4648_v13  ;;  %v4658_v13 = vld [vmem:[%s6734_s5 + $0x48] sm:$0xff] }
0x170d   :  { %4326 = vmatprep.subr.mxu0 %v4649_v17  ;;  %v4659_v17 = vld [vmem:[%s6734_s5 + $0xc0] sm:$0xff] }
0x170e   :  { %4327 = vmatpush3.msra.mxu0 %v4650_v37  ;;  %v4660_v37 = vld [vmem:[%s6734_s5 + $0x40] sm:$0xff] }
0x170f   :  { %4328 = vmatprep.subr.mxu0 %v4651_v24  ;;  %v4661_v24 = vld [vmem:[%s6734_s5 + $0xb8] sm:$0xff] }
0x1710   :  { %4329 = vmatpush3.msra.mxu0 %v4652_v6  ;;  %v4662_v6 = vld [vmem:[%s6734_s5 + $0x38] sm:$0xff] }
0x1711   :  { %4330 = vmatprep.subr.mxu0 %v4653_v25  ;;  %v4663_v25 = vld [vmem:[%s6734_s5 + $0xb0] sm:$0xff] }
0x1712   :  { %4331 = vmatpush3.msra.mxu0 %v4654_v5  ;;  %v4664_v5 = vld [vmem:[%s6734_s5 + $0x30] sm:$0xff] }
0x1713   :  { %4332 = vmatprep.subr.mxu0 %v4655_v19  ;;  %v4665_v19 = vld [vmem:[%s6734_s5 + $0xa8] sm:$0xff] }
0x1714   :  { %4333 = vmatpush3.msra.mxu0 %v4656_v9  ;;  %v4666_v9 = vld [vmem:[%s6734_s5 + $0x28] sm:$0xff] }
0x1715   :  { %4334 = vmatprep.subr.mxu0 %v4657_v53  ;;  %v4667_v53 = vld [vmem:[%s6734_s5 + $0xa0] sm:$0xff] }
0x1716   :  { %4335 = vmatpush3.msra.mxu0 %v4658_v13  ;;  %v4668_v13 = vld [vmem:[%s6734_s5 + $0x20] sm:$0xff] }
0x1717   :  { %4336 = vmatprep.subr.mxu0 %v4659_v17  ;;  %v4669_v17 = vld [vmem:[%s6734_s5 + $0x98] sm:$0xff] }
0x1718   :  { %4337 = vmatpush3.msra.mxu0 %v4660_v37  ;;  %v4670_v37 = vld [vmem:[%s6734_s5 + $0x18] sm:$0xff] }
0x1719   :  { %4338 = vmatprep.subr.mxu0 %v4661_v24  ;;  %v4671_v24 = vld [vmem:[%s6734_s5 + $0x90] sm:$0xff] }
0x171a   :  { %4339 = vmatpush3.msra.mxu0 %v4662_v6  ;;  %v4672_v6 = vld [vmem:[%s6734_s5 + $0x10] sm:$0xff] }
0x171b   :  { %4340 = vmatprep.subr.mxu0 %v4663_v25  ;;  %v4673_v25 = vld [vmem:[%s6734_s5 + $0x88] sm:$0xff] }
0x171c   :  { %4341 = vmatpush3.msra.mxu0 %v4664_v5  ;;  %v4674_v5 = vld [vmem:[%s6734_s5 + $0x8] sm:$0xff] }
0x171d   :  { %4342 = vmatprep.subr.mxu0 %v4665_v19  ;;  %v4675_v19 = vld [vmem:[%s6734_s5 + $0x80] sm:$0xff] }
0x171e   :  { %4343 = vmatpush3.msra.mxu0 %v4666_v9  ;;  %v4676_v9 = vld [vmem:[%s6734_s5] sm:$0xff] }
0x171f   :  { %4344 = vmatprep.subr.mxu0 %v4667_v53 }
0x1720   :  { %4345 = vmatpush3.msra.mxu0 %v4668_v13 }
0x1721   :  { %4346 = vmatprep.subr.mxu0 %v4669_v17 }
0x1722   :  { %4347 = vmatpush3.msra.mxu0 %v4670_v37 }
0x1723   :  { %4348 = vmatprep.subr.mxu0 %v4671_v24  ;;  %v4677_v24 = vld [vmem:[%s6735_s6 + $0x18] sm:$0xff] }
0x1724   :  { %4349 = vmatpush3.msra.mxu0 %v4672_v6 }
0x1725   :  { %4350 = vmatprep.subr.mxu0 %v4673_v25 }
0x1726   :  { %4351 = vmatpush3.msra.mxu0 %v4674_v5 }
0x1727   :  { %4352 = vmatprep.subr.mxu0 %v4675_v19  ;;  %v4679_v19 = vld [vmem:[%s6735_s6 + $0x8] sm:$0xff] }
0x1728   :  { %4353 = vmatpush3.msra.mxu0 %v4676_v9 }
0x1729   :  { %4362 = vmatprep.subr.mxu0 %v7160_v12  ;;  %v4678_v12 = vld [vmem:[%s6735_s6 + $0x10] sm:$0xff] }
0x17c1   :  { %v3274_v53 = vpop.f32.mrf.mxu0 }
0x17c2   :  { %v3279_v37 = vmul.f32 %v3274_v53, %v5427_v21  ;;  %v4680_v53 = vld [vmem:[%s6735_s6] sm:$0xff] }
0x17c3   :  { %v3276_v13 = vpop.f32.mrf.mxu0 }
0x17c4   :  { %v3280_v17 = vmul.f32 %v3276_v13, %v5429_v2 }
0x17c6   :  { %3345 = vmatprep.mubr.f32.mxu1 %v3280_v17 }
0x17c7   :  { %3346 = vmatmul.mubr.f32.vlgmr.msra.gmra.mxu1 %v3279_v37 }
0x17c8   :  { %4480 = vmatpush3.msra.mxu1 %v4677_v24  ;;  %4487 = vmatprep.mubr.msk.f32.mxu1 %vm4729_vm0, %v6969_v1 }
0x17c9   :  { %v3431_v6 = vpop.f32.mrf.mxu0  ;;  %4481 = vmatprep.subr.mxu1 %v6969_v1 }
0x17ca   :  { %4482 = vmatpush3.msra.mxu1 %v4678_v12  ;;  %v3436_v9 = vmul.f32 %v3431_v6, %v7162_v16 }
0x17cb   :  { %v3433_v25 = vpop.f32.mrf.mxu0  ;;  %4483 = vmatprep.subr.mxu1 %v6969_v1 }
0x17cc   :  { %v3437_v5 = vmul.f32 %v3433_v25, %v5089_v62  ;;  %4484 = vmatpush3.msra.mxu1 %v4679_v19  ;;  %v4738_v62 = vmov 0  }
0x17cd   :  { %4485 = vmatprep.subr.mxu1 %v6969_v1  ;;  %4507 = vset.pattern.permute.xlu0 %v4738_v62 }
0x17ce   :  { %3502 = vmatprep.mubr.f32.mxu0 %v3437_v5  ;;  %4486 = vmatpush3.msra.mxu1 %v4680_v53 }
0x17cf   :  { %3503 = vmatmul.mubr.f32.vlgmr.msra.gmra.mxu0 %v3436_v9  ;;  %3618 = vmatprep.subr.mxu1 %v7164_v28  ;;  %v4246_v9 = vadd.f32 %v6502_v27, %v6500_v59 }
0x17d0   :  { %4363 = vmatpush3.msra.mxu0 %v7165_v29 }
0x17d1   :  { %4364 = vmatprep.subr.mxu0 %v7166_v30 }
0x17d2   :  { %4365 = vmatpush3.msra.mxu0 %v7167_v51 }
0x17d3   :  { %4366 = vmatprep.subr.mxu0 %v7168_v7 }
0x17d4   :  { %4367 = vmatpush3.msra.mxu0 %v7169_v8  ;;  %v4739_v8 = vmov 5  }
0x17d5   :  { %4368 = vmatprep.subr.mxu0 %v7170_v11  ;;  %v6683_v11 = vpop.xlane.xlu1 %3748 }
0x17d6   :  { %4369 = vmatpush3.msra.mxu0 %v7171_v34 }
0x17d7   :  { %4370 = vmatprep.subr.mxu0 %v7172_v36 }
0x17d8   :  { %4371 = vmatpush3.msra.mxu0 %v7173_v4 }
0x17d9   :  { %4372 = vmatprep.subr.mxu0 %v7174_v46  ;;  %v1430_v34 = vpop.permute.xlu1 %1429 }
0x17da   :  { %4373 = vmatpush3.msra.mxu0 %v7175_v45 }
0x17db   :  { %4374 = vmatprep.subr.mxu0 %v7176_v42 }
0x17dc   :  { %4375 = vmatpush3.msra.mxu0 %v7177_v41  ;;  %v7196_v41 = vld [vmem:[#allocation34_spill] sm:$0xff] }
0x17dd   :  { %4376 = vmatprep.subr.mxu0 %v7178_v39  ;;  %v1816_v36 = vpop.permute.xlu1 %1815 }
0x17de   :  { %4377 = vmatpush3.msra.mxu0 %v7179_v38  ;;  %v6690_v38 = vld [vmem:[%s6739_s10] ss:$0 sm:$0xff]  ;;  %s4741_s10 = smov [#allocation5]  }
0x17df   :  { %4378 = vmatprep.subr.mxu0 %v7180_v40  ;;  %s3760_s29 = sshll.u32 %s4741_s10, 4  ;;  %s3761_s29 = int_to_ptr.vmem [resolvable:$true] %s3760_s29 }
0x17e0   :  { %4379 = vmatpush3.msra.mxu0 %v7181_v54  ;;  %s4701_s30 = scalar_lea.vmem %s3761_s29, 128  ;;  %p4706_p6 = scmp.lt.s32.totalorder %s3761_s29, %s3761_s29 }
0x17e1   :  { %4380 = vmatprep.subr.mxu0 %v7182_v55  ;;  %v1425_v4 = vpop.permute.xlu1 %1424  ;;  %v7198_v55 = vld [vmem:[#allocation40_spill] sm:$0xff]  ;;  %p4702_p5 = scmp.ne.s32.totalorder %s3761_s29, %s4701_s30  ;;  %p4707_p7 = scmp.lt.s32.totalorder %s4701_s30, %s4701_s30 }
0x17e2   :  { %4381 = vmatpush3.msra.mxu0 %v7183_v56  ;;  %v7199_v56 = vld [vmem:[#allocation41_spill] sm:$0xff] }
0x17e3   :  { %4382 = vmatprep.subr.mxu0 %v7184_v57  ;;  %v4021_v57 = vadd.f32 %v7199_v56, %v7198_v55  ;;  %p4708_p8 = por %p4707_p7, %p4706_p6 }
0x17e4   :  { %4383 = vmatpush3.msra.mxu0 %v7185_v20 }
0x17e5   :  { %4384 = vmatprep.subr.mxu0 %v7186_v58  ;;  %v2202_v46 = vpop.permute.xlu1 %2201  ;;  %v1807_v17 = vadd.f32 %v4021_v57, %v6690_v38  ;;  %p4709_p9 = pnand %p4708_p8, %p4702_p5 }
0x17e6   :  { %4385 = vmatpush3.msra.mxu0 %v7187_v44  ;;  %v7200_v44 = vld [vmem:[#allocation60_spill] sm:$0xff] }
0x17e7   :  { %4386 = vmatprep.subr.mxu0 %v7188_v23  ;;  %v1035_v23 = vadd.f32 %v7200_v44, %v6690_v38 }
0x17e8   :  { %4387 = vmatpush3.msra.mxu0 %v7189_v52  ;;  %v7201_v52 = vld [vmem:[#allocation50_spill] sm:$0xff] }
0x17e9   :  { %4388 = vmatprep.subr.mxu0 %v7190_v49  ;;  %v1811_v45 = vpop.permute.xlu1 %1810  ;;  %v7202_v49 = vld [vmem:[#allocation45_spill] sm:$0xff]  ;;  %v1038_v12 = vadd.f32 %v6466_v22, %v1035_v23  ;;  %v2961_v22 = vadd.f32 %v4246_v9, %v6690_v38 }
0x17ea   :  { %4389 = vmatpush3.msra.mxu0 %v7191_v48  ;;  %v4096_v48 = vadd.f32 %v7202_v49, %v7201_v52  ;;  %v1813_v37 = vadd.f32 %v1811_v45, %v1807_v17 }
0x17eb   :  { %4390 = vmatprep.subr.mxu0 %v7192_v33 }
0x17ec   :  { %4391 = vmatpush3.msra.mxu0 %v7193_v15  ;;  %v2193_v24 = vadd.f32 %v4096_v48, %v6690_v38  ;;  %v1818_v62 = vmul.f32 %v1816_v36, %v1813_v37 }
0x17ed   :  { %4392 = vmatprep.subr.mxu0 %v7194_v35  ;;  %v2584_v42 = vpop.permute.xlu1 %2583  ;;  %v4171_v35 = vadd.f32 %v6360_v60, %v6358_v63 }
0x17ee   :  { %4393 = vmatpush3.msra.mxu0 %v7195_v32 }
0x17ef   :  { %v2578_v25 = vadd.f32 %v4171_v35, %v6690_v38 }
0x1887   :  { %v4319_v40 = vpop.f32.mrf.mxu1 }
0x1889   :  { %v4320_v32 = vpop.f32.mrf.mxu1 }
0x188a   :  { %v4321_v6 = vadd.f32 %v4320_v32, %v4319_v40 }
0x188f   :  { %v4354_v16 = vpop.f32.mrf.mxu0 }
0x1891   :  { %v4355_v28 = vpop.f32.mrf.mxu0 }
0x1892   :  { %v4356_v29 = vadd.f32 %v4355_v28, %v4354_v16  ;;  %v3348_v16 = vadd.f32 %v4321_v6, %v6690_v38 }
0x1894   :  { %v3508_v30 = vmul.f32 %v4356_v29, %v5097_v18  ;;  %v2197_v18 = vpop.permute.xlu1 %2196 }
0x1895   :  { %v2199_v63 = vadd.f32 %v2197_v18, %v2193_v24 }
0x1896   :  { %v3509_v51 = vadd.f32 %v3508_v30, %v6986_v3  ;;  %v7197_v3 = vld [vmem:[#allocation35_spill] sm:$0xff]  ;;  %v2581_v30 = vadd.f32 %v6480_v50, %v2578_v25 }
0x1897   :  { %v3946_v39 = vadd.f32 %v7197_v3, %v7196_v41 }
0x1898   :  { %v3510_v7 = vsel %vm579_vm2, %v3509_v51, -inf  ;;  %v3357_v58 = vpop.permute.xlu1 %3356 }
0x1899   :  { %3511 = vmax.xlane.f32.xlu0 %v3510_v7  ;;  %v1420_v33 = vadd.f32 %v3946_v39, %v6690_v38 }
0x189b   :  { %v1427_v13 = vadd.f32 %v1425_v4, %v1420_v33  ;;  %v2586_v4 = vmul.f32 %v2584_v42, %v2581_v30 }
0x189c   :  { %v2966_v5 = vpop.permute.xlu1 %2965 }
0x189d   :  { %v1432_v53 = vmul.f32 %v1430_v34, %v1427_v13  ;;  %v2968_v45 = vadd.f32 %v2966_v5, %v2961_v22 }
0x18a0   :  { %v3352_v29 = vpop.permute.xlu1 %3351 }
0x18a1   :  { %v3354_v41 = vadd.f32 %v3352_v29, %v3348_v16 }
0x18a3   :  { %v3359_v18 = vmul.f32 %v3357_v58, %v3354_v41 }
0x18a4   :  { %v3738_v56 = vpop.permute.xlu1 %3737 }
0x18af   :  { %1042 = vperm.xlu0 %4507, %v6455_v26  }
0x18b3   :  { %4512 = vset.pattern.permute.xlu0 %v4739_v8 }
0x18b4   :  { %2970 = vperm.xlu0 %4512, %v6455_v26  }
0x1922   :  { %v3512_v54 = vpop.xlane.xlu0 %3511 }
0x1923   :  { %v3513_v20 = vsub.f32 %v3509_v51, %v3512_v54  ;;  %v2204_v51 = vmul.f32 %v2202_v46, %v2199_v63 }
0x1925   :  { %v3514_v15 = vmul.f32 1.442695, %v3513_v20 }
0x1927   :  { %4543 = vpow2.f32 %v3514_v15 }
0x192a   :  { %v1043_v19 = vpop.permute.xlu0 %1042 }
0x192b   :  { %v1045_v60 = vmul.f32 %v1043_v19, %v1038_v12 }
0x192d   :  { %v1433_v28 = vadd.f32 %v1432_v53, %v1045_v60 }
0x192f   :  { %v1819_v7 = vadd.f32 %v1818_v62, %v1433_v28  ;;  %v2971_v8 = vpop.permute.xlu0 %2970 }
0x1930   :  { %v2973_v27 = vmul.f32 %v2971_v8, %v2968_v45 }
0x1931   :  { %v2205_v3 = vadd.f32 %v2204_v51, %v1819_v7 }
0x1933   :  { %v2587_v59 = vadd.f32 %v2586_v4, %v2205_v3 }
0x1934   :  { %v4544_v34 = vpop.eup %4543 }
0x1935   :  { %v2974_v36 = vadd.f32 %v2973_v27, %v2587_v59  ;;  %4488 = vmatmul.mubr.msk.f32.vlgmr.msra.gmra.mxu1 %vm579_vm2, %v4544_v34 }
0x1936   :  { %3619 = vmatpush1.msra.mxu1 %v6049_v0  ;;  %3658 = vmatprep.mubr.f32.mxu1 %v6969_v1  ;;  %v4740_v1 = vmov 7  }
0x1937   :  { %3620 = vmatprep.subr.mxu1 %v6056_v47  ;;  %v3360_v50 = vadd.f32 %v3359_v18, %v2974_v36  ;;  %4514 = vset.pattern.permute.xlu0 %v4740_v1 }
0x1938   :  { %3621 = vmatpush1.msra.mxu1 %v6062_v61  ;;  %3742 = vperm.xlu0 %4514, %v6455_v26  }
0x1939   :  { %3622 = vmatprep.subr.mxu1 %v6068_v14 }
0x193a   :  { %3623 = vmatpush1.msra.mxu1 %v6074_v43 }
0x193b   :  { %3624 = vmatprep.subr.mxu1 %v6080_v10  ;;  %v3750_v10 = vadd.f32 1e-07, %v6683_v11 }
0x193c   :  { %3625 = vmatpush1.msra.mxu1 %v6086_v31 }
0x19b3   :  { %v3743_v20 = vpop.permute.xlu0 %3742 }
0x19f5   :  { %v3585_v46 = vpop.f32.mrf.mxu1 }
0x19f6   :  { %v3586_v42 = vadd.f32 1e-30, %v3585_v46 }
0x19f7   :  { %v4489_v39 = vpop.f32.mrf.mxu1 }
0x19f8   :  { %4545 = vrcp.f32 %v3586_v42 }
0x19f9   :  { %4547 = vrcp.f32 %v3750_v10 }
0x1a05   :  { %v4546_v0 = vpop.eup %4545 }
0x1a06   :  { %v3590_v40 = vmul.f32 %v4546_v0, %v4544_v34 }
0x1a08   :  { %3794 = vmatmul.mubr.msk.f32.vlgmr.msra.gmra.mxu1 %vm579_vm2, %v3590_v40 }
0x1ac8   :  { %v3660_v47 = vpop.f32.mrf.mxu1 }
0x1ac9   :  { %v3665_v43 = vmul.f32 %v3660_v47, %v5427_v21 }
0x1aca   :  { %v3662_v61 = vpop.f32.mrf.mxu1 }
0x1acb   :  { %v3666_v14 = vmul.f32 %v3662_v61, %v5429_v2  ;;  %v4548_v2 = vpop.eup %4547 }
0x1acd   :  { %3731 = vmatprep.mubr.f32.mxu0 %v3666_v14 }
0x1ace   :  { %3732 = vmatmul.mubr.f32.vlgmr.msra.gmra.mxu0 %v3665_v43 }
0x1b8e   :  { %v4394_v31 = vpop.f32.mrf.mxu0 }
0x1b90   :  { %v4395_v54 = vpop.f32.mrf.mxu0 }
0x1b91   :  { %v4396_v55 = vadd.f32 %v4395_v54, %v4394_v31 }
0x1b93   :  { %v3734_v57 = vadd.f32 %v4396_v55, %v6690_v38 }
0x1b95   :  { %v3740_v58 = vadd.f32 %v3738_v56, %v3734_v57 }
0x1b97   :  { %v3745_v26 = vmul.f32 %v3743_v20, %v3740_v58 }
0x1b99   :  { %v3746_v44 = vadd.f32 %v3745_v26, %v3360_v50 }
0x1b9b   :  { %v3752_v23 = vmul.f32 %v4548_v2, %v3746_v44 }
0x1b9d   :  { %3753 = vst.msk [vmem:[#allocation5] sm:$0xff] %vm579_vm2, %v3752_v23 }
0x1b9e   :  { %4712 = shalt.err (!%p4709_p9)
}
0x1b9f   :  { %3763 = dma.vmem_to_hbm [thread:$0]  %s3761_s29, 128, %s6740_s11, [#allocation4]  }
0x1ba0   :  { %4723 = dma.done.wait [#allocation4], 128  }
0x1ba1   :  { %4724 = vsyncadd [#allocation4], 4294967168 }
0x1ba2   :  { %3767 = vsyncpa [#allocation3], 1 }
0x1ba3   :  { %3768 = vsyncpa [#allocation4], 1 }

</bundles_post_ra>
